<compile_context>
chip_gen: v6e
topology: v6e:2x2x1
jax: 0.10.0
libtpu: 0.0.40
codegen_flags: <defaults>
</compile_context>

<pallas_src>
import functools

import jax
import jax.numpy as jnp
from jax.experimental import pallas as pl
from jax.experimental.pallas import tpu as pltpu

BN_EPS = 1e-5  # transformers EfficientFormerConfig.batch_norm_eps default

_PARALLEL = pltpu.CompilerParams(dimension_semantics=("parallel",))


# ---------------------------------------------------------------------------
# Pallas kernels
# ---------------------------------------------------------------------------
def _conv_mm_kernel(p_ref, w_ref, s_ref, b_ref, o_ref, *, relu):
    """im2col-matmul 3x3 conv + folded BatchNorm (+ optional ReLU)."""
    acc = jnp.dot(p_ref[...], w_ref[...], preferred_element_type=jnp.float32)
    y = acc * s_ref[...] + b_ref[...]
    if relu:
        y = jnp.maximum(y, 0.0)
    o_ref[...] = y.astype(o_ref.dtype)


def _meta4d_kernel(xp_ref, inv_ref, ml_ref, mr_ref, ls1_ref,
                   w1_ref, s1_ref, b1_ref, w2_ref, s2_ref, b2_ref, ls2_ref,
                   o_ref, *, HW, W):
    """Fused Meta4D block on a flattened, token-padded feature map.

    xp_ref: (1, HW + 2*(W+1), C) zero-padded tokens; token t lives at W+1+t.
      mixer: x + ls1 * (avgpool3x3(x, count_include_pad=False) - x)
      mlp:   1x1 conv -> BN -> GELU -> 1x1 conv -> BN, layer-scaled residual
    The output is written back in the same padded layout (pad ring re-zeroed)
    so consecutive blocks chain without wrapper-side re-padding.
    """
    base = W + 1
    C = o_ref.shape[2]

    def tap(off):
        s = base + off
        return xp_ref[0, s:s + HW, :].astype(jnp.float32)

    x = tap(0)
    # 3x3 sum via 9 static shifted slices, grouped by horizontal offset; the
    # left/right groups are masked at image columns 0 / W-1 (a row wrap-around
    # read must contribute 0, exactly like the zero padding would).
    left = tap(-W - 1) + tap(-1) + tap(W - 1)
    mid = tap(-W) + x + tap(W)
    right = tap(-W + 1) + tap(1) + tap(W + 1)
    acc = mid + ml_ref[...] * left + mr_ref[...] * right
    pooled = acc * inv_ref[...]                 # 1 / #valid window elements
    mixed = x + ls1_ref[...] * (pooled - x)     # token-mixer residual

    h = jnp.dot(mixed, w1_ref[...], preferred_element_type=jnp.float32)
    h = h * s1_ref[...] + b1_ref[...]
    h = 0.5 * h * (1.0 + jax.lax.erf(h * 0.7071067811865476))   # exact GELU
    y = jnp.dot(h, w2_ref[...], preferred_element_type=jnp.float32)
    y = y * s2_ref[...] + b2_ref[...]
    res = (mixed + ls2_ref[...] * y).astype(o_ref.dtype)

    o_ref[0, 0:base, :] = jnp.zeros((base, C), o_ref.dtype)
    o_ref[0, base:base + HW, :] = res
    o_ref[0, base + HW:base + HW + base, :] = jnp.zeros((base, C), o_ref.dtype)


# ---------------------------------------------------------------------------
# Wrappers (JAX glue) + pallas_call setup
# ---------------------------------------------------------------------------
def _tile_rows(m):
    """Row-tile (<=512) for an (M, K) matmul; M is padded to a tile multiple."""
    for t in (512, 256, 128):
        if m >= t:
            return t, ((m + t - 1) // t) * t
    mp = ((m + 7) // 8) * 8
    return mp, mp


def conv3x3_bn(x, params, *, stride, relu):
    """3x3 conv (stride s, pad 1) + folded BN (+ReLU).  x: (B,H,W,Cin) NHWC."""
    # TODO(synk): im2col is still materialized wrapper-side; an in-kernel tap
    # accumulation for the stride-2 convs needs strided/polyphase VMEM
    # reshapes whose Mosaic lowering is not guaranteed, so it is kept in XLA.
    B, H, W, Cin = x.shape
    Cout = params["w"].shape[1]
    Ho = (H + 2 - 3) // stride + 1
    Wo = (W + 2 - 3) // stride + 1
    xp = jnp.pad(x, ((0, 0), (1, 1), (1, 1), (0, 0)))
    cols = []
    for di in range(3):
        for dj in range(3):
            cols.append(xp[:, di:di + stride * (Ho - 1) + 1:stride,
                           dj:dj + stride * (Wo - 1) + 1:stride, :])
    patches = jnp.concatenate(cols, axis=-1).reshape(B * Ho * Wo, 9 * Cin)

    M, K = patches.shape
    tm, Mp = _tile_rows(M)
    if Mp != M:
        patches = jnp.pad(patches, ((0, Mp - M), (0, 0)))
    out = pl.pallas_call(
        functools.partial(_conv_mm_kernel, relu=relu),
        out_shape=jax.ShapeDtypeStruct((Mp, Cout), jnp.float32),
        grid=(Mp // tm,),
        in_specs=[
            pl.BlockSpec((tm, K), lambda i: (i, 0)),
            pl.BlockSpec((K, Cout), lambda i: (0, 0)),
            pl.BlockSpec((1, Cout), lambda i: (0, 0)),
            pl.BlockSpec((1, Cout), lambda i: (0, 0)),
        ],
        out_specs=pl.BlockSpec((tm, Cout), lambda i: (i, 0)),
        compiler_params=_PARALLEL,
    )(patches, params["w"], params["scale"].reshape(1, Cout),
      params["bias"].reshape(1, Cout))
    return out[:M].reshape(B, Ho, Wo, Cout)


def _stage_aux(H, W):
    """Pooling constants: 1/#valid-window (count_include_pad=False) + masks."""
    ii = jnp.arange(H)
    jj = jnp.arange(W)
    rows = (jnp.minimum(ii + 1, H - 1) - jnp.maximum(ii - 1, 0) + 1).astype(jnp.float32)
    cols = (jnp.minimum(jj + 1, W - 1) - jnp.maximum(jj - 1, 0) + 1).astype(jnp.float32)
    inv = (1.0 / (rows[:, None] * cols[None, :])).reshape(H * W, 1)
    col_idx = jnp.tile(jnp.arange(W), H)                  # token t = i*W + j
    mask_l = (col_idx > 0).astype(jnp.float32).reshape(H * W, 1)
    mask_r = (col_idx < W - 1).astype(jnp.float32).reshape(H * W, 1)
    return inv, mask_l, mask_r


def meta4d_block(xpad, aux, blk, H, W):
    """One fused Meta4D block.  xpad: (B, H*W + 2*(W+1), C) padded tokens."""
    B, P, C = xpad.shape
    HW = H * W
    inv, mask_l, mask_r = aux
    Hd = blk["mlp1"]["w"].shape[1]
    vec = pl.BlockSpec((HW, 1), lambda b: (0, 0))
    chan = pl.BlockSpec((1, C), lambda b: (0, 0))
    hid = pl.BlockSpec((1, Hd), lambda b: (0, 0))
    return pl.pallas_call(
        functools.partial(_meta4d_kernel, HW=HW, W=W),
        out_shape=jax.ShapeDtypeStruct((B, P, C), jnp.float32),
        grid=(B,),
        in_specs=[
            pl.BlockSpec((1, P, C), lambda b: (b, 0, 0)),   # padded tokens
            vec, vec, vec,                                  # inv, mask_l, mask_r
            chan,                                           # ls1
            pl.BlockSpec((C, Hd), lambda b: (0, 0)),        # w1
            hid, hid,                                       # s1, b1
            pl.BlockSpec((Hd, C), lambda b: (0, 0)),        # w2
            chan, chan,                                     # s2, b2
            chan,                                           # ls2
        ],
        out_specs=pl.BlockSpec((1, P, C), lambda b: (b, 0, 0)),
        compiler_params=_PARALLEL,
    )(xpad, inv, mask_l, mask_r, blk["ls1"].reshape(1, C),
      blk["mlp1"]["w"], blk["mlp1"]["scale"].reshape(1, Hd),
      blk["mlp1"]["bias"].reshape(1, Hd),
      blk["mlp2"]["w"], blk["mlp2"]["scale"].reshape(1, C),
      blk["mlp2"]["bias"].reshape(1, C),
      blk["ls2"].reshape(1, C))


# ---------------------------------------------------------------------------
# Deterministic synthetic parameters (BN folded into scale/bias, eval mode)
# ---------------------------------------------------------------------------
def _make_bn(key, c):
    k1, k2, k3, k4 = jax.random.split(key, 4)
    gamma = 1.0 + 0.1 * jax.random.normal(k1, (c,), jnp.float32)
    beta = 0.1 * jax.random.normal(k2, (c,), jnp.float32)
    mean = 0.1 * jax.random.normal(k3, (c,), jnp.float32)
    var = 0.5 + 0.1 * jnp.abs(jax.random.normal(k4, (c,), jnp.float32))
    return gamma, beta, mean, var


def _fold(conv_bias, gamma, beta, mean, var):
    s = gamma / jnp.sqrt(var + BN_EPS)
    return s, (conv_bias - mean) * s + beta


def _make_conv3x3_bn(key, cin, cout, std=0.02):
    kw, kb, kbn = jax.random.split(key, 3)
    w = std * jax.random.normal(kw, (3, 3, cin, cout), jnp.float32)
    b = std * jax.random.normal(kb, (cout,), jnp.float32)
    s, bias = _fold(b, *_make_bn(kbn, cout))
    return {"w": w.reshape(9 * cin, cout), "scale": s, "bias": bias}


def _make_lin_bn(key, cin, cout, std=0.02):
    kw, kb, kbn = jax.random.split(key, 3)
    w = std * jax.random.normal(kw, (cin, cout), jnp.float32)
    b = std * jax.random.normal(kb, (cout,), jnp.float32)
    s, bias = _fold(b, *_make_bn(kbn, cout))
    return {"w": w, "scale": s, "bias": bias}


def init_params(key, depths, hidden_sizes, num_channels, mlp_ratio, ls_init):
    keys = iter(jax.random.split(key, 128))
    p = {}
    c0 = hidden_sizes[0]
    p["stem1"] = _make_conv3x3_bn(next(keys), num_channels, c0 // 2)
    p["stem2"] = _make_conv3x3_bn(next(keys), c0 // 2, c0)
    stages, downs = [], []
    n_int = len(depths) - 1  # last (Meta3D) stage is clipped to Identity
    for i in range(n_int):
        c = hidden_sizes[i]
        blocks = []
        for _ in range(depths[i]):
            k1, k2 = jax.random.split(next(keys))
            blocks.append({
                "ls1": ls_init * jnp.ones((c,), jnp.float32),
                "ls2": ls_init * jnp.ones((c,), jnp.float32),
                "mlp1": _make_lin_bn(k1, c, c * mlp_ratio),
                "mlp2": _make_lin_bn(k2, c * mlp_ratio, c),
            })
        stages.append(blocks)
        downs.append(_make_conv3x3_bn(next(keys), hidden_sizes[i], hidden_sizes[i + 1]))
    p["stages"] = stages
    p["downsamples"] = downs
    return p


# ---------------------------------------------------------------------------
# Forward = clipped EfficientFormerModel, returning hidden states [1, 3, 5, 6]
# ---------------------------------------------------------------------------
def efficientformer_forward(params, x_nchw):
    x = jnp.transpose(x_nchw, (0, 2, 3, 1)).astype(jnp.float32)   # NCHW -> NHWC
    x = conv3x3_bn(x, params["stem1"], stride=2, relu=True)       # conv stem
    x = conv3x3_bn(x, params["stem2"], stride=2, relu=True)
    feats = []
    for stage_blocks, down in zip(params["stages"], params["downsamples"]):
        B, H, W, C = x.shape
        HW, base = H * W, W + 1
        aux = _stage_aux(H, W)
        xpad = jnp.pad(x.reshape(B, HW, C), ((0, 0), (base, base), (0, 0)))
        for blk in stage_blocks:                                  # fused Meta4D blocks
            xpad = meta4d_block(xpad, aux, blk, H, W)
        x = xpad[:, base:base + HW, :].reshape(B, H, W, C)
        feats.append(jnp.transpose(x, (0, 3, 1, 2)))              # hidden state (NCHW)
        x = conv3x3_bn(x, down, stride=2, relu=False)             # patch-embed down
    feats.append(jnp.transpose(x, (0, 3, 1, 2)))                  # hidden state 6
    # TODO(synk): Meta3D last stage / flatten / final LayerNorm are identities
    # in the clipped torch module and therefore intentionally not implemented.
    return feats


if __name__ == "__main__":
    key = jax.random.PRNGKey(0)
    kp, kx = jax.random.split(key)

    # Small config consistent with the module (depths[-1] feeds the clipped
    # Meta3D stage and is unused).
    depths = [1, 1, 2, 1]
    hidden_sizes = [8, 16, 32, 64]
    params = init_params(kp, depths, hidden_sizes, num_channels=3,
                         mlp_ratio=4, ls_init=1e-5)

    x = jax.random.normal(kx, (2, 3, 32, 32), jnp.float32)  # NCHW like PyTorch
    fwd = jax.jit(efficientformer_forward)
    feats = jax.block_until_ready(fwd(params, x))

    expected = [(2, 8, 8, 8), (2, 16, 4, 4), (2, 32, 2, 2), (2, 64, 1, 1)]
    assert [tuple(f.shape) for f in feats] == expected, \
        [tuple(f.shape) for f in feats]
    assert all(bool(jnp.all(jnp.isfinite(f))) for f in feats)
    print("KERNEL_OK")
</pallas_src>

<mosaic_0001>
module attributes {stable_mosaic.version = 11 : i64} {
  func.func @_conv_mm_kernel(%arg0: i32, %arg1: memref<512x27xf32, #tpu.memory_space<vmem>>, %arg2: memref<27x4xf32, #tpu.memory_space<vmem>>, %arg3: memref<1x4xf32, #tpu.memory_space<vmem>>, %arg4: memref<1x4xf32, #tpu.memory_space<vmem>>, %arg5: memref<512x4xf32, #tpu.memory_space<vmem>>) attributes {dimension_semantics = [#tpu.dimension_semantics<parallel>], iteration_bounds = array<i64: 1>, scalar_prefetch = 0 : i64, scratch_operands = 0 : i64, tpu.core_type = #tpu.core_type<tc>, window_params = [{transform_indices = @transform_0, window_bounds = array<i64: 512, 27>}, {pipeline_mode = #tpu.pipeline_mode<synchronous>, transform_indices = @transform_1, window_bounds = array<i64: 27, 4>}, {pipeline_mode = #tpu.pipeline_mode<synchronous>, transform_indices = @transform_2, window_bounds = array<i64: 1, 4>}, {pipeline_mode = #tpu.pipeline_mode<synchronous>, transform_indices = @transform_3, window_bounds = array<i64: 1, 4>}, {transform_indices = @transform_4, window_bounds = array<i64: 512, 4>}]} {
    %c0 = arith.constant 0 : index
    %c0_0 = arith.constant 0 : index
    %0 = vector.load %arg1[%c0, %c0_0] : memref<512x27xf32, #tpu.memory_space<vmem>>, vector<512x27xf32>
    %c0_1 = arith.constant 0 : index
    %c0_2 = arith.constant 0 : index
    %1 = vector.load %arg2[%c0_1, %c0_2] : memref<27x4xf32, #tpu.memory_space<vmem>>, vector<27x4xf32>
    %cst = arith.constant dense<0.000000e+00> : vector<512x4xf32>
    %2 = tpu.matmul %0, %1, %cst {dimension_numbers = #tpu.dot_dimension_numbers<[1], [0], [0], [1], [0, 0, 1, 1], [], []>} : vector<512x27xf32>, vector<27x4xf32>, vector<512x4xf32> -> vector<512x4xf32>
    %c0_3 = arith.constant 0 : index
    %c0_4 = arith.constant 0 : index
    %3 = vector.load %arg3[%c0_3, %c0_4] : memref<1x4xf32, #tpu.memory_space<vmem>>, vector<1x4xf32>
    %4 = vector.broadcast %3 : vector<1x4xf32> to vector<512x4xf32>
    %5 = arith.mulf %2, %4 : vector<512x4xf32>
    %c0_5 = arith.constant 0 : index
    %c0_6 = arith.constant 0 : index
    %6 = vector.load %arg4[%c0_5, %c0_6] : memref<1x4xf32, #tpu.memory_space<vmem>>, vector<1x4xf32>
    %7 = vector.broadcast %6 : vector<1x4xf32> to vector<512x4xf32>
    %8 = arith.addf %5, %7 : vector<512x4xf32>
    %cst_7 = arith.constant 0.000000e+00 : f32
    %9 = vector.broadcast %cst_7 : f32 to vector<512x4xf32>
    %10 = arith.maximumf %8, %9 : vector<512x4xf32>
    %c0_8 = arith.constant 0 : index
    %c0_9 = arith.constant 0 : index
    %11 = vector.load %arg5[%c0_8, %c0_9] : memref<512x4xf32, #tpu.memory_space<vmem>>, vector<512x4xf32>
    tpu.vector_store %arg5[%c0_8, %c0_9], %10 {strides = array<i32>} : memref<512x4xf32, #tpu.memory_space<vmem>>, vector<512x4xf32>,
    return
  }
  func.func @transform_0(%arg0: i32) -> (i32, i32) {
    %c0_i32 = arith.constant 0 : i32
    %c0_i32_0 = arith.constant 0 : i32
    return %arg0, %c0_i32 : i32, i32
  }
  func.func @transform_1(%arg0: i32) -> (i32, i32) {
    %c0_i32 = arith.constant 0 : i32
    %c0_i32_0 = arith.constant 0 : i32
    %c0_i32_1 = arith.constant 0 : i32
    return %c0_i32, %c0_i32_0 : i32, i32
  }
  func.func @transform_2(%arg0: i32) -> (i32, i32) {
    %c0_i32 = arith.constant 0 : i32
    %c0_i32_0 = arith.constant 0 : i32
    %c0_i32_1 = arith.constant 0 : i32
    return %c0_i32, %c0_i32_0 : i32, i32
  }
  func.func @transform_3(%arg0: i32) -> (i32, i32) {
    %c0_i32 = arith.constant 0 : i32
    %c0_i32_0 = arith.constant 0 : i32
    %c0_i32_1 = arith.constant 0 : i32
    return %c0_i32, %c0_i32_0 : i32, i32
  }
  func.func @transform_4(%arg0: i32) -> (i32, i32) {
    %c0_i32 = arith.constant 0 : i32
    %c0_i32_0 = arith.constant 0 : i32
    return %arg0, %c0_i32 : i32, i32
  }
}

module attributes {stable_mosaic.version = 11 : i64} {
  func.func @_conv_mm_kernel(%arg0: i32, %arg1: memref<128x36xf32, #tpu.memory_space<vmem>>, %arg2: memref<36x8xf32, #tpu.memory_space<vmem>>, %arg3: memref<1x8xf32, #tpu.memory_space<vmem>>, %arg4: memref<1x8xf32, #tpu.memory_space<vmem>>, %arg5: memref<128x8xf32, #tpu.memory_space<vmem>>) attributes {dimension_semantics = [#tpu.dimension_semantics<parallel>], iteration_bounds = array<i64: 1>, scalar_prefetch = 0 : i64, scratch_operands = 0 : i64, tpu.core_type = #tpu.core_type<tc>, window_params = [{transform_indices = @transform_0, window_bounds = array<i64: 128, 36>}, {pipeline_mode = #tpu.pipeline_mode<synchronous>, transform_indices = @transform_1, window_bounds = array<i64: 36, 8>}, {pipeline_mode = #tpu.pipeline_mode<synchronous>, transform_indices = @transform_2, window_bounds = array<i64: 1, 8>}, {pipeline_mode = #tpu.pipeline_mode<synchronous>, transform_indices = @transform_3, window_bounds = array<i64: 1, 8>}, {transform_indices = @transform_4, window_bounds = array<i64: 128, 8>}]} {
    %c0 = arith.constant 0 : index
    %c0_0 = arith.constant 0 : index
    %0 = vector.load %arg1[%c0, %c0_0] : memref<128x36xf32, #tpu.memory_space<vmem>>, vector<128x36xf32>
    %c0_1 = arith.constant 0 : index
    %c0_2 = arith.constant 0 : index
    %1 = vector.load %arg2[%c0_1, %c0_2] : memref<36x8xf32, #tpu.memory_space<vmem>>, vector<36x8xf32>
    %cst = arith.constant dense<0.000000e+00> : vector<128x8xf32>
    %2 = tpu.matmul %0, %1, %cst {dimension_numbers = #tpu.dot_dimension_numbers<[1], [0], [0], [1], [0, 0, 1, 1], [], []>} : vector<128x36xf32>, vector<36x8xf32>, vector<128x8xf32> -> vector<128x8xf32>
    %c0_3 = arith.constant 0 : index
    %c0_4 = arith.constant 0 : index
    %3 = vector.load %arg3[%c0_3, %c0_4] : memref<1x8xf32, #tpu.memory_space<vmem>>, vector<1x8xf32>
    %4 = vector.broadcast %3 : vector<1x8xf32> to vector<128x8xf32>
    %5 = arith.mulf %2, %4 : vector<128x8xf32>
    %c0_5 = arith.constant 0 : index
    %c0_6 = arith.constant 0 : index
    %6 = vector.load %arg4[%c0_5, %c0_6] : memref<1x8xf32, #tpu.memory_space<vmem>>, vector<1x8xf32>
    %7 = vector.broadcast %6 : vector<1x8xf32> to vector<128x8xf32>
    %8 = arith.addf %5, %7 : vector<128x8xf32>
    %cst_7 = arith.constant 0.000000e+00 : f32
    %9 = vector.broadcast %cst_7 : f32 to vector<128x8xf32>
    %10 = arith.maximumf %8, %9 : vector<128x8xf32>
    %c0_8 = arith.constant 0 : index
    %c0_9 = arith.constant 0 : index
    %11 = vector.load %arg5[%c0_8, %c0_9] : memref<128x8xf32, #tpu.memory_space<vmem>>, vector<128x8xf32>
    tpu.vector_store %arg5[%c0_8, %c0_9], %10 {strides = array<i32>} : memref<128x8xf32, #tpu.memory_space<vmem>>, vector<128x8xf32>,
    return
  }
  func.func @transform_0(%arg0: i32) -> (i32, i32) {
    %c0_i32 = arith.constant 0 : i32
    %c0_i32_0 = arith.constant 0 : i32
    return %arg0, %c0_i32 : i32, i32
  }
  func.func @transform_1(%arg0: i32) -> (i32, i32) {
    %c0_i32 = arith.constant 0 : i32
    %c0_i32_0 = arith.constant 0 : i32
    %c0_i32_1 = arith.constant 0 : i32
    return %c0_i32, %c0_i32_0 : i32, i32
  }
  func.func @transform_2(%arg0: i32) -> (i32, i32) {
    %c0_i32 = arith.constant 0 : i32
    %c0_i32_0 = arith.constant 0 : i32
    %c0_i32_1 = arith.constant 0 : i32
    return %c0_i32, %c0_i32_0 : i32, i32
  }
  func.func @transform_3(%arg0: i32) -> (i32, i32) {
    %c0_i32 = arith.constant 0 : i32
    %c0_i32_0 = arith.constant 0 : i32
    %c0_i32_1 = arith.constant 0 : i32
    return %c0_i32, %c0_i32_0 : i32, i32
  }
  func.func @transform_4(%arg0: i32) -> (i32, i32) {
    %c0_i32 = arith.constant 0 : i32
    %c0_i32_0 = arith.constant 0 : i32
    return %arg0, %c0_i32 : i32, i32
  }
}

module attributes {stable_mosaic.version = 11 : i64} {
  func.func @_meta4d_kernel(%arg0: i32, %arg1: memref<1x82x8xf32, #tpu.memory_space<vmem>>, %arg2: memref<64x1xf32, #tpu.memory_space<vmem>>, %arg3: memref<64x1xf32, #tpu.memory_space<vmem>>, %arg4: memref<64x1xf32, #tpu.memory_space<vmem>>, %arg5: memref<1x8xf32, #tpu.memory_space<vmem>>, %arg6: memref<8x32xf32, #tpu.memory_space<vmem>>, %arg7: memref<1x32xf32, #tpu.memory_space<vmem>>, %arg8: memref<1x32xf32, #tpu.memory_space<vmem>>, %arg9: memref<32x8xf32, #tpu.memory_space<vmem>>, %arg10: memref<1x8xf32, #tpu.memory_space<vmem>>, %arg11: memref<1x8xf32, #tpu.memory_space<vmem>>, %arg12: memref<1x8xf32, #tpu.memory_space<vmem>>, %arg13: memref<1x82x8xf32, #tpu.memory_space<vmem>>) attributes {dimension_semantics = [#tpu.dimension_semantics<parallel>], iteration_bounds = array<i64: 2>, scalar_prefetch = 0 : i64, scratch_operands = 0 : i64, tpu.core_type = #tpu.core_type<tc>, window_params = [{transform_indices = @transform_0, window_bounds = array<i64: 1, 82, 8>}, {pipeline_mode = #tpu.pipeline_mode<synchronous>, transform_indices = @transform_1, window_bounds = array<i64: 64, 1>}, {pipeline_mode = #tpu.pipeline_mode<synchronous>, transform_indices = @transform_2, window_bounds = array<i64: 64, 1>}, {pipeline_mode = #tpu.pipeline_mode<synchronous>, transform_indices = @transform_3, window_bounds = array<i64: 64, 1>}, {pipeline_mode = #tpu.pipeline_mode<synchronous>, transform_indices = @transform_4, window_bounds = array<i64: 1, 8>}, {pipeline_mode = #tpu.pipeline_mode<synchronous>, transform_indices = @transform_5, window_bounds = array<i64: 8, 32>}, {pipeline_mode = #tpu.pipeline_mode<synchronous>, transform_indices = @transform_6, window_bounds = array<i64: 1, 32>}, {pipeline_mode = #tpu.pipeline_mode<synchronous>, transform_indices = @transform_7, window_bounds = array<i64: 1, 32>}, {pipeline_mode = #tpu.pipeline_mode<synchronous>, transform_indices = @transform_8, window_bounds = array<i64: 32, 8>}, {pipeline_mode = #tpu.pipeline_mode<synchronous>, transform_indices = @transform_9, window_bounds = array<i64: 1, 8>}, {pipeline_mode = #tpu.pipeline_mode<synchronous>, transform_indices = @transform_10, window_bounds = array<i64: 1, 8>}, {pipeline_mode = #tpu.pipeline_mode<synchronous>, transform_indices = @transform_11, window_bounds = array<i64: 1, 8>}, {transform_indices = @transform_12, window_bounds = array<i64: 1, 82, 8>}]} {
    %c0 = arith.constant 0 : index
    %c9 = arith.constant 9 : index
    %c0_0 = arith.constant 0 : index
    %0 = vector.load %arg1[%c0, %c9, %c0_0] : memref<1x82x8xf32, #tpu.memory_space<vmem>>, vector<1x64x8xf32>
    %1 = vector.shape_cast %0 : vector<1x64x8xf32> to vector<64x8xf32>
    %c0_1 = arith.constant 0 : index
    %c0_2 = arith.constant 0 : index
    %c0_3 = arith.constant 0 : index
    %2 = vector.load %arg1[%c0_1, %c0_2, %c0_3] : memref<1x82x8xf32, #tpu.memory_space<vmem>>, vector<1x64x8xf32>
    %3 = vector.shape_cast %2 : vector<1x64x8xf32> to vector<64x8xf32>
    %c0_4 = arith.constant 0 : index
    %c8 = arith.constant 8 : index
    %c0_5 = arith.constant 0 : index
    %4 = vector.load %arg1[%c0_4, %c8, %c0_5] : memref<1x82x8xf32, #tpu.memory_space<vmem>>, vector<1x64x8xf32>
    %5 = vector.shape_cast %4 : vector<1x64x8xf32> to vector<64x8xf32>
    %6 = arith.addf %3, %5 : vector<64x8xf32>
    %c0_6 = arith.constant 0 : index
    %c16 = arith.constant 16 : index
    %c0_7 = arith.constant 0 : index
    %7 = vector.load %arg1[%c0_6, %c16, %c0_7] : memref<1x82x8xf32, #tpu.memory_space<vmem>>, vector<1x64x8xf32>
    %8 = vector.shape_cast %7 : vector<1x64x8xf32> to vector<64x8xf32>
    %9 = arith.addf %6, %8 : vector<64x8xf32>
    %c0_8 = arith.constant 0 : index
    %c1 = arith.constant 1 : index
    %c0_9 = arith.constant 0 : index
    %10 = vector.load %arg1[%c0_8, %c1, %c0_9] : memref<1x82x8xf32, #tpu.memory_space<vmem>>, vector<1x64x8xf32>
    %11 = vector.shape_cast %10 : vector<1x64x8xf32> to vector<64x8xf32>
    %12 = arith.addf %11, %1 : vector<64x8xf32>
    %c0_10 = arith.constant 0 : index
    %c17 = arith.constant 17 : index
    %c0_11 = arith.constant 0 : index
    %13 = vector.load %arg1[%c0_10, %c17, %c0_11] : memref<1x82x8xf32, #tpu.memory_space<vmem>>, vector<1x64x8xf32>
    %14 = vector.shape_cast %13 : vector<1x64x8xf32> to vector<64x8xf32>
    %15 = arith.addf %12, %14 : vector<64x8xf32>
    %c0_12 = arith.constant 0 : index
    %c2 = arith.constant 2 : index
    %c0_13 = arith.constant 0 : index
    %16 = vector.load %arg1[%c0_12, %c2, %c0_13] : memref<1x82x8xf32, #tpu.memory_space<vmem>>, vector<1x64x8xf32>
    %17 = vector.shape_cast %16 : vector<1x64x8xf32> to vector<64x8xf32>
    %c0_14 = arith.constant 0 : index
    %c10 = arith.constant 10 : index
    %c0_15 = arith.constant 0 : index
    %18 = vector.load %arg1[%c0_14, %c10, %c0_15] : memref<1x82x8xf32, #tpu.memory_space<vmem>>, vector<1x64x8xf32>
    %19 = vector.shape_cast %18 : vector<1x64x8xf32> to vector<64x8xf32>
    %20 = arith.addf %17, %19 : vector<64x8xf32>
    %c0_16 = arith.constant 0 : index
    %c18 = arith.constant 18 : index
    %c0_17 = arith.constant 0 : index
    %21 = vector.load %arg1[%c0_16, %c18, %c0_17] : memref<1x82x8xf32, #tpu.memory_space<vmem>>, vector<1x64x8xf32>
    %22 = vector.shape_cast %21 : vector<1x64x8xf32> to vector<64x8xf32>
    %23 = arith.addf %20, %22 : vector<64x8xf32>
    %c0_18 = arith.constant 0 : index
    %c0_19 = arith.constant 0 : index
    %24 = vector.load %arg3[%c0_18, %c0_19] : memref<64x1xf32, #tpu.memory_space<vmem>>, vector<64x1xf32>
    %25 = vector.broadcast %24 : vector<64x1xf32> to vector<64x8xf32>
    %26 = arith.mulf %25, %9 : vector<64x8xf32>
    %27 = arith.addf %15, %26 : vector<64x8xf32>
    %c0_20 = arith.constant 0 : index
    %c0_21 = arith.constant 0 : index
    %28 = vector.load %arg4[%c0_20, %c0_21] : memref<64x1xf32, #tpu.memory_space<vmem>>, vector<64x1xf32>
    %29 = vector.broadcast %28 : vector<64x1xf32> to vector<64x8xf32>
    %30 = arith.mulf %29, %23 : vector<64x8xf32>
    %31 = arith.addf %27, %30 : vector<64x8xf32>
    %c0_22 = arith.constant 0 : index
    %c0_23 = arith.constant 0 : index
    %32 = vector.load %arg2[%c0_22, %c0_23] : memref<64x1xf32, #tpu.memory_space<vmem>>, vector<64x1xf32>
    %33 = vector.broadcast %32 : vector<64x1xf32> to vector<64x8xf32>
    %34 = arith.mulf %31, %33 : vector<64x8xf32>
    %c0_24 = arith.constant 0 : index
    %c0_25 = arith.constant 0 : index
    %35 = vector.load %arg5[%c0_24, %c0_25] : memref<1x8xf32, #tpu.memory_space<vmem>>, vector<1x8xf32>
    %36 = arith.subf %34, %1 : vector<64x8xf32>
    %37 = vector.broadcast %35 : vector<1x8xf32> to vector<64x8xf32>
    %38 = arith.mulf %37, %36 : vector<64x8xf32>
    %39 = arith.addf %1, %38 : vector<64x8xf32>
    %c0_26 = arith.constant 0 : index
    %c0_27 = arith.constant 0 : index
    %40 = vector.load %arg6[%c0_26, %c0_27] : memref<8x32xf32, #tpu.memory_space<vmem>>, vector<8x32xf32>
    %cst = arith.constant dense<0.000000e+00> : vector<64x32xf32>
    %41 = tpu.matmul %39, %40, %cst {dimension_numbers = #tpu.dot_dimension_numbers<[1], [0], [0], [1], [0, 0, 1, 1], [], []>} : vector<64x8xf32>, vector<8x32xf32>, vector<64x32xf32> -> vector<64x32xf32>
    %c0_28 = arith.constant 0 : index
    %c0_29 = arith.constant 0 : index
    %42 = vector.load %arg7[%c0_28, %c0_29] : memref<1x32xf32, #tpu.memory_space<vmem>>, vector<1x32xf32>
    %43 = vector.broadcast %42 : vector<1x32xf32> to vector<64x32xf32>
    %44 = arith.mulf %41, %43 : vector<64x32xf32>
    %c0_30 = arith.constant 0 : index
    %c0_31 = arith.constant 0 : index
    %45 = vector.load %arg8[%c0_30, %c0_31] : memref<1x32xf32, #tpu.memory_space<vmem>>, vector<1x32xf32>
    %46 = vector.broadcast %45 : vector<1x32xf32> to vector<64x32xf32>
    %47 = arith.addf %44, %46 : vector<64x32xf32>
    %cst_32 = arith.constant 5.000000e-01 : f32
    %48 = vector.broadcast %cst_32 : f32 to vector<64x32xf32>
    %49 = arith.mulf %48, %47 : vector<64x32xf32>
    %cst_33 = arith.constant 0.707106769 : f32
    %50 = vector.broadcast %cst_33 : f32 to vector<64x32xf32>
    %51 = arith.mulf %47, %50 : vector<64x32xf32>
    %52 = math.erf %51 : vector<64x32xf32>
    %cst_34 = arith.constant 1.000000e+00 : f32
    %53 = vector.broadcast %cst_34 : f32 to vector<64x32xf32>
    %54 = arith.addf %53, %52 : vector<64x32xf32>
    %55 = arith.mulf %49, %54 : vector<64x32xf32>
    %c0_35 = arith.constant 0 : index
    %c0_36 = arith.constant 0 : index
    %56 = vector.load %arg9[%c0_35, %c0_36] : memref<32x8xf32, #tpu.memory_space<vmem>>, vector<32x8xf32>
    %cst_37 = arith.constant dense<0.000000e+00> : vector<64x8xf32>
    %57 = tpu.matmul %55, %56, %cst_37 {dimension_numbers = #tpu.dot_dimension_numbers<[1], [0], [0], [1], [0, 0, 1, 1], [], []>} : vector<64x32xf32>, vector<32x8xf32>, vector<64x8xf32> -> vector<64x8xf32>
    %c0_38 = arith.constant 0 : index
    %c0_39 = arith.constant 0 : index
    %58 = vector.load %arg10[%c0_38, %c0_39] : memref<1x8xf32, #tpu.memory_space<vmem>>, vector<1x8xf32>
    %59 = vector.broadcast %58 : vector<1x8xf32> to vector<64x8xf32>
    %60 = arith.mulf %57, %59 : vector<64x8xf32>
    %c0_40 = arith.constant 0 : index
    %c0_41 = arith.constant 0 : index
    %61 = vector.load %arg11[%c0_40, %c0_41] : memref<1x8xf32, #tpu.memory_space<vmem>>, vector<1x8xf32>
    %62 = vector.broadcast %61 : vector<1x8xf32> to vector<64x8xf32>
    %63 = arith.addf %60, %62 : vector<64x8xf32>
    %c0_42 = arith.constant 0 : index
    %c0_43 = arith.constant 0 : index
    %64 = vector.load %arg12[%c0_42, %c0_43] : memref<1x8xf32, #tpu.memory_space<vmem>>, vector<1x8xf32>
    %65 = vector.broadcast %64 : vector<1x8xf32> to vector<64x8xf32>
    %66 = arith.mulf %65, %63 : vector<64x8xf32>
    %67 = arith.addf %39, %66 : vector<64x8xf32>
    %cst_44 = arith.constant 0.000000e+00 : f32
    %68 = vector.broadcast %cst_44 : f32 to vector<9x8xf32>
    %c0_45 = arith.constant 0 : index
    %c0_46 = arith.constant 0 : index
    %c0_47 = arith.constant 0 : index
    %69 = vector.load %arg13[%c0_45, %c0_46, %c0_47] : memref<1x82x8xf32, #tpu.memory_space<vmem>>, vector<1x9x8xf32>
    %70 = vector.shape_cast %69 : vector<1x9x8xf32> to vector<9x8xf32>
    %71 = vector.shape_cast %68 : vector<9x8xf32> to vector<1x9x8xf32>
    tpu.vector_store %arg13[%c0_45, %c0_46, %c0_47], %71 {strides = array<i32>} : memref<1x82x8xf32, #tpu.memory_space<vmem>>, vector<1x9x8xf32>,
    %c0_48 = arith.constant 0 : index
    %c9_49 = arith.constant 9 : index
    %c0_50 = arith.constant 0 : index
    %72 = vector.load %arg13[%c0_48, %c9_49, %c0_50] : memref<1x82x8xf32, #tpu.memory_space<vmem>>, vector<1x64x8xf32>
    %73 = vector.shape_cast %72 : vector<1x64x8xf32> to vector<64x8xf32>
    %74 = vector.shape_cast %67 : vector<64x8xf32> to vector<1x64x8xf32>
    tpu.vector_store %arg13[%c0_48, %c9_49, %c0_50], %74 {strides = array<i32>} : memref<1x82x8xf32, #tpu.memory_space<vmem>>, vector<1x64x8xf32>,
    %cst_51 = arith.constant 0.000000e+00 : f32
    %75 = vector.broadcast %cst_51 : f32 to vector<9x8xf32>
    %c0_52 = arith.constant 0 : index
    %c73 = arith.constant 73 : index
    %c0_53 = arith.constant 0 : index
    %76 = vector.load %arg13[%c0_52, %c73, %c0_53] : memref<1x82x8xf32, #tpu.memory_space<vmem>>, vector<1x9x8xf32>
    %77 = vector.shape_cast %76 : vector<1x9x8xf32> to vector<9x8xf32>
    %78 = vector.shape_cast %75 : vector<9x8xf32> to vector<1x9x8xf32>
    tpu.vector_store %arg13[%c0_52, %c73, %c0_53], %78 {strides = array<i32>} : memref<1x82x8xf32, #tpu.memory_space<vmem>>, vector<1x9x8xf32>,
    return
  }
  func.func @transform_0(%arg0: i32) -> (i32, i32, i32) {
    %c0_i32 = arith.constant 0 : i32
    %c0_i32_0 = arith.constant 0 : i32
    %c0_i32_1 = arith.constant 0 : i32
    return %arg0, %c0_i32, %c0_i32_0 : i32, i32, i32
  }
  func.func @transform_1(%arg0: i32) -> (i32, i32) {
    %c0_i32 = arith.constant 0 : i32
    %c0_i32_0 = arith.constant 0 : i32
    %c0_i32_1 = arith.constant 0 : i32
    return %c0_i32, %c0_i32_0 : i32, i32
  }
  func.func @transform_2(%arg0: i32) -> (i32, i32) {
    %c0_i32 = arith.constant 0 : i32
    %c0_i32_0 = arith.constant 0 : i32
    %c0_i32_1 = arith.constant 0 : i32
    return %c0_i32, %c0_i32_0 : i32, i32
  }
  func.func @transform_3(%arg0: i32) -> (i32, i32) {
    %c0_i32 = arith.constant 0 : i32
    %c0_i32_0 = arith.constant 0 : i32
    %c0_i32_1 = arith.constant 0 : i32
    return %c0_i32, %c0_i32_0 : i32, i32
  }
  func.func @transform_4(%arg0: i32) -> (i32, i32) {
    %c0_i32 = arith.constant 0 : i32
    %c0_i32_0 = arith.constant 0 : i32
    %c0_i32_1 = arith.constant 0 : i32
    return %c0_i32, %c0_i32_0 : i32, i32
  }
  func.func @transform_5(%arg0: i32) -> (i32, i32) {
    %c0_i32 = arith.constant 0 : i32
    %c0_i32_0 = arith.constant 0 : i32
    %c0_i32_1 = arith.constant 0 : i32
    return %c0_i32, %c0_i32_0 : i32, i32
  }
  func.func @transform_6(%arg0: i32) -> (i32, i32) {
    %c0_i32 = arith.constant 0 : i32
    %c0_i32_0 = arith.constant 0 : i32
    %c0_i32_1 = arith.constant 0 : i32
    return %c0_i32, %c0_i32_0 : i32, i32
  }
  func.func @transform_7(%arg0: i32) -> (i32, i32) {
    %c0_i32 = arith.constant 0 : i32
    %c0_i32_0 = arith.constant 0 : i32
    %c0_i32_1 = arith.constant 0 : i32
    return %c0_i32, %c0_i32_0 : i32, i32
  }
  func.func @transform_8(%arg0: i32) -> (i32, i32) {
    %c0_i32 = arith.constant 0 : i32
    %c0_i32_0 = arith.constant 0 : i32
    %c0_i32_1 = arith.constant 0 : i32
    return %c0_i32, %c0_i32_0 : i32, i32
  }
  func.func @transform_9(%arg0: i32) -> (i32, i32) {
    %c0_i32 = arith.constant 0 : i32
    %c0_i32_0 = arith.constant 0 : i32
    %c0_i32_1 = arith.constant 0 : i32
    return %c0_i32, %c0_i32_0 : i32, i32
  }
  func.func @transform_10(%arg0: i32) -> (i32, i32) {
    %c0_i32 = arith.constant 0 : i32
    %c0_i32_0 = arith.constant 0 : i32
    %c0_i32_1 = arith.constant 0 : i32
    return %c0_i32, %c0_i32_0 : i32, i32
  }
  func.func @transform_11(%arg0: i32) -> (i32, i32) {
    %c0_i32 = arith.constant 0 : i32
    %c0_i32_0 = arith.constant 0 : i32
    %c0_i32_1 = arith.constant 0 : i32
    return %c0_i32, %c0_i32_0 : i32, i32
  }
  func.func @transform_12(%arg0: i32) -> (i32, i32, i32) {
    %c0_i32 = arith.constant 0 : i32
    %c0_i32_0 = arith.constant 0 : i32
    %c0_i32_1 = arith.constant 0 : i32
    return %arg0, %c0_i32, %c0_i32_0 : i32, i32, i32
  }
}

module attributes {stable_mosaic.version = 11 : i64} {
  func.func @_conv_mm_kernel(%arg0: i32, %arg1: memref<32x72xf32, #tpu.memory_space<vmem>>, %arg2: memref<72x16xf32, #tpu.memory_space<vmem>>, %arg3: memref<1x16xf32, #tpu.memory_space<vmem>>, %arg4: memref<1x16xf32, #tpu.memory_space<vmem>>, %arg5: memref<32x16xf32, #tpu.memory_space<vmem>>) attributes {dimension_semantics = [#tpu.dimension_semantics<parallel>], iteration_bounds = array<i64: 1>, scalar_prefetch = 0 : i64, scratch_operands = 0 : i64, tpu.core_type = #tpu.core_type<tc>, window_params = [{transform_indices = @transform_0, window_bounds = array<i64: 32, 72>}, {pipeline_mode = #tpu.pipeline_mode<synchronous>, transform_indices = @transform_1, window_bounds = array<i64: 72, 16>}, {pipeline_mode = #tpu.pipeline_mode<synchronous>, transform_indices = @transform_2, window_bounds = array<i64: 1, 16>}, {pipeline_mode = #tpu.pipeline_mode<synchronous>, transform_indices = @transform_3, window_bounds = array<i64: 1, 16>}, {transform_indices = @transform_4, window_bounds = array<i64: 32, 16>}]} {
    %c0 = arith.constant 0 : index
    %c0_0 = arith.constant 0 : index
    %0 = vector.load %arg1[%c0, %c0_0] : memref<32x72xf32, #tpu.memory_space<vmem>>, vector<32x72xf32>
    %c0_1 = arith.constant 0 : index
    %c0_2 = arith.constant 0 : index
    %1 = vector.load %arg2[%c0_1, %c0_2] : memref<72x16xf32, #tpu.memory_space<vmem>>, vector<72x16xf32>
    %cst = arith.constant dense<0.000000e+00> : vector<32x16xf32>
    %2 = tpu.matmul %0, %1, %cst {dimension_numbers = #tpu.dot_dimension_numbers<[1], [0], [0], [1], [0, 0, 1, 1], [], []>} : vector<32x72xf32>, vector<72x16xf32>, vector<32x16xf32> -> vector<32x16xf32>
    %c0_3 = arith.constant 0 : index
    %c0_4 = arith.constant 0 : index
    %3 = vector.load %arg3[%c0_3, %c0_4] : memref<1x16xf32, #tpu.memory_space<vmem>>, vector<1x16xf32>
    %4 = vector.broadcast %3 : vector<1x16xf32> to vector<32x16xf32>
    %5 = arith.mulf %2, %4 : vector<32x16xf32>
    %c0_5 = arith.constant 0 : index
    %c0_6 = arith.constant 0 : index
    %6 = vector.load %arg4[%c0_5, %c0_6] : memref<1x16xf32, #tpu.memory_space<vmem>>, vector<1x16xf32>
    %7 = vector.broadcast %6 : vector<1x16xf32> to vector<32x16xf32>
    %8 = arith.addf %5, %7 : vector<32x16xf32>
    %c0_7 = arith.constant 0 : index
    %c0_8 = arith.constant 0 : index
    %9 = vector.load %arg5[%c0_7, %c0_8] : memref<32x16xf32, #tpu.memory_space<vmem>>, vector<32x16xf32>
    tpu.vector_store %arg5[%c0_7, %c0_8], %8 {strides = array<i32>} : memref<32x16xf32, #tpu.memory_space<vmem>>, vector<32x16xf32>,
    return
  }
  func.func @transform_0(%arg0: i32) -> (i32, i32) {
    %c0_i32 = arith.constant 0 : i32
    %c0_i32_0 = arith.constant 0 : i32
    return %arg0, %c0_i32 : i32, i32
  }
  func.func @transform_1(%arg0: i32) -> (i32, i32) {
    %c0_i32 = arith.constant 0 : i32
    %c0_i32_0 = arith.constant 0 : i32
    %c0_i32_1 = arith.constant 0 : i32
    return %c0_i32, %c0_i32_0 : i32, i32
  }
  func.func @transform_2(%arg0: i32) -> (i32, i32) {
    %c0_i32 = arith.constant 0 : i32
    %c0_i32_0 = arith.constant 0 : i32
    %c0_i32_1 = arith.constant 0 : i32
    return %c0_i32, %c0_i32_0 : i32, i32
  }
  func.func @transform_3(%arg0: i32) -> (i32, i32) {
    %c0_i32 = arith.constant 0 : i32
    %c0_i32_0 = arith.constant 0 : i32
    %c0_i32_1 = arith.constant 0 : i32
    return %c0_i32, %c0_i32_0 : i32, i32
  }
  func.func @transform_4(%arg0: i32) -> (i32, i32) {
    %c0_i32 = arith.constant 0 : i32
    %c0_i32_0 = arith.constant 0 : i32
    return %arg0, %c0_i32 : i32, i32
  }
}

module attributes {stable_mosaic.version = 11 : i64} {
  func.func @_meta4d_kernel(%arg0: i32, %arg1: memref<1x26x16xf32, #tpu.memory_space<vmem>>, %arg2: memref<16x1xf32, #tpu.memory_space<vmem>>, %arg3: memref<16x1xf32, #tpu.memory_space<vmem>>, %arg4: memref<16x1xf32, #tpu.memory_space<vmem>>, %arg5: memref<1x16xf32, #tpu.memory_space<vmem>>, %arg6: memref<16x64xf32, #tpu.memory_space<vmem>>, %arg7: memref<1x64xf32, #tpu.memory_space<vmem>>, %arg8: memref<1x64xf32, #tpu.memory_space<vmem>>, %arg9: memref<64x16xf32, #tpu.memory_space<vmem>>, %arg10: memref<1x16xf32, #tpu.memory_space<vmem>>, %arg11: memref<1x16xf32, #tpu.memory_space<vmem>>, %arg12: memref<1x16xf32, #tpu.memory_space<vmem>>, %arg13: memref<1x26x16xf32, #tpu.memory_space<vmem>>) attributes {dimension_semantics = [#tpu.dimension_semantics<parallel>], iteration_bounds = array<i64: 2>, scalar_prefetch = 0 : i64, scratch_operands = 0 : i64, tpu.core_type = #tpu.core_type<tc>, window_params = [{transform_indices = @transform_0, window_bounds = array<i64: 1, 26, 16>}, {pipeline_mode = #tpu.pipeline_mode<synchronous>, transform_indices = @transform_1, window_bounds = array<i64: 16, 1>}, {pipeline_mode = #tpu.pipeline_mode<synchronous>, transform_indices = @transform_2, window_bounds = array<i64: 16, 1>}, {pipeline_mode = #tpu.pipeline_mode<synchronous>, transform_indices = @transform_3, window_bounds = array<i64: 16, 1>}, {pipeline_mode = #tpu.pipeline_mode<synchronous>, transform_indices = @transform_4, window_bounds = array<i64: 1, 16>}, {pipeline_mode = #tpu.pipeline_mode<synchronous>, transform_indices = @transform_5, window_bounds = array<i64: 16, 64>}, {pipeline_mode = #tpu.pipeline_mode<synchronous>, transform_indices = @transform_6, window_bounds = array<i64: 1, 64>}, {pipeline_mode = #tpu.pipeline_mode<synchronous>, transform_indices = @transform_7, window_bounds = array<i64: 1, 64>}, {pipeline_mode = #tpu.pipeline_mode<synchronous>, transform_indices = @transform_8, window_bounds = array<i64: 64, 16>}, {pipeline_mode = #tpu.pipeline_mode<synchronous>, transform_indices = @transform_9, window_bounds = array<i64: 1, 16>}, {pipeline_mode = #tpu.pipeline_mode<synchronous>, transform_indices = @transform_10, window_bounds = array<i64: 1, 16>}, {pipeline_mode = #tpu.pipeline_mode<synchronous>, transform_indices = @transform_11, window_bounds = array<i64: 1, 16>}, {transform_indices = @transform_12, window_bounds = array<i64: 1, 26, 16>}]} {
    %c0 = arith.constant 0 : index
    %c5 = arith.constant 5 : index
    %c0_0 = arith.constant 0 : index
    %0 = vector.load %arg1[%c0, %c5, %c0_0] : memref<1x26x16xf32, #tpu.memory_space<vmem>>, vector<1x16x16xf32>
    %1 = vector.shape_cast %0 : vector<1x16x16xf32> to vector<16x16xf32>
    %c0_1 = arith.constant 0 : index
    %c0_2 = arith.constant 0 : index
    %c0_3 = arith.constant 0 : index
    %2 = vector.load %arg1[%c0_1, %c0_2, %c0_3] : memref<1x26x16xf32, #tpu.memory_space<vmem>>, vector<1x16x16xf32>
    %3 = vector.shape_cast %2 : vector<1x16x16xf32> to vector<16x16xf32>
    %c0_4 = arith.constant 0 : index
    %c4 = arith.constant 4 : index
    %c0_5 = arith.constant 0 : index
    %4 = vector.load %arg1[%c0_4, %c4, %c0_5] : memref<1x26x16xf32, #tpu.memory_space<vmem>>, vector<1x16x16xf32>
    %5 = vector.shape_cast %4 : vector<1x16x16xf32> to vector<16x16xf32>
    %6 = arith.addf %3, %5 : vector<16x16xf32>
    %c0_6 = arith.constant 0 : index
    %c8 = arith.constant 8 : index
    %c0_7 = arith.constant 0 : index
    %7 = vector.load %arg1[%c0_6, %c8, %c0_7] : memref<1x26x16xf32, #tpu.memory_space<vmem>>, vector<1x16x16xf32>
    %8 = vector.shape_cast %7 : vector<1x16x16xf32> to vector<16x16xf32>
    %9 = arith.addf %6, %8 : vector<16x16xf32>
    %c0_8 = arith.constant 0 : index
    %c1 = arith.constant 1 : index
    %c0_9 = arith.constant 0 : index
    %10 = vector.load %arg1[%c0_8, %c1, %c0_9] : memref<1x26x16xf32, #tpu.memory_space<vmem>>, vector<1x16x16xf32>
    %11 = vector.shape_cast %10 : vector<1x16x16xf32> to vector<16x16xf32>
    %12 = arith.addf %11, %1 : vector<16x16xf32>
    %c0_10 = arith.constant 0 : index
    %c9 = arith.constant 9 : index
    %c0_11 = arith.constant 0 : index
    %13 = vector.load %arg1[%c0_10, %c9, %c0_11] : memref<1x26x16xf32, #tpu.memory_space<vmem>>, vector<1x16x16xf32>
    %14 = vector.shape_cast %13 : vector<1x16x16xf32> to vector<16x16xf32>
    %15 = arith.addf %12, %14 : vector<16x16xf32>
    %c0_12 = arith.constant 0 : index
    %c2 = arith.constant 2 : index
    %c0_13 = arith.constant 0 : index
    %16 = vector.load %arg1[%c0_12, %c2, %c0_13] : memref<1x26x16xf32, #tpu.memory_space<vmem>>, vector<1x16x16xf32>
    %17 = vector.shape_cast %16 : vector<1x16x16xf32> to vector<16x16xf32>
    %c0_14 = arith.constant 0 : index
    %c6 = arith.constant 6 : index
    %c0_15 = arith.constant 0 : index
    %18 = vector.load %arg1[%c0_14, %c6, %c0_15] : memref<1x26x16xf32, #tpu.memory_space<vmem>>, vector<1x16x16xf32>
    %19 = vector.shape_cast %18 : vector<1x16x16xf32> to vector<16x16xf32>
    %20 = arith.addf %17, %19 : vector<16x16xf32>
    %c0_16 = arith.constant 0 : index
    %c10 = arith.constant 10 : index
    %c0_17 = arith.constant 0 : index
    %21 = vector.load %arg1[%c0_16, %c10, %c0_17] : memref<1x26x16xf32, #tpu.memory_space<vmem>>, vector<1x16x16xf32>
    %22 = vector.shape_cast %21 : vector<1x16x16xf32> to vector<16x16xf32>
    %23 = arith.addf %20, %22 : vector<16x16xf32>
    %c0_18 = arith.constant 0 : index
    %c0_19 = arith.constant 0 : index
    %24 = vector.load %arg3[%c0_18, %c0_19] : memref<16x1xf32, #tpu.memory_space<vmem>>, vector<16x1xf32>
    %25 = vector.broadcast %24 : vector<16x1xf32> to vector<16x16xf32>
    %26 = arith.mulf %25, %9 : vector<16x16xf32>
    %27 = arith.addf %15, %26 : vector<16x16xf32>
    %c0_20 = arith.constant 0 : index
    %c0_21 = arith.constant 0 : index
    %28 = vector.load %arg4[%c0_20, %c0_21] : memref<16x1xf32, #tpu.memory_space<vmem>>, vector<16x1xf32>
    %29 = vector.broadcast %28 : vector<16x1xf32> to vector<16x16xf32>
    %30 = arith.mulf %29, %23 : vector<16x16xf32>
    %31 = arith.addf %27, %30 : vector<16x16xf32>
    %c0_22 = arith.constant 0 : index
    %c0_23 = arith.constant 0 : index
    %32 = vector.load %arg2[%c0_22, %c0_23] : memref<16x1xf32, #tpu.memory_space<vmem>>, vector<16x1xf32>
    %33 = vector.broadcast %32 : vector<16x1xf32> to vector<16x16xf32>
    %34 = arith.mulf %31, %33 : vector<16x16xf32>
    %c0_24 = arith.constant 0 : index
    %c0_25 = arith.constant 0 : index
    %35 = vector.load %arg5[%c0_24, %c0_25] : memref<1x16xf32, #tpu.memory_space<vmem>>, vector<1x16xf32>
    %36 = arith.subf %34, %1 : vector<16x16xf32>
    %37 = vector.broadcast %35 : vector<1x16xf32> to vector<16x16xf32>
    %38 = arith.mulf %37, %36 : vector<16x16xf32>
    %39 = arith.addf %1, %38 : vector<16x16xf32>
    %c0_26 = arith.constant 0 : index
    %c0_27 = arith.constant 0 : index
    %40 = vector.load %arg6[%c0_26, %c0_27] : memref<16x64xf32, #tpu.memory_space<vmem>>, vector<16x64xf32>
    %cst = arith.constant dense<0.000000e+00> : vector<16x64xf32>
    %41 = tpu.matmul %39, %40, %cst {dimension_numbers = #tpu.dot_dimension_numbers<[1], [0], [0], [1], [0, 0, 1, 1], [], []>} : vector<16x16xf32>, vector<16x64xf32>, vector<16x64xf32> -> vector<16x64xf32>
    %c0_28 = arith.constant 0 : index
    %c0_29 = arith.constant 0 : index
    %42 = vector.load %arg7[%c0_28, %c0_29] : memref<1x64xf32, #tpu.memory_space<vmem>>, vector<1x64xf32>
    %43 = vector.broadcast %42 : vector<1x64xf32> to vector<16x64xf32>
    %44 = arith.mulf %41, %43 : vector<16x64xf32>
    %c0_30 = arith.constant 0 : index
    %c0_31 = arith.constant 0 : index
    %45 = vector.load %arg8[%c0_30, %c0_31] : memref<1x64xf32, #tpu.memory_space<vmem>>, vector<1x64xf32>
    %46 = vector.broadcast %45 : vector<1x64xf32> to vector<16x64xf32>
    %47 = arith.addf %44, %46 : vector<16x64xf32>
    %cst_32 = arith.constant 5.000000e-01 : f32
    %48 = vector.broadcast %cst_32 : f32 to vector<16x64xf32>
    %49 = arith.mulf %48, %47 : vector<16x64xf32>
    %cst_33 = arith.constant 0.707106769 : f32
    %50 = vector.broadcast %cst_33 : f32 to vector<16x64xf32>
    %51 = arith.mulf %47, %50 : vector<16x64xf32>
    %52 = math.erf %51 : vector<16x64xf32>
    %cst_34 = arith.constant 1.000000e+00 : f32
    %53 = vector.broadcast %cst_34 : f32 to vector<16x64xf32>
    %54 = arith.addf %53, %52 : vector<16x64xf32>
    %55 = arith.mulf %49, %54 : vector<16x64xf32>
    %c0_35 = arith.constant 0 : index
    %c0_36 = arith.constant 0 : index
    %56 = vector.load %arg9[%c0_35, %c0_36] : memref<64x16xf32, #tpu.memory_space<vmem>>, vector<64x16xf32>
    %cst_37 = arith.constant dense<0.000000e+00> : vector<16x16xf32>
    %57 = tpu.matmul %55, %56, %cst_37 {dimension_numbers = #tpu.dot_dimension_numbers<[1], [0], [0], [1], [0, 0, 1, 1], [], []>} : vector<16x64xf32>, vector<64x16xf32>, vector<16x16xf32> -> vector<16x16xf32>
    %c0_38 = arith.constant 0 : index
    %c0_39 = arith.constant 0 : index
    %58 = vector.load %arg10[%c0_38, %c0_39] : memref<1x16xf32, #tpu.memory_space<vmem>>, vector<1x16xf32>
    %59 = vector.broadcast %58 : vector<1x16xf32> to vector<16x16xf32>
    %60 = arith.mulf %57, %59 : vector<16x16xf32>
    %c0_40 = arith.constant 0 : index
    %c0_41 = arith.constant 0 : index
    %61 = vector.load %arg11[%c0_40, %c0_41] : memref<1x16xf32, #tpu.memory_space<vmem>>, vector<1x16xf32>
    %62 = vector.broadcast %61 : vector<1x16xf32> to vector<16x16xf32>
    %63 = arith.addf %60, %62 : vector<16x16xf32>
    %c0_42 = arith.constant 0 : index
    %c0_43 = arith.constant 0 : index
    %64 = vector.load %arg12[%c0_42, %c0_43] : memref<1x16xf32, #tpu.memory_space<vmem>>, vector<1x16xf32>
    %65 = vector.broadcast %64 : vector<1x16xf32> to vector<16x16xf32>
    %66 = arith.mulf %65, %63 : vector<16x16xf32>
    %67 = arith.addf %39, %66 : vector<16x16xf32>
    %cst_44 = arith.constant 0.000000e+00 : f32
    %68 = vector.broadcast %cst_44 : f32 to vector<5x16xf32>
    %c0_45 = arith.constant 0 : index
    %c0_46 = arith.constant 0 : index
    %c0_47 = arith.constant 0 : index
    %69 = vector.load %arg13[%c0_45, %c0_46, %c0_47] : memref<1x26x16xf32, #tpu.memory_space<vmem>>, vector<1x5x16xf32>
    %70 = vector.shape_cast %69 : vector<1x5x16xf32> to vector<5x16xf32>
    %71 = vector.shape_cast %68 : vector<5x16xf32> to vector<1x5x16xf32>
    tpu.vector_store %arg13[%c0_45, %c0_46, %c0_47], %71 {strides = array<i32>} : memref<1x26x16xf32, #tpu.memory_space<vmem>>, vector<1x5x16xf32>,
    %c0_48 = arith.constant 0 : index
    %c5_49 = arith.constant 5 : index
    %c0_50 = arith.constant 0 : index
    %72 = vector.load %arg13[%c0_48, %c5_49, %c0_50] : memref<1x26x16xf32, #tpu.memory_space<vmem>>, vector<1x16x16xf32>
    %73 = vector.shape_cast %72 : vector<1x16x16xf32> to vector<16x16xf32>
    %74 = vector.shape_cast %67 : vector<16x16xf32> to vector<1x16x16xf32>
    tpu.vector_store %arg13[%c0_48, %c5_49, %c0_50], %74 {strides = array<i32>} : memref<1x26x16xf32, #tpu.memory_space<vmem>>, vector<1x16x16xf32>,
    %cst_51 = arith.constant 0.000000e+00 : f32
    %75 = vector.broadcast %cst_51 : f32 to vector<5x16xf32>
    %c0_52 = arith.constant 0 : index
    %c21 = arith.constant 21 : index
    %c0_53 = arith.constant 0 : index
    %76 = vector.load %arg13[%c0_52, %c21, %c0_53] : memref<1x26x16xf32, #tpu.memory_space<vmem>>, vector<1x5x16xf32>
    %77 = vector.shape_cast %76 : vector<1x5x16xf32> to vector<5x16xf32>
    %78 = vector.shape_cast %75 : vector<5x16xf32> to vector<1x5x16xf32>
    tpu.vector_store %arg13[%c0_52, %c21, %c0_53], %78 {strides = array<i32>} : memref<1x26x16xf32, #tpu.memory_space<vmem>>, vector<1x5x16xf32>,
    return
  }
  func.func @transform_0(%arg0: i32) -> (i32, i32, i32) {
    %c0_i32 = arith.constant 0 : i32
    %c0_i32_0 = arith.constant 0 : i32
    %c0_i32_1 = arith.constant 0 : i32
    return %arg0, %c0_i32, %c0_i32_0 : i32, i32, i32
  }
  func.func @transform_1(%arg0: i32) -> (i32, i32) {
    %c0_i32 = arith.constant 0 : i32
    %c0_i32_0 = arith.constant 0 : i32
    %c0_i32_1 = arith.constant 0 : i32
    return %c0_i32, %c0_i32_0 : i32, i32
  }
  func.func @transform_2(%arg0: i32) -> (i32, i32) {
    %c0_i32 = arith.constant 0 : i32
    %c0_i32_0 = arith.constant 0 : i32
    %c0_i32_1 = arith.constant 0 : i32
    return %c0_i32, %c0_i32_0 : i32, i32
  }
  func.func @transform_3(%arg0: i32) -> (i32, i32) {
    %c0_i32 = arith.constant 0 : i32
    %c0_i32_0 = arith.constant 0 : i32
    %c0_i32_1 = arith.constant 0 : i32
    return %c0_i32, %c0_i32_0 : i32, i32
  }
  func.func @transform_4(%arg0: i32) -> (i32, i32) {
    %c0_i32 = arith.constant 0 : i32
    %c0_i32_0 = arith.constant 0 : i32
    %c0_i32_1 = arith.constant 0 : i32
    return %c0_i32, %c0_i32_0 : i32, i32
  }
  func.func @transform_5(%arg0: i32) -> (i32, i32) {
    %c0_i32 = arith.constant 0 : i32
    %c0_i32_0 = arith.constant 0 : i32
    %c0_i32_1 = arith.constant 0 : i32
    return %c0_i32, %c0_i32_0 : i32, i32
  }
  func.func @transform_6(%arg0: i32) -> (i32, i32) {
    %c0_i32 = arith.constant 0 : i32
    %c0_i32_0 = arith.constant 0 : i32
    %c0_i32_1 = arith.constant 0 : i32
    return %c0_i32, %c0_i32_0 : i32, i32
  }
  func.func @transform_7(%arg0: i32) -> (i32, i32) {
    %c0_i32 = arith.constant 0 : i32
    %c0_i32_0 = arith.constant 0 : i32
    %c0_i32_1 = arith.constant 0 : i32
    return %c0_i32, %c0_i32_0 : i32, i32
  }
  func.func @transform_8(%arg0: i32) -> (i32, i32) {
    %c0_i32 = arith.constant 0 : i32
    %c0_i32_0 = arith.constant 0 : i32
    %c0_i32_1 = arith.constant 0 : i32
    return %c0_i32, %c0_i32_0 : i32, i32
  }
  func.func @transform_9(%arg0: i32) -> (i32, i32) {
    %c0_i32 = arith.constant 0 : i32
    %c0_i32_0 = arith.constant 0 : i32
    %c0_i32_1 = arith.constant 0 : i32
    return %c0_i32, %c0_i32_0 : i32, i32
  }
  func.func @transform_10(%arg0: i32) -> (i32, i32) {
    %c0_i32 = arith.constant 0 : i32
    %c0_i32_0 = arith.constant 0 : i32
    %c0_i32_1 = arith.constant 0 : i32
    return %c0_i32, %c0_i32_0 : i32, i32
  }
  func.func @transform_11(%arg0: i32) -> (i32, i32) {
    %c0_i32 = arith.constant 0 : i32
    %c0_i32_0 = arith.constant 0 : i32
    %c0_i32_1 = arith.constant 0 : i32
    return %c0_i32, %c0_i32_0 : i32, i32
  }
  func.func @transform_12(%arg0: i32) -> (i32, i32, i32) {
    %c0_i32 = arith.constant 0 : i32
    %c0_i32_0 = arith.constant 0 : i32
    %c0_i32_1 = arith.constant 0 : i32
    return %arg0, %c0_i32, %c0_i32_0 : i32, i32, i32
  }
}

module attributes {stable_mosaic.version = 11 : i64} {
  func.func @_conv_mm_kernel(%arg0: i32, %arg1: memref<8x144xf32, #tpu.memory_space<vmem>>, %arg2: memref<144x32xf32, #tpu.memory_space<vmem>>, %arg3: memref<1x32xf32, #tpu.memory_space<vmem>>, %arg4: memref<1x32xf32, #tpu.memory_space<vmem>>, %arg5: memref<8x32xf32, #tpu.memory_space<vmem>>) attributes {dimension_semantics = [#tpu.dimension_semantics<parallel>], iteration_bounds = array<i64: 1>, scalar_prefetch = 0 : i64, scratch_operands = 0 : i64, tpu.core_type = #tpu.core_type<tc>, window_params = [{transform_indices = @transform_0, window_bounds = array<i64: 8, 144>}, {pipeline_mode = #tpu.pipeline_mode<synchronous>, transform_indices = @transform_1, window_bounds = array<i64: 144, 32>}, {pipeline_mode = #tpu.pipeline_mode<synchronous>, transform_indices = @transform_2, window_bounds = array<i64: 1, 32>}, {pipeline_mode = #tpu.pipeline_mode<synchronous>, transform_indices = @transform_3, window_bounds = array<i64: 1, 32>}, {transform_indices = @transform_4, window_bounds = array<i64: 8, 32>}]} {
    %c0 = arith.constant 0 : index
    %c0_0 = arith.constant 0 : index
    %0 = vector.load %arg1[%c0, %c0_0] : memref<8x144xf32, #tpu.memory_space<vmem>>, vector<8x144xf32>
    %c0_1 = arith.constant 0 : index
    %c0_2 = arith.constant 0 : index
    %1 = vector.load %arg2[%c0_1, %c0_2] : memref<144x32xf32, #tpu.memory_space<vmem>>, vector<144x32xf32>
    %cst = arith.constant dense<0.000000e+00> : vector<8x32xf32>
    %2 = tpu.matmul %0, %1, %cst {dimension_numbers = #tpu.dot_dimension_numbers<[1], [0], [0], [1], [0, 0, 1, 1], [], []>} : vector<8x144xf32>, vector<144x32xf32>, vector<8x32xf32> -> vector<8x32xf32>
    %c0_3 = arith.constant 0 : index
    %c0_4 = arith.constant 0 : index
    %3 = vector.load %arg3[%c0_3, %c0_4] : memref<1x32xf32, #tpu.memory_space<vmem>>, vector<1x32xf32>
    %4 = vector.broadcast %3 : vector<1x32xf32> to vector<8x32xf32>
    %5 = arith.mulf %2, %4 : vector<8x32xf32>
    %c0_5 = arith.constant 0 : index
    %c0_6 = arith.constant 0 : index
    %6 = vector.load %arg4[%c0_5, %c0_6] : memref<1x32xf32, #tpu.memory_space<vmem>>, vector<1x32xf32>
    %7 = vector.broadcast %6 : vector<1x32xf32> to vector<8x32xf32>
    %8 = arith.addf %5, %7 : vector<8x32xf32>
    %c0_7 = arith.constant 0 : index
    %c0_8 = arith.constant 0 : index
    %9 = vector.load %arg5[%c0_7, %c0_8] : memref<8x32xf32, #tpu.memory_space<vmem>>, vector<8x32xf32>
    tpu.vector_store %arg5[%c0_7, %c0_8], %8 {strides = array<i32>} : memref<8x32xf32, #tpu.memory_space<vmem>>, vector<8x32xf32>,
    return
  }
  func.func @transform_0(%arg0: i32) -> (i32, i32) {
    %c0_i32 = arith.constant 0 : i32
    %c0_i32_0 = arith.constant 0 : i32
    return %arg0, %c0_i32 : i32, i32
  }
  func.func @transform_1(%arg0: i32) -> (i32, i32) {
    %c0_i32 = arith.constant 0 : i32
    %c0_i32_0 = arith.constant 0 : i32
    %c0_i32_1 = arith.constant 0 : i32
    return %c0_i32, %c0_i32_0 : i32, i32
  }
  func.func @transform_2(%arg0: i32) -> (i32, i32) {
    %c0_i32 = arith.constant 0 : i32
    %c0_i32_0 = arith.constant 0 : i32
    %c0_i32_1 = arith.constant 0 : i32
    return %c0_i32, %c0_i32_0 : i32, i32
  }
  func.func @transform_3(%arg0: i32) -> (i32, i32) {
    %c0_i32 = arith.constant 0 : i32
    %c0_i32_0 = arith.constant 0 : i32
    %c0_i32_1 = arith.constant 0 : i32
    return %c0_i32, %c0_i32_0 : i32, i32
  }
  func.func @transform_4(%arg0: i32) -> (i32, i32) {
    %c0_i32 = arith.constant 0 : i32
    %c0_i32_0 = arith.constant 0 : i32
    return %arg0, %c0_i32 : i32, i32
  }
}

module attributes {stable_mosaic.version = 11 : i64} {
  func.func @_meta4d_kernel(%arg0: i32, %arg1: memref<1x10x32xf32, #tpu.memory_space<vmem>>, %arg2: memref<4x1xf32, #tpu.memory_space<vmem>>, %arg3: memref<4x1xf32, #tpu.memory_space<vmem>>, %arg4: memref<4x1xf32, #tpu.memory_space<vmem>>, %arg5: memref<1x32xf32, #tpu.memory_space<vmem>>, %arg6: memref<32x128xf32, #tpu.memory_space<vmem>>, %arg7: memref<1x128xf32, #tpu.memory_space<vmem>>, %arg8: memref<1x128xf32, #tpu.memory_space<vmem>>, %arg9: memref<128x32xf32, #tpu.memory_space<vmem>>, %arg10: memref<1x32xf32, #tpu.memory_space<vmem>>, %arg11: memref<1x32xf32, #tpu.memory_space<vmem>>, %arg12: memref<1x32xf32, #tpu.memory_space<vmem>>, %arg13: memref<1x10x32xf32, #tpu.memory_space<vmem>>) attributes {dimension_semantics = [#tpu.dimension_semantics<parallel>], iteration_bounds = array<i64: 2>, scalar_prefetch = 0 : i64, scratch_operands = 0 : i64, tpu.core_type = #tpu.core_type<tc>, window_params = [{transform_indices = @transform_0, window_bounds = array<i64: 1, 10, 32>}, {pipeline_mode = #tpu.pipeline_mode<synchronous>, transform_indices = @transform_1, window_bounds = array<i64: 4, 1>}, {pipeline_mode = #tpu.pipeline_mode<synchronous>, transform_indices = @transform_2, window_bounds = array<i64: 4, 1>}, {pipeline_mode = #tpu.pipeline_mode<synchronous>, transform_indices = @transform_3, window_bounds = array<i64: 4, 1>}, {pipeline_mode = #tpu.pipeline_mode<synchronous>, transform_indices = @transform_4, window_bounds = array<i64: 1, 32>}, {pipeline_mode = #tpu.pipeline_mode<synchronous>, transform_indices = @transform_5, window_bounds = array<i64: 32, 128>}, {pipeline_mode = #tpu.pipeline_mode<synchronous>, transform_indices = @transform_6, window_bounds = array<i64: 1, 128>}, {pipeline_mode = #tpu.pipeline_mode<synchronous>, transform_indices = @transform_7, window_bounds = array<i64: 1, 128>}, {pipeline_mode = #tpu.pipeline_mode<synchronous>, transform_indices = @transform_8, window_bounds = array<i64: 128, 32>}, {pipeline_mode = #tpu.pipeline_mode<synchronous>, transform_indices = @transform_9, window_bounds = array<i64: 1, 32>}, {pipeline_mode = #tpu.pipeline_mode<synchronous>, transform_indices = @transform_10, window_bounds = array<i64: 1, 32>}, {pipeline_mode = #tpu.pipeline_mode<synchronous>, transform_indices = @transform_11, window_bounds = array<i64: 1, 32>}, {transform_indices = @transform_12, window_bounds = array<i64: 1, 10, 32>}]} {
    %c0 = arith.constant 0 : index
    %c3 = arith.constant 3 : index
    %c0_0 = arith.constant 0 : index
    %0 = vector.load %arg1[%c0, %c3, %c0_0] : memref<1x10x32xf32, #tpu.memory_space<vmem>>, vector<1x4x32xf32>
    %1 = vector.shape_cast %0 : vector<1x4x32xf32> to vector<4x32xf32>
    %c0_1 = arith.constant 0 : index
    %c0_2 = arith.constant 0 : index
    %c0_3 = arith.constant 0 : index
    %2 = vector.load %arg1[%c0_1, %c0_2, %c0_3] : memref<1x10x32xf32, #tpu.memory_space<vmem>>, vector<1x4x32xf32>
    %3 = vector.shape_cast %2 : vector<1x4x32xf32> to vector<4x32xf32>
    %c0_4 = arith.constant 0 : index
    %c2 = arith.constant 2 : index
    %c0_5 = arith.constant 0 : index
    %4 = vector.load %arg1[%c0_4, %c2, %c0_5] : memref<1x10x32xf32, #tpu.memory_space<vmem>>, vector<1x4x32xf32>
    %5 = vector.shape_cast %4 : vector<1x4x32xf32> to vector<4x32xf32>
    %6 = arith.addf %3, %5 : vector<4x32xf32>
    %c0_6 = arith.constant 0 : index
    %c4 = arith.constant 4 : index
    %c0_7 = arith.constant 0 : index
    %7 = vector.load %arg1[%c0_6, %c4, %c0_7] : memref<1x10x32xf32, #tpu.memory_space<vmem>>, vector<1x4x32xf32>
    %8 = vector.shape_cast %7 : vector<1x4x32xf32> to vector<4x32xf32>
    %9 = arith.addf %6, %8 : vector<4x32xf32>
    %c0_8 = arith.constant 0 : index
    %c1 = arith.constant 1 : index
    %c0_9 = arith.constant 0 : index
    %10 = vector.load %arg1[%c0_8, %c1, %c0_9] : memref<1x10x32xf32, #tpu.memory_space<vmem>>, vector<1x4x32xf32>
    %11 = vector.shape_cast %10 : vector<1x4x32xf32> to vector<4x32xf32>
    %12 = arith.addf %11, %1 : vector<4x32xf32>
    %c0_10 = arith.constant 0 : index
    %c5 = arith.constant 5 : index
    %c0_11 = arith.constant 0 : index
    %13 = vector.load %arg1[%c0_10, %c5, %c0_11] : memref<1x10x32xf32, #tpu.memory_space<vmem>>, vector<1x4x32xf32>
    %14 = vector.shape_cast %13 : vector<1x4x32xf32> to vector<4x32xf32>
    %15 = arith.addf %12, %14 : vector<4x32xf32>
    %c0_12 = arith.constant 0 : index
    %c2_13 = arith.constant 2 : index
    %c0_14 = arith.constant 0 : index
    %16 = vector.load %arg1[%c0_12, %c2_13, %c0_14] : memref<1x10x32xf32, #tpu.memory_space<vmem>>, vector<1x4x32xf32>
    %17 = vector.shape_cast %16 : vector<1x4x32xf32> to vector<4x32xf32>
    %c0_15 = arith.constant 0 : index
    %c4_16 = arith.constant 4 : index
    %c0_17 = arith.constant 0 : index
    %18 = vector.load %arg1[%c0_15, %c4_16, %c0_17] : memref<1x10x32xf32, #tpu.memory_space<vmem>>, vector<1x4x32xf32>
    %19 = vector.shape_cast %18 : vector<1x4x32xf32> to vector<4x32xf32>
    %20 = arith.addf %17, %19 : vector<4x32xf32>
    %c0_18 = arith.constant 0 : index
    %c6 = arith.constant 6 : index
    %c0_19 = arith.constant 0 : index
    %21 = vector.load %arg1[%c0_18, %c6, %c0_19] : memref<1x10x32xf32, #tpu.memory_space<vmem>>, vector<1x4x32xf32>
    %22 = vector.shape_cast %21 : vector<1x4x32xf32> to vector<4x32xf32>
    %23 = arith.addf %20, %22 : vector<4x32xf32>
    %c0_20 = arith.constant 0 : index
    %c0_21 = arith.constant 0 : index
    %24 = vector.load %arg3[%c0_20, %c0_21] : memref<4x1xf32, #tpu.memory_space<vmem>>, vector<4x1xf32>
    %25 = vector.broadcast %24 : vector<4x1xf32> to vector<4x32xf32>
    %26 = arith.mulf %25, %9 : vector<4x32xf32>
    %27 = arith.addf %15, %26 : vector<4x32xf32>
    %c0_22 = arith.constant 0 : index
    %c0_23 = arith.constant 0 : index
    %28 = vector.load %arg4[%c0_22, %c0_23] : memref<4x1xf32, #tpu.memory_space<vmem>>, vector<4x1xf32>
    %29 = vector.broadcast %28 : vector<4x1xf32> to vector<4x32xf32>
    %30 = arith.mulf %29, %23 : vector<4x32xf32>
    %31 = arith.addf %27, %30 : vector<4x32xf32>
    %c0_24 = arith.constant 0 : index
    %c0_25 = arith.constant 0 : index
    %32 = vector.load %arg2[%c0_24, %c0_25] : memref<4x1xf32, #tpu.memory_space<vmem>>, vector<4x1xf32>
    %33 = vector.broadcast %32 : vector<4x1xf32> to vector<4x32xf32>
    %34 = arith.mulf %31, %33 : vector<4x32xf32>
    %c0_26 = arith.constant 0 : index
    %c0_27 = arith.constant 0 : index
    %35 = vector.load %arg5[%c0_26, %c0_27] : memref<1x32xf32, #tpu.memory_space<vmem>>, vector<1x32xf32>
    %36 = arith.subf %34, %1 : vector<4x32xf32>
    %37 = vector.broadcast %35 : vector<1x32xf32> to vector<4x32xf32>
    %38 = arith.mulf %37, %36 : vector<4x32xf32>
    %39 = arith.addf %1, %38 : vector<4x32xf32>
    %c0_28 = arith.constant 0 : index
    %c0_29 = arith.constant 0 : index
    %40 = vector.load %arg6[%c0_28, %c0_29] : memref<32x128xf32, #tpu.memory_space<vmem>>, vector<32x128xf32>
    %cst = arith.constant dense<0.000000e+00> : vector<4x128xf32>
    %41 = tpu.matmul %39, %40, %cst {dimension_numbers = #tpu.dot_dimension_numbers<[1], [0], [0], [1], [0, 0, 1, 1], [], []>} : vector<4x32xf32>, vector<32x128xf32>, vector<4x128xf32> -> vector<4x128xf32>
    %c0_30 = arith.constant 0 : index
    %c0_31 = arith.constant 0 : index
    %42 = vector.load %arg7[%c0_30, %c0_31] : memref<1x128xf32, #tpu.memory_space<vmem>>, vector<1x128xf32>
    %43 = vector.broadcast %42 : vector<1x128xf32> to vector<4x128xf32>
    %44 = arith.mulf %41, %43 : vector<4x128xf32>
    %c0_32 = arith.constant 0 : index
    %c0_33 = arith.constant 0 : index
    %45 = vector.load %arg8[%c0_32, %c0_33] : memref<1x128xf32, #tpu.memory_space<vmem>>, vector<1x128xf32>
    %46 = vector.broadcast %45 : vector<1x128xf32> to vector<4x128xf32>
    %47 = arith.addf %44, %46 : vector<4x128xf32>
    %cst_34 = arith.constant 5.000000e-01 : f32
    %48 = vector.broadcast %cst_34 : f32 to vector<4x128xf32>
    %49 = arith.mulf %48, %47 : vector<4x128xf32>
    %cst_35 = arith.constant 0.707106769 : f32
    %50 = vector.broadcast %cst_35 : f32 to vector<4x128xf32>
    %51 = arith.mulf %47, %50 : vector<4x128xf32>
    %52 = math.erf %51 : vector<4x128xf32>
    %cst_36 = arith.constant 1.000000e+00 : f32
    %53 = vector.broadcast %cst_36 : f32 to vector<4x128xf32>
    %54 = arith.addf %53, %52 : vector<4x128xf32>
    %55 = arith.mulf %49, %54 : vector<4x128xf32>
    %c0_37 = arith.constant 0 : index
    %c0_38 = arith.constant 0 : index
    %56 = vector.load %arg9[%c0_37, %c0_38] : memref<128x32xf32, #tpu.memory_space<vmem>>, vector<128x32xf32>
    %cst_39 = arith.constant dense<0.000000e+00> : vector<4x32xf32>
    %57 = tpu.matmul %55, %56, %cst_39 {dimension_numbers = #tpu.dot_dimension_numbers<[1], [0], [0], [1], [0, 0, 1, 1], [], []>} : vector<4x128xf32>, vector<128x32xf32>, vector<4x32xf32> -> vector<4x32xf32>
    %c0_40 = arith.constant 0 : index
    %c0_41 = arith.constant 0 : index
    %58 = vector.load %arg10[%c0_40, %c0_41] : memref<1x32xf32, #tpu.memory_space<vmem>>, vector<1x32xf32>
    %59 = vector.broadcast %58 : vector<1x32xf32> to vector<4x32xf32>
    %60 = arith.mulf %57, %59 : vector<4x32xf32>
    %c0_42 = arith.constant 0 : index
    %c0_43 = arith.constant 0 : index
    %61 = vector.load %arg11[%c0_42, %c0_43] : memref<1x32xf32, #tpu.memory_space<vmem>>, vector<1x32xf32>
    %62 = vector.broadcast %61 : vector<1x32xf32> to vector<4x32xf32>
    %63 = arith.addf %60, %62 : vector<4x32xf32>
    %c0_44 = arith.constant 0 : index
    %c0_45 = arith.constant 0 : index
    %64 = vector.load %arg12[%c0_44, %c0_45] : memref<1x32xf32, #tpu.memory_space<vmem>>, vector<1x32xf32>
    %65 = vector.broadcast %64 : vector<1x32xf32> to vector<4x32xf32>
    %66 = arith.mulf %65, %63 : vector<4x32xf32>
    %67 = arith.addf %39, %66 : vector<4x32xf32>
    %cst_46 = arith.constant 0.000000e+00 : f32
    %68 = vector.broadcast %cst_46 : f32 to vector<3x32xf32>
    %c0_47 = arith.constant 0 : index
    %c0_48 = arith.constant 0 : index
    %c0_49 = arith.constant 0 : index
    %69 = vector.load %arg13[%c0_47, %c0_48, %c0_49] : memref<1x10x32xf32, #tpu.memory_space<vmem>>, vector<1x3x32xf32>
    %70 = vector.shape_cast %69 : vector<1x3x32xf32> to vector<3x32xf32>
    %71 = vector.shape_cast %68 : vector<3x32xf32> to vector<1x3x32xf32>
    tpu.vector_store %arg13[%c0_47, %c0_48, %c0_49], %71 {strides = array<i32>} : memref<1x10x32xf32, #tpu.memory_space<vmem>>, vector<1x3x32xf32>,
    %c0_50 = arith.constant 0 : index
    %c3_51 = arith.constant 3 : index
    %c0_52 = arith.constant 0 : index
    %72 = vector.load %arg13[%c0_50, %c3_51, %c0_52] : memref<1x10x32xf32, #tpu.memory_space<vmem>>, vector<1x4x32xf32>
    %73 = vector.shape_cast %72 : vector<1x4x32xf32> to vector<4x32xf32>
    %74 = vector.shape_cast %67 : vector<4x32xf32> to vector<1x4x32xf32>
    tpu.vector_store %arg13[%c0_50, %c3_51, %c0_52], %74 {strides = array<i32>} : memref<1x10x32xf32, #tpu.memory_space<vmem>>, vector<1x4x32xf32>,
    %cst_53 = arith.constant 0.000000e+00 : f32
    %75 = vector.broadcast %cst_53 : f32 to vector<3x32xf32>
    %c0_54 = arith.constant 0 : index
    %c7 = arith.constant 7 : index
    %c0_55 = arith.constant 0 : index
    %76 = vector.load %arg13[%c0_54, %c7, %c0_55] : memref<1x10x32xf32, #tpu.memory_space<vmem>>, vector<1x3x32xf32>
    %77 = vector.shape_cast %76 : vector<1x3x32xf32> to vector<3x32xf32>
    %78 = vector.shape_cast %75 : vector<3x32xf32> to vector<1x3x32xf32>
    tpu.vector_store %arg13[%c0_54, %c7, %c0_55], %78 {strides = array<i32>} : memref<1x10x32xf32, #tpu.memory_space<vmem>>, vector<1x3x32xf32>,
    return
  }
  func.func @transform_0(%arg0: i32) -> (i32, i32, i32) {
    %c0_i32 = arith.constant 0 : i32
    %c0_i32_0 = arith.constant 0 : i32
    %c0_i32_1 = arith.constant 0 : i32
    return %arg0, %c0_i32, %c0_i32_0 : i32, i32, i32
  }
  func.func @transform_1(%arg0: i32) -> (i32, i32) {
    %c0_i32 = arith.constant 0 : i32
    %c0_i32_0 = arith.constant 0 : i32
    %c0_i32_1 = arith.constant 0 : i32
    return %c0_i32, %c0_i32_0 : i32, i32
  }
  func.func @transform_2(%arg0: i32) -> (i32, i32) {
    %c0_i32 = arith.constant 0 : i32
    %c0_i32_0 = arith.constant 0 : i32
    %c0_i32_1 = arith.constant 0 : i32
    return %c0_i32, %c0_i32_0 : i32, i32
  }
  func.func @transform_3(%arg0: i32) -> (i32, i32) {
    %c0_i32 = arith.constant 0 : i32
    %c0_i32_0 = arith.constant 0 : i32
    %c0_i32_1 = arith.constant 0 : i32
    return %c0_i32, %c0_i32_0 : i32, i32
  }
  func.func @transform_4(%arg0: i32) -> (i32, i32) {
    %c0_i32 = arith.constant 0 : i32
    %c0_i32_0 = arith.constant 0 : i32
    %c0_i32_1 = arith.constant 0 : i32
    return %c0_i32, %c0_i32_0 : i32, i32
  }
  func.func @transform_5(%arg0: i32) -> (i32, i32) {
    %c0_i32 = arith.constant 0 : i32
    %c0_i32_0 = arith.constant 0 : i32
    %c0_i32_1 = arith.constant 0 : i32
    return %c0_i32, %c0_i32_0 : i32, i32
  }
  func.func @transform_6(%arg0: i32) -> (i32, i32) {
    %c0_i32 = arith.constant 0 : i32
    %c0_i32_0 = arith.constant 0 : i32
    %c0_i32_1 = arith.constant 0 : i32
    return %c0_i32, %c0_i32_0 : i32, i32
  }
  func.func @transform_7(%arg0: i32) -> (i32, i32) {
    %c0_i32 = arith.constant 0 : i32
    %c0_i32_0 = arith.constant 0 : i32
    %c0_i32_1 = arith.constant 0 : i32
    return %c0_i32, %c0_i32_0 : i32, i32
  }
  func.func @transform_8(%arg0: i32) -> (i32, i32) {
    %c0_i32 = arith.constant 0 : i32
    %c0_i32_0 = arith.constant 0 : i32
    %c0_i32_1 = arith.constant 0 : i32
    return %c0_i32, %c0_i32_0 : i32, i32
  }
  func.func @transform_9(%arg0: i32) -> (i32, i32) {
    %c0_i32 = arith.constant 0 : i32
    %c0_i32_0 = arith.constant 0 : i32
    %c0_i32_1 = arith.constant 0 : i32
    return %c0_i32, %c0_i32_0 : i32, i32
  }
  func.func @transform_10(%arg0: i32) -> (i32, i32) {
    %c0_i32 = arith.constant 0 : i32
    %c0_i32_0 = arith.constant 0 : i32
    %c0_i32_1 = arith.constant 0 : i32
    return %c0_i32, %c0_i32_0 : i32, i32
  }
  func.func @transform_11(%arg0: i32) -> (i32, i32) {
    %c0_i32 = arith.constant 0 : i32
    %c0_i32_0 = arith.constant 0 : i32
    %c0_i32_1 = arith.constant 0 : i32
    return %c0_i32, %c0_i32_0 : i32, i32
  }
  func.func @transform_12(%arg0: i32) -> (i32, i32, i32) {
    %c0_i32 = arith.constant 0 : i32
    %c0_i32_0 = arith.constant 0 : i32
    %c0_i32_1 = arith.constant 0 : i32
    return %arg0, %c0_i32, %c0_i32_0 : i32, i32, i32
  }
}

module attributes {stable_mosaic.version = 11 : i64} {
  func.func @_conv_mm_kernel(%arg0: i32, %arg1: memref<8x288xf32, #tpu.memory_space<vmem>>, %arg2: memref<288x64xf32, #tpu.memory_space<vmem>>, %arg3: memref<1x64xf32, #tpu.memory_space<vmem>>, %arg4: memref<1x64xf32, #tpu.memory_space<vmem>>, %arg5: memref<8x64xf32, #tpu.memory_space<vmem>>) attributes {dimension_semantics = [#tpu.dimension_semantics<parallel>], iteration_bounds = array<i64: 1>, scalar_prefetch = 0 : i64, scratch_operands = 0 : i64, tpu.core_type = #tpu.core_type<tc>, window_params = [{transform_indices = @transform_0, window_bounds = array<i64: 8, 288>}, {pipeline_mode = #tpu.pipeline_mode<synchronous>, transform_indices = @transform_1, window_bounds = array<i64: 288, 64>}, {pipeline_mode = #tpu.pipeline_mode<synchronous>, transform_indices = @transform_2, window_bounds = array<i64: 1, 64>}, {pipeline_mode = #tpu.pipeline_mode<synchronous>, transform_indices = @transform_3, window_bounds = array<i64: 1, 64>}, {transform_indices = @transform_4, window_bounds = array<i64: 8, 64>}]} {
    %c0 = arith.constant 0 : index
    %c0_0 = arith.constant 0 : index
    %0 = vector.load %arg1[%c0, %c0_0] : memref<8x288xf32, #tpu.memory_space<vmem>>, vector<8x288xf32>
    %c0_1 = arith.constant 0 : index
    %c0_2 = arith.constant 0 : index
    %1 = vector.load %arg2[%c0_1, %c0_2] : memref<288x64xf32, #tpu.memory_space<vmem>>, vector<288x64xf32>
    %cst = arith.constant dense<0.000000e+00> : vector<8x64xf32>
    %2 = tpu.matmul %0, %1, %cst {dimension_numbers = #tpu.dot_dimension_numbers<[1], [0], [0], [1], [0, 0, 1, 1], [], []>} : vector<8x288xf32>, vector<288x64xf32>, vector<8x64xf32> -> vector<8x64xf32>
    %c0_3 = arith.constant 0 : index
    %c0_4 = arith.constant 0 : index
    %3 = vector.load %arg3[%c0_3, %c0_4] : memref<1x64xf32, #tpu.memory_space<vmem>>, vector<1x64xf32>
    %4 = vector.broadcast %3 : vector<1x64xf32> to vector<8x64xf32>
    %5 = arith.mulf %2, %4 : vector<8x64xf32>
    %c0_5 = arith.constant 0 : index
    %c0_6 = arith.constant 0 : index
    %6 = vector.load %arg4[%c0_5, %c0_6] : memref<1x64xf32, #tpu.memory_space<vmem>>, vector<1x64xf32>
    %7 = vector.broadcast %6 : vector<1x64xf32> to vector<8x64xf32>
    %8 = arith.addf %5, %7 : vector<8x64xf32>
    %c0_7 = arith.constant 0 : index
    %c0_8 = arith.constant 0 : index
    %9 = vector.load %arg5[%c0_7, %c0_8] : memref<8x64xf32, #tpu.memory_space<vmem>>, vector<8x64xf32>
    tpu.vector_store %arg5[%c0_7, %c0_8], %8 {strides = array<i32>} : memref<8x64xf32, #tpu.memory_space<vmem>>, vector<8x64xf32>,
    return
  }
  func.func @transform_0(%arg0: i32) -> (i32, i32) {
    %c0_i32 = arith.constant 0 : i32
    %c0_i32_0 = arith.constant 0 : i32
    return %arg0, %c0_i32 : i32, i32
  }
  func.func @transform_1(%arg0: i32) -> (i32, i32) {
    %c0_i32 = arith.constant 0 : i32
    %c0_i32_0 = arith.constant 0 : i32
    %c0_i32_1 = arith.constant 0 : i32
    return %c0_i32, %c0_i32_0 : i32, i32
  }
  func.func @transform_2(%arg0: i32) -> (i32, i32) {
    %c0_i32 = arith.constant 0 : i32
    %c0_i32_0 = arith.constant 0 : i32
    %c0_i32_1 = arith.constant 0 : i32
    return %c0_i32, %c0_i32_0 : i32, i32
  }
  func.func @transform_3(%arg0: i32) -> (i32, i32) {
    %c0_i32 = arith.constant 0 : i32
    %c0_i32_0 = arith.constant 0 : i32
    %c0_i32_1 = arith.constant 0 : i32
    return %c0_i32, %c0_i32_0 : i32, i32
  }
  func.func @transform_4(%arg0: i32) -> (i32, i32) {
    %c0_i32 = arith.constant 0 : i32
    %c0_i32_0 = arith.constant 0 : i32
    return %arg0, %c0_i32 : i32, i32
  }
}

</mosaic_0001>

<bundles_post_ra>
// kernel: efficientformer_forward.9
= control target key start
LH: loop header
LB: loop body
LE: loop exit
PB: predicated region body
PF: predicated region fallthrough
CT: control target
= control target key end

     0   :  { %vm278_vm0 = vcmask 1042432   ;;  %vm85_vm1 = vcmask 220160   ;;  %vm873_vm2 = vcmask 31744   ;;  %s1876_s1 = inlined_call_operand.vmem [shape: f32[27,4], index: 1, kind: input, shape index: {}]   ;;  %s1877_s0 = inlined_call_operand.vmem [shape: f32[512,27], index: 0, kind: input, shape index: {}]   ;;  %s1878_s2 = inlined_call_operand.vmem [shape: f32[1,4], index: 2, kind: input, shape index: {}]   ;;  %s1879_s3 = inlined_call_operand.vmem [shape: f32[1,4], index: 3, kind: input, shape index: {}]   ;;  %s1880_s4 = inlined_call_operand.vmem [shape: f32[512,4], index: 4, kind: output, shape index: {}]  }
   0x1   :  { %v84_v0 = vld [vmem:[%s1876_s1 + $0x18] sm:$0x7]  ;;  %v83_v1 = vld [vmem:[%s1876_s1 + $0x10] sm:$0xff]  ;;  %v82_v2 = vld [vmem:[%s1876_s1 + $0x8] sm:$0xff] }
   0x2   :  { %1077 = vmatprep.subr.msk.mxu0 %vm278_vm0, %v84_v0  ;;  %1181 = vmatprep.subr.msk.mxu1 %vm278_vm0, %v84_v0  ;;  %v81_v3 = vld [vmem:[%s1876_s1] sm:$0xff]  ;;  %v18_v6 = vld [vmem:[%s1877_s0 + $0x8] sm:$0xff]  ;;  %v19_v8 = vld [vmem:[%s1877_s0 + $0x10] sm:$0xff] }
   0x3   :  { %1078 = vmatpush3.msk.msra.mxu0 %vm278_vm0, %v84_v0  ;;  %1185 = vmatpush3.msk.msra.mxu1 %vm278_vm0, %v84_v0  ;;  %v17_v4 = vld [vmem:[%s1877_s0] sm:$0xff]  ;;  %v50_v7 = vld [vmem:[%s1877_s0 + $0x108] sm:$0xff]  ;;  %v51_v9 = vld [vmem:[%s1877_s0 + $0x110] sm:$0xff] }
   0x4   :  { %1079 = vmatprep.subr.mxu0 %v83_v1  ;;  %1182 = vmatprep.subr.mxu1 %v83_v1  ;;  %v49_v5 = vld [vmem:[%s1877_s0 + $0x100] sm:$0xff]  ;;  %v20_v10 = vld [vmem:[%s1877_s0 + $0x18] sm:$0xff]  ;;  %v22_v14 = vld [vmem:[%s1877_s0 + $0x28] sm:$0xff] }
   0x5   :  { %1080 = vmatpush3.msra.mxu0 %v83_v1  ;;  %1186 = vmatpush3.msra.mxu1 %v83_v1  ;;  %v52_v11 = vld [vmem:[%s1877_s0 + $0x118] sm:$0xff]  ;;  %v21_v12 = vld [vmem:[%s1877_s0 + $0x20] sm:$0xff]  ;;  %v54_v15 = vld [vmem:[%s1877_s0 + $0x128] sm:$0xff] }
   0x6   :  { %1081 = vmatprep.subr.mxu0 %v82_v2  ;;  %1183 = vmatprep.subr.mxu1 %v82_v2  ;;  %v53_v13 = vld [vmem:[%s1877_s0 + $0x120] sm:$0xff]  ;;  %v23_v16 = vld [vmem:[%s1877_s0 + $0x30] sm:$0xff]  ;;  %v24_v18 = vld [vmem:[%s1877_s0 + $0x38] sm:$0xff] }
   0x7   :  { %1082 = vmatpush3.msra.mxu0 %v82_v2  ;;  %1187 = vmatpush3.msra.mxu1 %v82_v2  ;;  %v55_v17 = vld [vmem:[%s1877_s0 + $0x130] sm:$0xff]  ;;  %v56_v19 = vld [vmem:[%s1877_s0 + $0x138] sm:$0xff]  ;;  %v25_v20 = vld [vmem:[%s1877_s0 + $0x40] sm:$0xff] }
   0x8   :  { %1083 = vmatprep.subr.mxu0 %v81_v3  ;;  %1184 = vmatprep.subr.mxu1 %v81_v3  ;;  %v57_v21 = vld [vmem:[%s1877_s0 + $0x140] sm:$0xff]  ;;  %v26_v22 = vld [vmem:[%s1877_s0 + $0x48] sm:$0xff]  ;;  %v27_v24 = vld [vmem:[%s1877_s0 + $0x50] sm:$0xff] }
   0x9   :  { %1084 = vmatpush3.msra.mxu0 %v81_v3  ;;  %1188 = vmatpush3.msra.mxu1 %v81_v3  ;;  %v58_v23 = vld [vmem:[%s1877_s0 + $0x148] sm:$0xff]  ;;  %v59_v25 = vld [vmem:[%s1877_s0 + $0x150] sm:$0xff]  ;;  %v28_v26 = vld [vmem:[%s1877_s0 + $0x58] sm:$0xff] }
   0xa   :  { %1085 = vmatprep.mubr.msk.f32.mxu0 %vm85_vm1, %v17_v4  ;;  %1133 = vmatprep.mubr.msk.f32.mxu1 %vm85_vm1, %v49_v5  ;;  %v60_v27 = vld [vmem:[%s1877_s0 + $0x158] sm:$0xff]  ;;  %v29_v28 = vld [vmem:[%s1877_s0 + $0x60] sm:$0xff]  ;;  %v30_v30 = vld [vmem:[%s1877_s0 + $0x68] sm:$0xff] }
   0xb   :  { %1086 = vmatmul.mubr.msk.f32.vlgmr.msra.gmra.mxu0 %vm85_vm1, %v18_v6  ;;  %1134 = vmatmul.mubr.msk.f32.vlgmr.msra.gmra.mxu1 %vm85_vm1, %v50_v7  ;;  %v61_v29 = vld [vmem:[%s1877_s0 + $0x160] sm:$0xff]  ;;  %v62_v31 = vld [vmem:[%s1877_s0 + $0x168] sm:$0xff]  ;;  %v31_v32 = vld [vmem:[%s1877_s0 + $0x70] sm:$0xff] }
   0xc   :  { %1088 = vmatprep.mubr.msk.f32.mxu0 %vm85_vm1, %v19_v8  ;;  %1136 = vmatprep.mubr.msk.f32.mxu1 %vm85_vm1, %v51_v9  ;;  %v63_v33 = vld [vmem:[%s1877_s0 + $0x170] sm:$0xff]  ;;  %v32_v34 = vld [vmem:[%s1877_s0 + $0x78] sm:$0xff]  ;;  %v33_v36 = vld [vmem:[%s1877_s0 + $0x80] sm:$0xff] }
   0xd   :  { %v64_v35 = vld [vmem:[%s1877_s0 + $0x178] sm:$0xff]  ;;  %v65_v37 = vld [vmem:[%s1877_s0 + $0x180] sm:$0xff]  ;;  %v34_v38 = vld [vmem:[%s1877_s0 + $0x88] sm:$0xff] }
   0xe   :  { %v66_v39 = vld [vmem:[%s1877_s0 + $0x188] sm:$0xff]  ;;  %v35_v40 = vld [vmem:[%s1877_s0 + $0x90] sm:$0xff]  ;;  %v36_v42 = vld [vmem:[%s1877_s0 + $0x98] sm:$0xff] }
   0xf   :  { %1089 = vmatmul.mubr.msk.f32.gmra.mxu0 %vm85_vm1, %v20_v10  ;;  %1137 = vmatmul.mubr.msk.f32.gmra.mxu1 %vm85_vm1, %v52_v11  ;;  %v67_v41 = vld [vmem:[%s1877_s0 + $0x190] sm:$0xff]  ;;  %v68_v43 = vld [vmem:[%s1877_s0 + $0x198] sm:$0xff]  ;;  %v37_v44 = vld [vmem:[%s1877_s0 + $0xa0] sm:$0xff] }
  0x10   :  { %1091 = vmatprep.mubr.msk.f32.mxu0 %vm85_vm1, %v21_v12  ;;  %1139 = vmatprep.mubr.msk.f32.mxu1 %vm85_vm1, %v53_v13  ;;  %v69_v45 = vld [vmem:[%s1877_s0 + $0x1a0] sm:$0xff]  ;;  %v38_v46 = vld [vmem:[%s1877_s0 + $0xa8] sm:$0xff]  ;;  %v39_v48 = vld [vmem:[%s1877_s0 + $0xb0] sm:$0xff] }
  0x11   :  { %v70_v47 = vld [vmem:[%s1877_s0 + $0x1a8] sm:$0xff]  ;;  %v71_v49 = vld [vmem:[%s1877_s0 + $0x1b0] sm:$0xff]  ;;  %v40_v50 = vld [vmem:[%s1877_s0 + $0xb8] sm:$0xff] }
  0x12   :  { %v72_v51 = vld [vmem:[%s1877_s0 + $0x1b8] sm:$0xff]  ;;  %v41_v52 = vld [vmem:[%s1877_s0 + $0xc0] sm:$0xff]  ;;  %v42_v54 = vld [vmem:[%s1877_s0 + $0xc8] sm:$0xff] }
  0x13   :  { %1092 = vmatmul.mubr.msk.f32.gmra.mxu0 %vm85_vm1, %v22_v14  ;;  %1140 = vmatmul.mubr.msk.f32.gmra.mxu1 %vm85_vm1, %v54_v15  ;;  %v73_v53 = vld [vmem:[%s1877_s0 + $0x1c0] sm:$0xff]  ;;  %v74_v55 = vld [vmem:[%s1877_s0 + $0x1c8] sm:$0xff]  ;;  %v43_v56 = vld [vmem:[%s1877_s0 + $0xd0] sm:$0xff] }
  0x14   :  { %1094 = vmatprep.mubr.msk.f32.mxu0 %vm85_vm1, %v23_v16  ;;  %1142 = vmatprep.mubr.msk.f32.mxu1 %vm85_vm1, %v55_v17  ;;  %v75_v57 = vld [vmem:[%s1877_s0 + $0x1d0] sm:$0xff]  ;;  %v44_v58 = vld [vmem:[%s1877_s0 + $0xd8] sm:$0xff]  ;;  %v45_v60 = vld [vmem:[%s1877_s0 + $0xe0] sm:$0xff] }
  0x15   :  { %v76_v59 = vld [vmem:[%s1877_s0 + $0x1d8] sm:$0xff]  ;;  %v77_v61 = vld [vmem:[%s1877_s0 + $0x1e0] sm:$0xff]  ;;  %v46_v62 = vld [vmem:[%s1877_s0 + $0xe8] sm:$0xff] }
  0x16   :  { %v78_v63 = vld [vmem:[%s1877_s0 + $0x1e8] sm:$0xff]  ;;  %v47_v0 = vld [vmem:[%s1877_s0 + $0xf0] sm:$0xff]  ;;  %v48_v2 = vld [vmem:[%s1877_s0 + $0xf8] sm:$0xff] }
  0x17   :  { %1095 = vmatmul.mubr.msk.f32.gmra.mxu0 %vm85_vm1, %v24_v18  ;;  %1143 = vmatmul.mubr.msk.f32.gmra.mxu1 %vm85_vm1, %v56_v19  ;;  %v79_v1 = vld [vmem:[%s1877_s0 + $0x1f0] sm:$0xff]  ;;  %v80_v3 = vld [vmem:[%s1877_s0 + $0x1f8] sm:$0xff]  ;;  %v1485_v4 = vld [vmem:[%s1878_s2] ss:$0 sm:$0xff] }
  0x18   :  { %1097 = vmatprep.mubr.msk.f32.mxu0 %vm85_vm1, %v25_v20  ;;  %1145 = vmatprep.mubr.msk.f32.mxu1 %vm85_vm1, %v57_v21  ;;  %v1490_v6 = vld [vmem:[%s1879_s3] ss:$0 sm:$0xff] }
  0x1b   :  { %1098 = vmatmul.mubr.msk.f32.gmra.mxu0 %vm85_vm1, %v26_v22  ;;  %1146 = vmatmul.mubr.msk.f32.gmra.mxu1 %vm85_vm1, %v58_v23 }
  0x1c   :  { %1100 = vmatprep.mubr.msk.f32.mxu0 %vm85_vm1, %v27_v24  ;;  %1148 = vmatprep.mubr.msk.f32.mxu1 %vm85_vm1, %v59_v25 }
  0x1f   :  { %1101 = vmatmul.mubr.msk.f32.gmra.mxu0 %vm85_vm1, %v28_v26  ;;  %1149 = vmatmul.mubr.msk.f32.gmra.mxu1 %vm85_vm1, %v60_v27 }
  0x20   :  { %1103 = vmatprep.mubr.msk.f32.mxu0 %vm85_vm1, %v29_v28  ;;  %1151 = vmatprep.mubr.msk.f32.mxu1 %vm85_vm1, %v61_v29 }
  0x23   :  { %1104 = vmatmul.mubr.msk.f32.gmra.mxu0 %vm85_vm1, %v30_v30  ;;  %1152 = vmatmul.mubr.msk.f32.gmra.mxu1 %vm85_vm1, %v62_v31 }
  0x24   :  { %1106 = vmatprep.mubr.msk.f32.mxu0 %vm85_vm1, %v31_v32  ;;  %1154 = vmatprep.mubr.msk.f32.mxu1 %vm85_vm1, %v63_v33 }
  0x27   :  { %1107 = vmatmul.mubr.msk.f32.gmra.mxu0 %vm85_vm1, %v32_v34  ;;  %1155 = vmatmul.mubr.msk.f32.gmra.mxu1 %vm85_vm1, %v64_v35 }
  0x28   :  { %1109 = vmatprep.mubr.msk.f32.mxu0 %vm85_vm1, %v33_v36  ;;  %1157 = vmatprep.mubr.msk.f32.mxu1 %vm85_vm1, %v65_v37 }
  0x2b   :  { %1110 = vmatmul.mubr.msk.f32.gmra.mxu0 %vm85_vm1, %v34_v38  ;;  %1158 = vmatmul.mubr.msk.f32.gmra.mxu1 %vm85_vm1, %v66_v39 }
  0x2c   :  { %1112 = vmatprep.mubr.msk.f32.mxu0 %vm85_vm1, %v35_v40  ;;  %1160 = vmatprep.mubr.msk.f32.mxu1 %vm85_vm1, %v67_v41 }
  0x2f   :  { %1113 = vmatmul.mubr.msk.f32.gmra.mxu0 %vm85_vm1, %v36_v42  ;;  %1161 = vmatmul.mubr.msk.f32.gmra.mxu1 %vm85_vm1, %v68_v43 }
  0x30   :  { %1115 = vmatprep.mubr.msk.f32.mxu0 %vm85_vm1, %v37_v44  ;;  %1163 = vmatprep.mubr.msk.f32.mxu1 %vm85_vm1, %v69_v45 }
  0x33   :  { %1116 = vmatmul.mubr.msk.f32.gmra.mxu0 %vm85_vm1, %v38_v46  ;;  %1164 = vmatmul.mubr.msk.f32.gmra.mxu1 %vm85_vm1, %v70_v47 }
  0x34   :  { %1118 = vmatprep.mubr.msk.f32.mxu0 %vm85_vm1, %v39_v48  ;;  %1166 = vmatprep.mubr.msk.f32.mxu1 %vm85_vm1, %v71_v49 }
  0x37   :  { %1119 = vmatmul.mubr.msk.f32.gmra.mxu0 %vm85_vm1, %v40_v50  ;;  %1167 = vmatmul.mubr.msk.f32.gmra.mxu1 %vm85_vm1, %v72_v51 }
  0x38   :  { %1121 = vmatprep.mubr.msk.f32.mxu0 %vm85_vm1, %v41_v52  ;;  %1169 = vmatprep.mubr.msk.f32.mxu1 %vm85_vm1, %v73_v53 }
  0x3b   :  { %1122 = vmatmul.mubr.msk.f32.gmra.mxu0 %vm85_vm1, %v42_v54  ;;  %1170 = vmatmul.mubr.msk.f32.gmra.mxu1 %vm85_vm1, %v74_v55 }
  0x3c   :  { %1124 = vmatprep.mubr.msk.f32.mxu0 %vm85_vm1, %v43_v56  ;;  %1172 = vmatprep.mubr.msk.f32.mxu1 %vm85_vm1, %v75_v57 }
  0x3f   :  { %1125 = vmatmul.mubr.msk.f32.gmra.mxu0 %vm85_vm1, %v44_v58  ;;  %1173 = vmatmul.mubr.msk.f32.gmra.mxu1 %vm85_vm1, %v76_v59 }
  0x40   :  { %1127 = vmatprep.mubr.msk.f32.mxu0 %vm85_vm1, %v45_v60  ;;  %1175 = vmatprep.mubr.msk.f32.mxu1 %vm85_vm1, %v77_v61 }
  0x43   :  { %1128 = vmatmul.mubr.msk.f32.gmra.mxu0 %vm85_vm1, %v46_v62  ;;  %1176 = vmatmul.mubr.msk.f32.gmra.mxu1 %vm85_vm1, %v78_v63 }
  0x44   :  { %1130 = vmatprep.mubr.msk.f32.mxu0 %vm85_vm1, %v47_v0  ;;  %1178 = vmatprep.mubr.msk.f32.mxu1 %vm85_vm1, %v79_v1 }
  0x47   :  { %1131 = vmatmul.mubr.msk.f32.gmra.mxu0 %vm85_vm1, %v48_v2  ;;  %1179 = vmatmul.mubr.msk.f32.gmra.mxu1 %vm85_vm1, %v80_v3 }
  0xcb   :  { %v1087_v5 = vpop.f32.mrf.mxu0  ;;  %v1135_v7 = vpop.f32.mrf.mxu1 }
  0xcc   :  { %v675_v8 = vmul.f32 %v1087_v5, %v1485_v4  ;;  %v707_v9 = vmul.f32 %v1135_v7, %v1485_v4 }
  0xcd   :  { %v348_v10 = vpop.f32.mrf.mxu0  ;;  %v508_v11 = vpop.f32.mrf.mxu1 }
  0xce   :  { %v746_v12 = vadd.f32 %v1490_v6, %v675_v8  ;;  %v778_v13 = vadd.f32 %v1490_v6, %v707_v9  ;;  %v674_v14 = vmul.f32 %v1485_v4, %v348_v10  ;;  %v706_v15 = vmul.f32 %v1485_v4, %v508_v11 }
  0xcf   :  { %v1090_v16 = vpop.f32.mrf.mxu0  ;;  %v1138_v17 = vpop.f32.mrf.mxu1 }
  0xd0   :  { %v810_v18 = vmax.f32 %v746_v12, 0.0  ;;  %v842_v19 = vmax.f32 %v778_v13, 0.0  ;;  %v745_v20 = vadd.f32 %v1490_v6, %v674_v14  ;;  %v777_v21 = vadd.f32 %v1490_v6, %v706_v15 }
  0xd1   :  { %v677_v22 = vmul.f32 %v1090_v16, %v1485_v4  ;;  %v709_v23 = vmul.f32 %v1138_v17, %v1485_v4  ;;  %v358_v24 = vpop.f32.mrf.mxu0  ;;  %v518_v25 = vpop.f32.mrf.mxu1 }
  0xd2   :  { %875 = vst.msk [vmem:[%s1880_s4 + $0x8] sm:$0xff] %vm873_vm2, %v810_v18  ;;  %907 = vst.msk [vmem:[%s1880_s4 + $0x108] sm:$0xff] %vm873_vm2, %v842_v19  ;;  %v809_v26 = vmax.f32 %v745_v20, 0.0  ;;  %v841_v27 = vmax.f32 %v777_v21, 0.0  ;;  %v676_v28 = vmul.f32 %v1485_v4, %v358_v24  ;;  %v708_v29 = vmul.f32 %v1485_v4, %v518_v25 }
  0xd3   :  { %v748_v30 = vadd.f32 %v1490_v6, %v677_v22  ;;  %v780_v31 = vadd.f32 %v1490_v6, %v709_v23  ;;  %v1093_v32 = vpop.f32.mrf.mxu0  ;;  %v1141_v33 = vpop.f32.mrf.mxu1 }
  0xd4   :  { %874 = vst.msk [vmem:[%s1880_s4] sm:$0xff] %vm873_vm2, %v809_v26  ;;  %906 = vst.msk [vmem:[%s1880_s4 + $0x100] sm:$0xff] %vm873_vm2, %v841_v27  ;;  %v747_v34 = vadd.f32 %v1490_v6, %v676_v28  ;;  %v779_v35 = vadd.f32 %v1490_v6, %v708_v29  ;;  %v679_v36 = vmul.f32 %v1093_v32, %v1485_v4 }
  0xd5   :  { %v711_v37 = vmul.f32 %v1141_v33, %v1485_v4  ;;  %v812_v38 = vmax.f32 %v748_v30, 0.0  ;;  %v844_v39 = vmax.f32 %v780_v31, 0.0  ;;  %v368_v40 = vpop.f32.mrf.mxu0  ;;  %v528_v41 = vpop.f32.mrf.mxu1 }
  0xd6   :  { %v811_v42 = vmax.f32 %v747_v34, 0.0  ;;  %v843_v43 = vmax.f32 %v779_v35, 0.0  ;;  %v750_v44 = vadd.f32 %v1490_v6, %v679_v36  ;;  %v678_v46 = vmul.f32 %v1485_v4, %v368_v40 }
  0xd7   :  { %v782_v45 = vadd.f32 %v1490_v6, %v711_v37  ;;  %877 = vst.msk [vmem:[%s1880_s4 + $0x18] sm:$0xff] %vm873_vm2, %v812_v38  ;;  %909 = vst.msk [vmem:[%s1880_s4 + $0x118] sm:$0xff] %vm873_vm2, %v844_v39  ;;  %v710_v47 = vmul.f32 %v1485_v4, %v528_v41  ;;  %v1096_v48 = vpop.f32.mrf.mxu0  ;;  %v1144_v49 = vpop.f32.mrf.mxu1 }
  0xd8   :  { %876 = vst.msk [vmem:[%s1880_s4 + $0x10] sm:$0xff] %vm873_vm2, %v811_v42  ;;  %908 = vst.msk [vmem:[%s1880_s4 + $0x110] sm:$0xff] %vm873_vm2, %v843_v43  ;;  %v814_v50 = vmax.f32 %v750_v44, 0.0  ;;  %v681_v52 = vmul.f32 %v1096_v48, %v1485_v4  ;;  %v713_v53 = vmul.f32 %v1144_v49, %v1485_v4  ;;  %v749_v54 = vadd.f32 %v1490_v6, %v678_v46 }
  0xd9   :  { %v846_v51 = vmax.f32 %v782_v45, 0.0  ;;  %v781_v55 = vadd.f32 %v1490_v6, %v710_v47  ;;  %v378_v56 = vpop.f32.mrf.mxu0  ;;  %v538_v57 = vpop.f32.mrf.mxu1 }
  0xda   :  { %879 = vst.msk [vmem:[%s1880_s4 + $0x28] sm:$0xff] %vm873_vm2, %v814_v50  ;;  %v752_v58 = vadd.f32 %v1490_v6, %v681_v52  ;;  %v784_v59 = vadd.f32 %v1490_v6, %v713_v53  ;;  %v680_v60 = vmul.f32 %v1485_v4, %v378_v56  ;;  %v712_v61 = vmul.f32 %v1485_v4, %v538_v57 }
  0xdb   :  { %911 = vst.msk [vmem:[%s1880_s4 + $0x128] sm:$0xff] %vm873_vm2, %v846_v51  ;;  %v813_v62 = vmax.f32 %v749_v54, 0.0  ;;  %v845_v63 = vmax.f32 %v781_v55, 0.0  ;;  %v1099_v0 = vpop.f32.mrf.mxu0  ;;  %v1147_v1 = vpop.f32.mrf.mxu1 }
  0xdc   :  { %v816_v2 = vmax.f32 %v752_v58, 0.0  ;;  %v848_v3 = vmax.f32 %v784_v59, 0.0  ;;  %v751_v5 = vadd.f32 %v1490_v6, %v680_v60  ;;  %v783_v7 = vadd.f32 %v1490_v6, %v712_v61 }
  0xdd   :  { %878 = vst.msk [vmem:[%s1880_s4 + $0x20] sm:$0xff] %vm873_vm2, %v813_v62  ;;  %910 = vst.msk [vmem:[%s1880_s4 + $0x120] sm:$0xff] %vm873_vm2, %v845_v63  ;;  %v683_v8 = vmul.f32 %v1099_v0, %v1485_v4  ;;  %v715_v9 = vmul.f32 %v1147_v1, %v1485_v4  ;;  %v388_v10 = vpop.f32.mrf.mxu0  ;;  %v548_v11 = vpop.f32.mrf.mxu1 }
  0xde   :  { %881 = vst.msk [vmem:[%s1880_s4 + $0x38] sm:$0xff] %vm873_vm2, %v816_v2  ;;  %913 = vst.msk [vmem:[%s1880_s4 + $0x138] sm:$0xff] %vm873_vm2, %v848_v3  ;;  %v815_v12 = vmax.f32 %v751_v5, 0.0  ;;  %v847_v13 = vmax.f32 %v783_v7, 0.0  ;;  %v682_v14 = vmul.f32 %v1485_v4, %v388_v10  ;;  %v714_v15 = vmul.f32 %v1485_v4, %v548_v11 }
  0xdf   :  { %v754_v16 = vadd.f32 %v1490_v6, %v683_v8  ;;  %v786_v17 = vadd.f32 %v1490_v6, %v715_v9  ;;  %v1102_v18 = vpop.f32.mrf.mxu0  ;;  %v1150_v19 = vpop.f32.mrf.mxu1 }
  0xe0   :  { %880 = vst.msk [vmem:[%s1880_s4 + $0x30] sm:$0xff] %vm873_vm2, %v815_v12  ;;  %912 = vst.msk [vmem:[%s1880_s4 + $0x130] sm:$0xff] %vm873_vm2, %v847_v13  ;;  %v753_v20 = vadd.f32 %v1490_v6, %v682_v14  ;;  %v785_v21 = vadd.f32 %v1490_v6, %v714_v15  ;;  %v685_v22 = vmul.f32 %v1102_v18, %v1485_v4 }
  0xe1   :  { %v717_v23 = vmul.f32 %v1150_v19, %v1485_v4  ;;  %v818_v24 = vmax.f32 %v754_v16, 0.0  ;;  %v850_v25 = vmax.f32 %v786_v17, 0.0  ;;  %v398_v26 = vpop.f32.mrf.mxu0  ;;  %v558_v27 = vpop.f32.mrf.mxu1 }
  0xe2   :  { %v817_v28 = vmax.f32 %v753_v20, 0.0  ;;  %v849_v29 = vmax.f32 %v785_v21, 0.0  ;;  %v756_v30 = vadd.f32 %v1490_v6, %v685_v22  ;;  %v684_v32 = vmul.f32 %v1485_v4, %v398_v26 }
  0xe3   :  { %v788_v31 = vadd.f32 %v1490_v6, %v717_v23  ;;  %883 = vst.msk [vmem:[%s1880_s4 + $0x48] sm:$0xff] %vm873_vm2, %v818_v24  ;;  %915 = vst.msk [vmem:[%s1880_s4 + $0x148] sm:$0xff] %vm873_vm2, %v850_v25  ;;  %v716_v33 = vmul.f32 %v1485_v4, %v558_v27  ;;  %v1105_v34 = vpop.f32.mrf.mxu0  ;;  %v1153_v35 = vpop.f32.mrf.mxu1 }
  0xe4   :  { %882 = vst.msk [vmem:[%s1880_s4 + $0x40] sm:$0xff] %vm873_vm2, %v817_v28  ;;  %914 = vst.msk [vmem:[%s1880_s4 + $0x140] sm:$0xff] %vm873_vm2, %v849_v29  ;;  %v820_v36 = vmax.f32 %v756_v30, 0.0  ;;  %v687_v38 = vmul.f32 %v1105_v34, %v1485_v4  ;;  %v719_v39 = vmul.f32 %v1153_v35, %v1485_v4  ;;  %v755_v40 = vadd.f32 %v1490_v6, %v684_v32 }
  0xe5   :  { %v852_v37 = vmax.f32 %v788_v31, 0.0  ;;  %v787_v41 = vadd.f32 %v1490_v6, %v716_v33  ;;  %v408_v42 = vpop.f32.mrf.mxu0  ;;  %v568_v43 = vpop.f32.mrf.mxu1 }
  0xe6   :  { %885 = vst.msk [vmem:[%s1880_s4 + $0x58] sm:$0xff] %vm873_vm2, %v820_v36  ;;  %v758_v44 = vadd.f32 %v1490_v6, %v687_v38  ;;  %v790_v45 = vadd.f32 %v1490_v6, %v719_v39  ;;  %v686_v46 = vmul.f32 %v1485_v4, %v408_v42  ;;  %v718_v47 = vmul.f32 %v1485_v4, %v568_v43 }
  0xe7   :  { %917 = vst.msk [vmem:[%s1880_s4 + $0x158] sm:$0xff] %vm873_vm2, %v852_v37  ;;  %v819_v48 = vmax.f32 %v755_v40, 0.0  ;;  %v851_v49 = vmax.f32 %v787_v41, 0.0  ;;  %v1108_v50 = vpop.f32.mrf.mxu0  ;;  %v1156_v51 = vpop.f32.mrf.mxu1 }
  0xe8   :  { %v822_v52 = vmax.f32 %v758_v44, 0.0  ;;  %v854_v53 = vmax.f32 %v790_v45, 0.0  ;;  %v757_v54 = vadd.f32 %v1490_v6, %v686_v46  ;;  %v789_v55 = vadd.f32 %v1490_v6, %v718_v47 }
  0xe9   :  { %884 = vst.msk [vmem:[%s1880_s4 + $0x50] sm:$0xff] %vm873_vm2, %v819_v48  ;;  %916 = vst.msk [vmem:[%s1880_s4 + $0x150] sm:$0xff] %vm873_vm2, %v851_v49  ;;  %v689_v56 = vmul.f32 %v1108_v50, %v1485_v4  ;;  %v721_v57 = vmul.f32 %v1156_v51, %v1485_v4  ;;  %v418_v58 = vpop.f32.mrf.mxu0  ;;  %v578_v59 = vpop.f32.mrf.mxu1 }
  0xea   :  { %887 = vst.msk [vmem:[%s1880_s4 + $0x68] sm:$0xff] %vm873_vm2, %v822_v52  ;;  %919 = vst.msk [vmem:[%s1880_s4 + $0x168] sm:$0xff] %vm873_vm2, %v854_v53  ;;  %v821_v60 = vmax.f32 %v757_v54, 0.0  ;;  %v853_v61 = vmax.f32 %v789_v55, 0.0  ;;  %v688_v62 = vmul.f32 %v1485_v4, %v418_v58  ;;  %v720_v63 = vmul.f32 %v1485_v4, %v578_v59 }
  0xeb   :  { %v760_v0 = vadd.f32 %v1490_v6, %v689_v56  ;;  %v792_v1 = vadd.f32 %v1490_v6, %v721_v57  ;;  %v1111_v2 = vpop.f32.mrf.mxu0  ;;  %v1159_v3 = vpop.f32.mrf.mxu1 }
  0xec   :  { %886 = vst.msk [vmem:[%s1880_s4 + $0x60] sm:$0xff] %vm873_vm2, %v821_v60  ;;  %918 = vst.msk [vmem:[%s1880_s4 + $0x160] sm:$0xff] %vm873_vm2, %v853_v61  ;;  %v759_v5 = vadd.f32 %v1490_v6, %v688_v62  ;;  %v791_v7 = vadd.f32 %v1490_v6, %v720_v63  ;;  %v691_v8 = vmul.f32 %v1111_v2, %v1485_v4 }
  0xed   :  { %v723_v9 = vmul.f32 %v1159_v3, %v1485_v4  ;;  %v824_v10 = vmax.f32 %v760_v0, 0.0  ;;  %v856_v11 = vmax.f32 %v792_v1, 0.0  ;;  %v428_v12 = vpop.f32.mrf.mxu0  ;;  %v588_v13 = vpop.f32.mrf.mxu1 }
  0xee   :  { %v823_v14 = vmax.f32 %v759_v5, 0.0  ;;  %v855_v15 = vmax.f32 %v791_v7, 0.0  ;;  %v762_v16 = vadd.f32 %v1490_v6, %v691_v8  ;;  %v690_v18 = vmul.f32 %v1485_v4, %v428_v12 }
  0xef   :  { %v794_v17 = vadd.f32 %v1490_v6, %v723_v9  ;;  %889 = vst.msk [vmem:[%s1880_s4 + $0x78] sm:$0xff] %vm873_vm2, %v824_v10  ;;  %921 = vst.msk [vmem:[%s1880_s4 + $0x178] sm:$0xff] %vm873_vm2, %v856_v11  ;;  %v722_v19 = vmul.f32 %v1485_v4, %v588_v13  ;;  %v1114_v20 = vpop.f32.mrf.mxu0  ;;  %v1162_v21 = vpop.f32.mrf.mxu1 }
  0xf0   :  { %888 = vst.msk [vmem:[%s1880_s4 + $0x70] sm:$0xff] %vm873_vm2, %v823_v14  ;;  %920 = vst.msk [vmem:[%s1880_s4 + $0x170] sm:$0xff] %vm873_vm2, %v855_v15  ;;  %v826_v22 = vmax.f32 %v762_v16, 0.0  ;;  %v693_v24 = vmul.f32 %v1114_v20, %v1485_v4  ;;  %v725_v25 = vmul.f32 %v1162_v21, %v1485_v4  ;;  %v761_v26 = vadd.f32 %v1490_v6, %v690_v18 }
  0xf1   :  { %v858_v23 = vmax.f32 %v794_v17, 0.0  ;;  %v793_v27 = vadd.f32 %v1490_v6, %v722_v19  ;;  %v438_v28 = vpop.f32.mrf.mxu0  ;;  %v598_v29 = vpop.f32.mrf.mxu1 }
  0xf2   :  { %891 = vst.msk [vmem:[%s1880_s4 + $0x88] sm:$0xff] %vm873_vm2, %v826_v22  ;;  %v764_v30 = vadd.f32 %v1490_v6, %v693_v24  ;;  %v796_v31 = vadd.f32 %v1490_v6, %v725_v25  ;;  %v692_v32 = vmul.f32 %v1485_v4, %v438_v28  ;;  %v724_v33 = vmul.f32 %v1485_v4, %v598_v29 }
  0xf3   :  { %923 = vst.msk [vmem:[%s1880_s4 + $0x188] sm:$0xff] %vm873_vm2, %v858_v23  ;;  %v825_v34 = vmax.f32 %v761_v26, 0.0  ;;  %v857_v35 = vmax.f32 %v793_v27, 0.0  ;;  %v1117_v36 = vpop.f32.mrf.mxu0  ;;  %v1165_v37 = vpop.f32.mrf.mxu1 }
  0xf4   :  { %v828_v38 = vmax.f32 %v764_v30, 0.0  ;;  %v860_v39 = vmax.f32 %v796_v31, 0.0  ;;  %v763_v40 = vadd.f32 %v1490_v6, %v692_v32  ;;  %v795_v41 = vadd.f32 %v1490_v6, %v724_v33 }
  0xf5   :  { %890 = vst.msk [vmem:[%s1880_s4 + $0x80] sm:$0xff] %vm873_vm2, %v825_v34  ;;  %922 = vst.msk [vmem:[%s1880_s4 + $0x180] sm:$0xff] %vm873_vm2, %v857_v35  ;;  %v695_v42 = vmul.f32 %v1117_v36, %v1485_v4  ;;  %v727_v43 = vmul.f32 %v1165_v37, %v1485_v4  ;;  %v448_v44 = vpop.f32.mrf.mxu0  ;;  %v608_v45 = vpop.f32.mrf.mxu1 }
  0xf6   :  { %893 = vst.msk [vmem:[%s1880_s4 + $0x98] sm:$0xff] %vm873_vm2, %v828_v38  ;;  %925 = vst.msk [vmem:[%s1880_s4 + $0x198] sm:$0xff] %vm873_vm2, %v860_v39  ;;  %v827_v46 = vmax.f32 %v763_v40, 0.0  ;;  %v859_v47 = vmax.f32 %v795_v41, 0.0  ;;  %v694_v48 = vmul.f32 %v1485_v4, %v448_v44  ;;  %v726_v49 = vmul.f32 %v1485_v4, %v608_v45 }
  0xf7   :  { %v766_v50 = vadd.f32 %v1490_v6, %v695_v42  ;;  %v798_v51 = vadd.f32 %v1490_v6, %v727_v43  ;;  %v1120_v52 = vpop.f32.mrf.mxu0  ;;  %v1168_v53 = vpop.f32.mrf.mxu1 }
  0xf8   :  { %892 = vst.msk [vmem:[%s1880_s4 + $0x90] sm:$0xff] %vm873_vm2, %v827_v46  ;;  %924 = vst.msk [vmem:[%s1880_s4 + $0x190] sm:$0xff] %vm873_vm2, %v859_v47  ;;  %v765_v54 = vadd.f32 %v1490_v6, %v694_v48  ;;  %v797_v55 = vadd.f32 %v1490_v6, %v726_v49  ;;  %v697_v56 = vmul.f32 %v1120_v52, %v1485_v4 }
  0xf9   :  { %v729_v57 = vmul.f32 %v1168_v53, %v1485_v4  ;;  %v830_v58 = vmax.f32 %v766_v50, 0.0  ;;  %v862_v59 = vmax.f32 %v798_v51, 0.0  ;;  %v458_v60 = vpop.f32.mrf.mxu0  ;;  %v618_v61 = vpop.f32.mrf.mxu1 }
  0xfa   :  { %v829_v62 = vmax.f32 %v765_v54, 0.0  ;;  %v861_v63 = vmax.f32 %v797_v55, 0.0  ;;  %v768_v0 = vadd.f32 %v1490_v6, %v697_v56  ;;  %v696_v2 = vmul.f32 %v1485_v4, %v458_v60 }
  0xfb   :  { %v800_v1 = vadd.f32 %v1490_v6, %v729_v57  ;;  %895 = vst.msk [vmem:[%s1880_s4 + $0xa8] sm:$0xff] %vm873_vm2, %v830_v58  ;;  %927 = vst.msk [vmem:[%s1880_s4 + $0x1a8] sm:$0xff] %vm873_vm2, %v862_v59  ;;  %v728_v3 = vmul.f32 %v1485_v4, %v618_v61  ;;  %v1123_v5 = vpop.f32.mrf.mxu0  ;;  %v1171_v7 = vpop.f32.mrf.mxu1 }
  0xfc   :  { %894 = vst.msk [vmem:[%s1880_s4 + $0xa0] sm:$0xff] %vm873_vm2, %v829_v62  ;;  %926 = vst.msk [vmem:[%s1880_s4 + $0x1a0] sm:$0xff] %vm873_vm2, %v861_v63  ;;  %v832_v8 = vmax.f32 %v768_v0, 0.0  ;;  %v699_v10 = vmul.f32 %v1123_v5, %v1485_v4  ;;  %v731_v11 = vmul.f32 %v1171_v7, %v1485_v4  ;;  %v767_v12 = vadd.f32 %v1490_v6, %v696_v2 }
  0xfd   :  { %v864_v9 = vmax.f32 %v800_v1, 0.0  ;;  %v799_v13 = vadd.f32 %v1490_v6, %v728_v3  ;;  %v468_v14 = vpop.f32.mrf.mxu0  ;;  %v628_v15 = vpop.f32.mrf.mxu1 }
  0xfe   :  { %897 = vst.msk [vmem:[%s1880_s4 + $0xb8] sm:$0xff] %vm873_vm2, %v832_v8  ;;  %v770_v16 = vadd.f32 %v1490_v6, %v699_v10  ;;  %v802_v17 = vadd.f32 %v1490_v6, %v731_v11  ;;  %v698_v18 = vmul.f32 %v1485_v4, %v468_v14  ;;  %v730_v19 = vmul.f32 %v1485_v4, %v628_v15 }
  0xff   :  { %929 = vst.msk [vmem:[%s1880_s4 + $0x1b8] sm:$0xff] %vm873_vm2, %v864_v9  ;;  %v831_v20 = vmax.f32 %v767_v12, 0.0  ;;  %v863_v21 = vmax.f32 %v799_v13, 0.0  ;;  %v1126_v22 = vpop.f32.mrf.mxu0  ;;  %v1174_v23 = vpop.f32.mrf.mxu1 }
 0x100   :  { %v834_v24 = vmax.f32 %v770_v16, 0.0  ;;  %v866_v25 = vmax.f32 %v802_v17, 0.0  ;;  %v769_v26 = vadd.f32 %v1490_v6, %v698_v18  ;;  %v801_v27 = vadd.f32 %v1490_v6, %v730_v19 }
 0x101   :  { %896 = vst.msk [vmem:[%s1880_s4 + $0xb0] sm:$0xff] %vm873_vm2, %v831_v20  ;;  %928 = vst.msk [vmem:[%s1880_s4 + $0x1b0] sm:$0xff] %vm873_vm2, %v863_v21  ;;  %v701_v28 = vmul.f32 %v1126_v22, %v1485_v4  ;;  %v733_v29 = vmul.f32 %v1174_v23, %v1485_v4  ;;  %v478_v30 = vpop.f32.mrf.mxu0  ;;  %v638_v31 = vpop.f32.mrf.mxu1 }
 0x102   :  { %899 = vst.msk [vmem:[%s1880_s4 + $0xc8] sm:$0xff] %vm873_vm2, %v834_v24  ;;  %931 = vst.msk [vmem:[%s1880_s4 + $0x1c8] sm:$0xff] %vm873_vm2, %v866_v25  ;;  %v833_v32 = vmax.f32 %v769_v26, 0.0  ;;  %v865_v33 = vmax.f32 %v801_v27, 0.0  ;;  %v700_v34 = vmul.f32 %v1485_v4, %v478_v30  ;;  %v732_v35 = vmul.f32 %v1485_v4, %v638_v31 }
 0x103   :  { %v772_v36 = vadd.f32 %v1490_v6, %v701_v28  ;;  %v804_v37 = vadd.f32 %v1490_v6, %v733_v29  ;;  %v1129_v38 = vpop.f32.mrf.mxu0  ;;  %v1177_v39 = vpop.f32.mrf.mxu1 }
 0x104   :  { %898 = vst.msk [vmem:[%s1880_s4 + $0xc0] sm:$0xff] %vm873_vm2, %v833_v32  ;;  %930 = vst.msk [vmem:[%s1880_s4 + $0x1c0] sm:$0xff] %vm873_vm2, %v865_v33  ;;  %v771_v40 = vadd.f32 %v1490_v6, %v700_v34  ;;  %v803_v41 = vadd.f32 %v1490_v6, %v732_v35  ;;  %v703_v42 = vmul.f32 %v1129_v38, %v1485_v4 }
 0x105   :  { %v735_v43 = vmul.f32 %v1177_v39, %v1485_v4  ;;  %v836_v44 = vmax.f32 %v772_v36, 0.0  ;;  %v868_v45 = vmax.f32 %v804_v37, 0.0  ;;  %v488_v46 = vpop.f32.mrf.mxu0  ;;  %v648_v47 = vpop.f32.mrf.mxu1 }
 0x106   :  { %v835_v48 = vmax.f32 %v771_v40, 0.0  ;;  %v867_v49 = vmax.f32 %v803_v41, 0.0  ;;  %v774_v50 = vadd.f32 %v1490_v6, %v703_v42  ;;  %v702_v52 = vmul.f32 %v1485_v4, %v488_v46 }
 0x107   :  { %v806_v51 = vadd.f32 %v1490_v6, %v735_v43  ;;  %901 = vst.msk [vmem:[%s1880_s4 + $0xd8] sm:$0xff] %vm873_vm2, %v836_v44  ;;  %933 = vst.msk [vmem:[%s1880_s4 + $0x1d8] sm:$0xff] %vm873_vm2, %v868_v45  ;;  %v734_v53 = vmul.f32 %v1485_v4, %v648_v47  ;;  %v1132_v54 = vpop.f32.mrf.mxu0  ;;  %v1180_v55 = vpop.f32.mrf.mxu1 }
 0x108   :  { %900 = vst.msk [vmem:[%s1880_s4 + $0xd0] sm:$0xff] %vm873_vm2, %v835_v48  ;;  %932 = vst.msk [vmem:[%s1880_s4 + $0x1d0] sm:$0xff] %vm873_vm2, %v867_v49  ;;  %v838_v56 = vmax.f32 %v774_v50, 0.0  ;;  %v705_v58 = vmul.f32 %v1132_v54, %v1485_v4  ;;  %v737_v59 = vmul.f32 %v1180_v55, %v1485_v4  ;;  %v773_v60 = vadd.f32 %v1490_v6, %v702_v52 }
 0x109   :  { %v870_v57 = vmax.f32 %v806_v51, 0.0  ;;  %v805_v61 = vadd.f32 %v1490_v6, %v734_v53  ;;  %v498_v62 = vpop.f32.mrf.mxu0  ;;  %v658_v63 = vpop.f32.mrf.mxu1 }
 0x10a   :  { %903 = vst.msk [vmem:[%s1880_s4 + $0xe8] sm:$0xff] %vm873_vm2, %v838_v56  ;;  %v776_v0 = vadd.f32 %v1490_v6, %v705_v58  ;;  %v808_v1 = vadd.f32 %v1490_v6, %v737_v59  ;;  %v704_v2 = vmul.f32 %v1485_v4, %v498_v62  ;;  %v736_v3 = vmul.f32 %v1485_v4, %v658_v63 }
 0x10b   :  { %935 = vst.msk [vmem:[%s1880_s4 + $0x1e8] sm:$0xff] %vm873_vm2, %v870_v57  ;;  %v837_v5 = vmax.f32 %v773_v60, 0.0  ;;  %v869_v7 = vmax.f32 %v805_v61, 0.0 }
 0x10c   :  { %v840_v8 = vmax.f32 %v776_v0, 0.0  ;;  %v872_v9 = vmax.f32 %v808_v1, 0.0  ;;  %v775_v10 = vadd.f32 %v1490_v6, %v704_v2  ;;  %v807_v11 = vadd.f32 %v1490_v6, %v736_v3 }
 0x10d   :  { %902 = vst.msk [vmem:[%s1880_s4 + $0xe0] sm:$0xff] %vm873_vm2, %v837_v5  ;;  %934 = vst.msk [vmem:[%s1880_s4 + $0x1e0] sm:$0xff] %vm873_vm2, %v869_v7 }
 0x10e   :  { %905 = vst.msk [vmem:[%s1880_s4 + $0xf8] sm:$0xff] %vm873_vm2, %v840_v8  ;;  %937 = vst.msk [vmem:[%s1880_s4 + $0x1f8] sm:$0xff] %vm873_vm2, %v872_v9  ;;  %v839_v4 = vmax.f32 %v775_v10, 0.0  ;;  %v871_v6 = vmax.f32 %v807_v11, 0.0 }
 0x110   :  { %904 = vst.msk [vmem:[%s1880_s4 + $0xf0] sm:$0xff] %vm873_vm2, %v839_v4  ;;  %936 = vst.msk [vmem:[%s1880_s4 + $0x1f0] sm:$0xff] %vm873_vm2, %v871_v6 }

// kernel: efficientformer_forward.10
= control target key start
LH: loop header
LB: loop body
LE: loop exit
PB: predicated region body
PF: predicated region fallthrough
CT: control target
= control target key end

     0   :  { %vm87_vm0 = vcmask 1043456   ;;  %vm38_vm1 = vcmask 293888   ;;  %vm298_vm2 = vcmask 64512   ;;  %s613_s1 = inlined_call_operand.vmem [shape: f32[36,8], index: 1, kind: input, shape index: {}]   ;;  %s614_s0 = inlined_call_operand.vmem [shape: f32[128,36], index: 0, kind: input, shape index: {}]   ;;  %s615_s2 = inlined_call_operand.vmem [shape: f32[1,8], index: 2, kind: input, shape index: {}]   ;;  %s616_s3 = inlined_call_operand.vmem [shape: f32[1,8], index: 3, kind: input, shape index: {}]   ;;  %s617_s4 = inlined_call_operand.vmem [shape: f32[128,8], index: 4, kind: output, shape index: {}]  }
   0x1   :  { %v37_v0 = vld [vmem:[%s613_s1 + $0x20] sm:$0xf]  ;;  %v36_v1 = vld [vmem:[%s613_s1 + $0x18] sm:$0xff]  ;;  %v35_v2 = vld [vmem:[%s613_s1 + $0x10] sm:$0xff] }
   0x2   :  { %359 = vmatprep.subr.msk.mxu0 %vm87_vm0, %v37_v0  ;;  %393 = vmatprep.subr.msk.mxu1 %vm87_vm0, %v37_v0  ;;  %v34_v3 = vld [vmem:[%s613_s1 + $0x8] sm:$0xff]  ;;  %v33_v4 = vld [vmem:[%s613_s1] sm:$0xff]  ;;  %v19_v9 = vld [vmem:[%s614_s0 + $0x10] sm:$0xff] }
   0x3   :  { %360 = vmatpush3.msk.msra.mxu0 %vm87_vm0, %v37_v0  ;;  %398 = vmatpush3.msk.msra.mxu1 %vm87_vm0, %v37_v0  ;;  %v17_v5 = vld [vmem:[%s614_s0] sm:$0xff]  ;;  %v18_v7 = vld [vmem:[%s614_s0 + $0x8] sm:$0xff]  ;;  %v27_v10 = vld [vmem:[%s614_s0 + $0x50] sm:$0xff] }
   0x4   :  { %361 = vmatprep.subr.mxu0 %v36_v1  ;;  %394 = vmatprep.subr.mxu1 %v36_v1  ;;  %v25_v6 = vld [vmem:[%s614_s0 + $0x40] sm:$0xff]  ;;  %v26_v8 = vld [vmem:[%s614_s0 + $0x48] sm:$0xff]  ;;  %v20_v11 = vld [vmem:[%s614_s0 + $0x18] sm:$0xff] }
   0x5   :  { %362 = vmatpush3.msra.mxu0 %v36_v1  ;;  %399 = vmatpush3.msra.mxu1 %v36_v1  ;;  %v28_v12 = vld [vmem:[%s614_s0 + $0x58] sm:$0xff]  ;;  %v21_v13 = vld [vmem:[%s614_s0 + $0x20] sm:$0xff]  ;;  %v22_v15 = vld [vmem:[%s614_s0 + $0x28] sm:$0xff] }
   0x6   :  { %363 = vmatprep.subr.mxu0 %v35_v2  ;;  %395 = vmatprep.subr.mxu1 %v35_v2  ;;  %v29_v14 = vld [vmem:[%s614_s0 + $0x60] sm:$0xff]  ;;  %v30_v16 = vld [vmem:[%s614_s0 + $0x68] sm:$0xff]  ;;  %v23_v17 = vld [vmem:[%s614_s0 + $0x30] sm:$0xff] }
   0x7   :  { %364 = vmatpush3.msra.mxu0 %v35_v2  ;;  %400 = vmatpush3.msra.mxu1 %v35_v2  ;;  %v31_v18 = vld [vmem:[%s614_s0 + $0x70] sm:$0xff]  ;;  %v24_v19 = vld [vmem:[%s614_s0 + $0x38] sm:$0xff]  ;;  %v510_v21 = vld [vmem:[%s615_s2] ss:$0 sm:$0xff] }
   0x8   :  { %365 = vmatprep.subr.mxu0 %v34_v3  ;;  %396 = vmatprep.subr.mxu1 %v34_v3  ;;  %v32_v20 = vld [vmem:[%s614_s0 + $0x78] sm:$0xff]  ;;  %v515_v23 = vld [vmem:[%s616_s3] ss:$0 sm:$0xff] }
   0x9   :  { %366 = vmatpush3.msra.mxu0 %v34_v3  ;;  %401 = vmatpush3.msra.mxu1 %v34_v3 }
   0xa   :  { %367 = vmatprep.subr.mxu0 %v33_v4  ;;  %397 = vmatprep.subr.mxu1 %v33_v4 }
   0xb   :  { %368 = vmatpush3.msra.mxu0 %v33_v4  ;;  %402 = vmatpush3.msra.mxu1 %v33_v4 }
   0xc   :  { %369 = vmatprep.mubr.msk.f32.mxu0 %vm38_vm1, %v17_v5  ;;  %381 = vmatprep.mubr.msk.f32.mxu1 %vm38_vm1, %v25_v6 }
   0xd   :  { %370 = vmatmul.mubr.msk.f32.vlgmr.msra.gmra.mxu0 %vm38_vm1, %v18_v7  ;;  %382 = vmatmul.mubr.msk.f32.vlgmr.msra.gmra.mxu1 %vm38_vm1, %v26_v8 }
   0xe   :  { %372 = vmatprep.mubr.msk.f32.mxu0 %vm38_vm1, %v19_v9  ;;  %384 = vmatprep.mubr.msk.f32.mxu1 %vm38_vm1, %v27_v10 }
  0x11   :  { %373 = vmatmul.mubr.msk.f32.gmra.mxu0 %vm38_vm1, %v20_v11  ;;  %385 = vmatmul.mubr.msk.f32.gmra.mxu1 %vm38_vm1, %v28_v12 }
  0x12   :  { %375 = vmatprep.mubr.msk.f32.mxu0 %vm38_vm1, %v21_v13  ;;  %387 = vmatprep.mubr.msk.f32.mxu1 %vm38_vm1, %v29_v14 }
  0x15   :  { %376 = vmatmul.mubr.msk.f32.gmra.mxu0 %vm38_vm1, %v22_v15  ;;  %388 = vmatmul.mubr.msk.f32.gmra.mxu1 %vm38_vm1, %v30_v16 }
  0x16   :  { %378 = vmatprep.mubr.msk.f32.mxu0 %vm38_vm1, %v23_v17  ;;  %390 = vmatprep.mubr.msk.f32.mxu1 %vm38_vm1, %v31_v18 }
  0x19   :  { %379 = vmatmul.mubr.msk.f32.gmra.mxu0 %vm38_vm1, %v24_v19  ;;  %391 = vmatmul.mubr.msk.f32.gmra.mxu1 %vm38_vm1, %v32_v20 }
  0xcd   :  { %v371_v22 = vpop.f32.mrf.mxu0  ;;  %v383_v24 = vpop.f32.mrf.mxu1 }
  0xce   :  { %v244_v25 = vmul.f32 %v371_v22, %v510_v21  ;;  %v252_v26 = vmul.f32 %v383_v24, %v510_v21 }
  0xcf   :  { %v157_v27 = vpop.f32.mrf.mxu0  ;;  %v197_v28 = vpop.f32.mrf.mxu1 }
  0xd0   :  { %v267_v29 = vadd.f32 %v515_v23, %v244_v25  ;;  %v275_v30 = vadd.f32 %v515_v23, %v252_v26  ;;  %v243_v31 = vmul.f32 %v510_v21, %v157_v27  ;;  %v251_v32 = vmul.f32 %v510_v21, %v197_v28 }
  0xd1   :  { %v374_v33 = vpop.f32.mrf.mxu0  ;;  %v386_v34 = vpop.f32.mrf.mxu1 }
  0xd2   :  { %v283_v35 = vmax.f32 %v267_v29, 0.0  ;;  %v291_v36 = vmax.f32 %v275_v30, 0.0  ;;  %v266_v37 = vadd.f32 %v515_v23, %v243_v31  ;;  %v274_v38 = vadd.f32 %v515_v23, %v251_v32 }
  0xd3   :  { %v246_v39 = vmul.f32 %v374_v33, %v510_v21  ;;  %v254_v40 = vmul.f32 %v386_v34, %v510_v21  ;;  %v167_v41 = vpop.f32.mrf.mxu0  ;;  %v207_v42 = vpop.f32.mrf.mxu1 }
  0xd4   :  { %300 = vst.msk [vmem:[%s617_s4 + $0x8] sm:$0xff] %vm298_vm2, %v283_v35  ;;  %308 = vst.msk [vmem:[%s617_s4 + $0x48] sm:$0xff] %vm298_vm2, %v291_v36  ;;  %v282_v43 = vmax.f32 %v266_v37, 0.0  ;;  %v290_v44 = vmax.f32 %v274_v38, 0.0  ;;  %v245_v45 = vmul.f32 %v510_v21, %v167_v41  ;;  %v253_v46 = vmul.f32 %v510_v21, %v207_v42 }
  0xd5   :  { %v269_v47 = vadd.f32 %v515_v23, %v246_v39  ;;  %v277_v48 = vadd.f32 %v515_v23, %v254_v40  ;;  %v377_v49 = vpop.f32.mrf.mxu0  ;;  %v389_v50 = vpop.f32.mrf.mxu1 }
  0xd6   :  { %299 = vst.msk [vmem:[%s617_s4] sm:$0xff] %vm298_vm2, %v282_v43  ;;  %307 = vst.msk [vmem:[%s617_s4 + $0x40] sm:$0xff] %vm298_vm2, %v290_v44  ;;  %v268_v51 = vadd.f32 %v515_v23, %v245_v45  ;;  %v276_v52 = vadd.f32 %v515_v23, %v253_v46  ;;  %v248_v53 = vmul.f32 %v377_v49, %v510_v21 }
  0xd7   :  { %v256_v54 = vmul.f32 %v389_v50, %v510_v21  ;;  %v285_v55 = vmax.f32 %v269_v47, 0.0  ;;  %v293_v56 = vmax.f32 %v277_v48, 0.0  ;;  %v177_v57 = vpop.f32.mrf.mxu0  ;;  %v217_v58 = vpop.f32.mrf.mxu1 }
  0xd8   :  { %v284_v59 = vmax.f32 %v268_v51, 0.0  ;;  %v292_v60 = vmax.f32 %v276_v52, 0.0  ;;  %v271_v61 = vadd.f32 %v515_v23, %v248_v53  ;;  %v247_v63 = vmul.f32 %v510_v21, %v177_v57 }
  0xd9   :  { %v279_v62 = vadd.f32 %v515_v23, %v256_v54  ;;  %302 = vst.msk [vmem:[%s617_s4 + $0x18] sm:$0xff] %vm298_vm2, %v285_v55  ;;  %310 = vst.msk [vmem:[%s617_s4 + $0x58] sm:$0xff] %vm298_vm2, %v293_v56  ;;  %v255_v0 = vmul.f32 %v510_v21, %v217_v58  ;;  %v380_v1 = vpop.f32.mrf.mxu0  ;;  %v392_v2 = vpop.f32.mrf.mxu1 }
  0xda   :  { %301 = vst.msk [vmem:[%s617_s4 + $0x10] sm:$0xff] %vm298_vm2, %v284_v59  ;;  %309 = vst.msk [vmem:[%s617_s4 + $0x50] sm:$0xff] %vm298_vm2, %v292_v60  ;;  %v287_v3 = vmax.f32 %v271_v61, 0.0  ;;  %v250_v5 = vmul.f32 %v380_v1, %v510_v21  ;;  %v258_v6 = vmul.f32 %v392_v2, %v510_v21  ;;  %v270_v7 = vadd.f32 %v515_v23, %v247_v63 }
  0xdb   :  { %v295_v4 = vmax.f32 %v279_v62, 0.0  ;;  %v278_v8 = vadd.f32 %v515_v23, %v255_v0  ;;  %v187_v9 = vpop.f32.mrf.mxu0  ;;  %v227_v10 = vpop.f32.mrf.mxu1 }
  0xdc   :  { %304 = vst.msk [vmem:[%s617_s4 + $0x28] sm:$0xff] %vm298_vm2, %v287_v3  ;;  %v273_v11 = vadd.f32 %v515_v23, %v250_v5  ;;  %v281_v12 = vadd.f32 %v515_v23, %v258_v6  ;;  %v249_v13 = vmul.f32 %v510_v21, %v187_v9  ;;  %v257_v14 = vmul.f32 %v510_v21, %v227_v10 }
  0xdd   :  { %312 = vst.msk [vmem:[%s617_s4 + $0x68] sm:$0xff] %vm298_vm2, %v295_v4  ;;  %v286_v15 = vmax.f32 %v270_v7, 0.0  ;;  %v294_v16 = vmax.f32 %v278_v8, 0.0 }
  0xde   :  { %v289_v17 = vmax.f32 %v273_v11, 0.0  ;;  %v297_v18 = vmax.f32 %v281_v12, 0.0  ;;  %v272_v19 = vadd.f32 %v515_v23, %v249_v13  ;;  %v280_v20 = vadd.f32 %v515_v23, %v257_v14 }
  0xdf   :  { %303 = vst.msk [vmem:[%s617_s4 + $0x20] sm:$0xff] %vm298_vm2, %v286_v15  ;;  %311 = vst.msk [vmem:[%s617_s4 + $0x60] sm:$0xff] %vm298_vm2, %v294_v16 }
  0xe0   :  { %306 = vst.msk [vmem:[%s617_s4 + $0x38] sm:$0xff] %vm298_vm2, %v289_v17  ;;  %314 = vst.msk [vmem:[%s617_s4 + $0x78] sm:$0xff] %vm298_vm2, %v297_v18  ;;  %v288_v21 = vmax.f32 %v272_v19, 0.0  ;;  %v296_v22 = vmax.f32 %v280_v20, 0.0 }
  0xe2   :  { %305 = vst.msk [vmem:[%s617_s4 + $0x30] sm:$0xff] %vm298_vm2, %v288_v21  ;;  %313 = vst.msk [vmem:[%s617_s4 + $0x70] sm:$0xff] %vm298_vm2, %v296_v22 }

// kernel: efficientformer_forward.12
= control target key start
LH: loop header
LB: loop body
LE: loop exit
PB: predicated region body
PF: predicated region fallthrough
CT: control target
= control target key end

     0   :  { %vm30_vm0 = vcmask 588800   ;;  %vm150_vm1 = vcmask 130048   ;;  %s302_s1 = inlined_call_operand.vmem [shape: f32[72,16], index: 1, kind: input, shape index: {}]   ;;  %s303_s0 = inlined_call_operand.vmem [shape: f32[32,72], index: 0, kind: input, shape index: {}]   ;;  %s304_s2 = inlined_call_operand.vmem [shape: f32[1,16], index: 2, kind: input, shape index: {}]   ;;  %s305_s3 = inlined_call_operand.vmem [shape: f32[1,16], index: 3, kind: input, shape index: {}]   ;;  %s306_s4 = inlined_call_operand.vmem [shape: f32[32,16], index: 4, kind: output, shape index: {}]  }
   0x1   :  { %v29_v0 = vld [vmem:[%s302_s1 + $0x40] sm:$0xff]  ;;  %v28_v1 = vld [vmem:[%s302_s1 + $0x38] sm:$0xff]  ;;  %v27_v2 = vld [vmem:[%s302_s1 + $0x30] sm:$0xff] }
   0x2   :  { %178 = vmatprep.subr.mxu0 %v29_v0  ;;  %202 = vmatprep.subr.mxu1 %v29_v0  ;;  %v26_v3 = vld [vmem:[%s302_s1 + $0x28] sm:$0xff]  ;;  %v25_v4 = vld [vmem:[%s302_s1 + $0x20] sm:$0xff]  ;;  %v24_v5 = vld [vmem:[%s302_s1 + $0x18] sm:$0xff] }
   0x3   :  { %179 = vmatpush3.msra.mxu0 %v29_v0  ;;  %211 = vmatpush3.msra.mxu1 %v29_v0  ;;  %v23_v6 = vld [vmem:[%s302_s1 + $0x10] sm:$0xff]  ;;  %v22_v7 = vld [vmem:[%s302_s1 + $0x8] sm:$0xff]  ;;  %v21_v8 = vld [vmem:[%s302_s1] sm:$0xff] }
   0x4   :  { %180 = vmatprep.subr.mxu0 %v28_v1  ;;  %203 = vmatprep.subr.mxu1 %v28_v1  ;;  %v17_v9 = vld [vmem:[%s303_s0] sm:$0xff]  ;;  %v19_v10 = vld [vmem:[%s303_s0 + $0x10] sm:$0xff]  ;;  %v18_v11 = vld [vmem:[%s303_s0 + $0x8] sm:$0xff] }
   0x5   :  { %181 = vmatpush3.msra.mxu0 %v28_v1  ;;  %212 = vmatpush3.msra.mxu1 %v28_v1  ;;  %v20_v12 = vld [vmem:[%s303_s0 + $0x18] sm:$0xff]  ;;  %v163_v13 = vld [vmem:[%s304_s2] ss:$0 sm:$0xff] }
   0x6   :  { %182 = vmatprep.subr.mxu0 %v27_v2  ;;  %204 = vmatprep.subr.mxu1 %v27_v2  ;;  %v164_v15 = vld [vmem:[%s305_s3] ss:$0 sm:$0xff] }
   0x7   :  { %183 = vmatpush3.msra.mxu0 %v27_v2  ;;  %213 = vmatpush3.msra.mxu1 %v27_v2 }
   0x8   :  { %184 = vmatprep.subr.mxu0 %v26_v3  ;;  %205 = vmatprep.subr.mxu1 %v26_v3 }
   0x9   :  { %185 = vmatpush3.msra.mxu0 %v26_v3  ;;  %214 = vmatpush3.msra.mxu1 %v26_v3 }
   0xa   :  { %186 = vmatprep.subr.mxu0 %v25_v4  ;;  %206 = vmatprep.subr.mxu1 %v25_v4 }
   0xb   :  { %187 = vmatpush3.msra.mxu0 %v25_v4  ;;  %215 = vmatpush3.msra.mxu1 %v25_v4 }
   0xc   :  { %188 = vmatprep.subr.mxu0 %v24_v5  ;;  %207 = vmatprep.subr.mxu1 %v24_v5 }
   0xd   :  { %189 = vmatpush3.msra.mxu0 %v24_v5  ;;  %216 = vmatpush3.msra.mxu1 %v24_v5 }
   0xe   :  { %190 = vmatprep.subr.mxu0 %v23_v6  ;;  %208 = vmatprep.subr.mxu1 %v23_v6 }
   0xf   :  { %191 = vmatpush3.msra.mxu0 %v23_v6  ;;  %217 = vmatpush3.msra.mxu1 %v23_v6 }
  0x10   :  { %192 = vmatprep.subr.mxu0 %v22_v7  ;;  %209 = vmatprep.subr.mxu1 %v22_v7 }
  0x11   :  { %193 = vmatpush3.msra.mxu0 %v22_v7  ;;  %218 = vmatpush3.msra.mxu1 %v22_v7 }
  0x12   :  { %194 = vmatprep.subr.mxu0 %v21_v8  ;;  %210 = vmatprep.subr.mxu1 %v21_v8 }
  0x13   :  { %195 = vmatpush3.msra.mxu0 %v21_v8  ;;  %219 = vmatpush3.msra.mxu1 %v21_v8 }
  0x14   :  { %196 = vmatprep.mubr.msk.f32.mxu0 %vm30_vm0, %v17_v9  ;;  %199 = vmatprep.mubr.msk.f32.mxu1 %vm30_vm0, %v19_v10 }
  0x15   :  { %197 = vmatmul.mubr.msk.f32.vlgmr.msra.gmra.mxu0 %vm30_vm0, %v18_v11  ;;  %200 = vmatmul.mubr.msk.f32.vlgmr.msra.gmra.mxu1 %vm30_vm0, %v20_v12 }
  0xd5   :  { %v198_v14 = vpop.f32.mrf.mxu0  ;;  %v201_v16 = vpop.f32.mrf.mxu1 }
  0xd6   :  { %v136_v17 = vmul.f32 %v198_v14, %v163_v13  ;;  %v138_v18 = vmul.f32 %v201_v16, %v163_v13 }
  0xd7   :  { %v109_v19 = vpop.f32.mrf.mxu0  ;;  %v119_v20 = vpop.f32.mrf.mxu1 }
  0xd8   :  { %v147_v21 = vadd.f32 %v164_v15, %v136_v17  ;;  %v149_v22 = vadd.f32 %v164_v15, %v138_v18  ;;  %v135_v23 = vmul.f32 %v163_v13, %v109_v19  ;;  %v137_v24 = vmul.f32 %v163_v13, %v119_v20 }
  0xda   :  { %152 = vst.msk [vmem:[%s306_s4 + $0x8] sm:$0xff] %vm150_vm1, %v147_v21  ;;  %154 = vst.msk [vmem:[%s306_s4 + $0x18] sm:$0xff] %vm150_vm1, %v149_v22  ;;  %v146_v25 = vadd.f32 %v164_v15, %v135_v23  ;;  %v148_v26 = vadd.f32 %v164_v15, %v137_v24 }
  0xdc   :  { %151 = vst.msk [vmem:[%s306_s4] sm:$0xff] %vm150_vm1, %v146_v25  ;;  %153 = vst.msk [vmem:[%s306_s4 + $0x10] sm:$0xff] %vm150_vm1, %v148_v26 }

// kernel: efficientformer_forward.11
= control target key start
LH: loop header
LB: loop body
LE: loop exit
PB: predicated region body
PF: predicated region fallthrough
CT: control target
= control target key end

     0   :  { %s1353_s21 = smov 0   ;;  %s1648_s0 = inlined_call_operand.vmem [shape: f32[2,82,8], index: 0, kind: input, shape index: {}]   ;;  %s1649_s1 = inlined_call_operand.vmem [shape: f32[64,1], index: 1, kind: input, shape index: {}]   ;;  %s1650_s2 = inlined_call_operand.vmem [shape: f32[64,1], index: 2, kind: input, shape index: {}]   ;;  %s1651_s3 = inlined_call_operand.vmem [shape: f32[64,1], index: 3, kind: input, shape index: {}]   ;;  %s1652_s4 = inlined_call_operand.vmem [shape: f32[1,8], index: 4, kind: input, shape index: {}]   ;;  %s1653_s5 = inlined_call_operand.vmem [shape: f32[8,32], index: 5, kind: input, shape index: {}]   ;;  %s1654_s6 = inlined_call_operand.vmem [shape: f32[1,32], index: 6, kind: input, shape index: {}]   ;;  %s1655_s7 = inlined_call_operand.vmem [shape: f32[1,32], index: 7, kind: input, shape index: {}]   ;;  %s1656_s8 = inlined_call_operand.vmem [shape: f32[32,8], index: 8, kind: input, shape index: {}]   ;;  %s1657_s9 = inlined_call_operand.vmem [shape: f32[1,8], index: 9, kind: input, shape index: {}]   ;;  %s1658_s10 = inlined_call_operand.vmem [shape: f32[1,8], index: 10, kind: input, shape index: {}]   ;;  %s1659_s11 = inlined_call_operand.vmem [shape: f32[1,8], index: 11, kind: input, shape index: {}]   ;;  %s1660_s12 = inlined_call_operand.vmem [shape: f32[2,82,8], index: 12, kind: output, shape index: {}]  }
   0x1 LB: > { %s1163_s22 = sadd.s32 4294967295, %s1284_s21   ;;  %p1167_p0 = scmp.ge.s32.totalorder %s1284_s21, 1  ;;  %s1284_s21 = sphi %s1353_s21, %s22_s21  }
   0x2   : > { %p362_p1 = scmp.lt.s32.totalorder %s1284_s21, 3 }
   0x4   : > { %p363_p2 = pnand %p1167_p0, %p362_p1 }
   0x5   : > { %p404_p3 = scmp.lt.s32.totalorder (!%p363_p2), %s1163_s22, 1 }
   0x6   : > { %366 = sbr.rel (%p363_p2) target bundleno = 614 (0x266), region = 68 }
   0xb   : > { %v556_v0 = vld [vmem:[%s1651_s3] sm:$0xff]  ;;  %v1286_v2 = vmov 0   ;;  %v557_v3 = vld [vmem:[%s1651_s3 + $0x8] sm:$0xff]  ;;  %v495_v5 = vld [vmem:[%s1650_s2 + $0x18] sm:$0xff]  ;;  %s1662_s22 = smov (!%p404_p3, %s1163_s22), 1  ;;  %vm708_vm0 = vcmask 64512  }
   0xc   : > { %v492_v1 = vld [vmem:[%s1650_s2] sm:$0xff]  ;;  %1261 = vset.pattern.permute.xlu1 %v1286_v2  ;;  %1260 = vset.pattern.permute.xlu0 %v1286_v2  ;;  %v493_v4 = vld [vmem:[%s1650_s2 + $0x8] sm:$0xff]  ;;  %v494_v6 = vld [vmem:[%s1650_s2 + $0x10] sm:$0xff]  ;;  %s1249_s25 = smul.u32 88, %s1662_s22  ;;  %vm912_vm1 = vcmask 261120   ;;  %vm1096_vm2 = vcmask 57344  }
   0xd   : > { %566 = vperm.xlu1 %1261, %v556_v0   ;;  %502 = vperm.xlu0 %1260, %v492_v1   ;;  %v620_v7 = vld [vmem:[%s1649_s1] sm:$0xff]  ;;  %v558_v8 = vld [vmem:[%s1651_s3 + $0x10] sm:$0xff]  ;;  %v621_v9 = vld [vmem:[%s1649_s1 + $0x8] sm:$0xff] }
   0xe   : > { %v559_v10 = vld [vmem:[%s1651_s3 + $0x18] sm:$0xff]  ;;  %v497_v11 = vld [vmem:[%s1650_s2 + $0x28] sm:$0xff]  ;;  %v496_v12 = vld [vmem:[%s1650_s2 + $0x20] sm:$0xff]  ;;  %s1448_s28 = scalar_lea.vmem %s1648_s0, %s1249_s25  ;;  %s1604_s30 = scalar_lea.vmem %s1660_s12, %s1249_s25 }
   0xf   : > { %v707_v13 = vld [vmem:[%s1653_s5] sm:$0xff]  ;;  %v622_v14 = vld [vmem:[%s1649_s1 + $0x10] sm:$0xff]  ;;  %v623_v16 = vld [vmem:[%s1649_s1 + $0x18] sm:$0xff] }
  0x10   : > { %1215 = vmatprep.subr.mxu0 %v707_v13  ;;  %v560_v15 = vld [vmem:[%s1651_s3 + $0x20] sm:$0xff]  ;;  %v561_v17 = vld [vmem:[%s1651_s3 + $0x28] sm:$0xff]  ;;  %v499_v18 = vld [vmem:[%s1650_s2 + $0x38] sm:$0xff] }
  0x11   : > { %571 = vperm.xlu1 %1261, %v557_v3   ;;  %507 = vperm.xlu0 %1260, %v493_v4   ;;  %v498_v19 = vld [vmem:[%s1650_s2 + $0x30] sm:$0xff]  ;;  %v624_v20 = vld [vmem:[%s1649_s1 + $0x20] sm:$0xff]  ;;  %v625_v22 = vld [vmem:[%s1649_s1 + $0x28] sm:$0xff] }
  0x12   : > { %1216 = vmatpush3.msra.mxu0 %v707_v13  ;;  %v562_v21 = vld [vmem:[%s1651_s3 + $0x30] sm:$0xff]  ;;  %v563_v23 = vld [vmem:[%s1651_s3 + $0x38] sm:$0xff]  ;;  %v422_v26 = vld [vmem:[%s1448_s28] sm:$0xff] }
  0x13   : > { %v627_v24 = vld [vmem:[%s1649_s1 + $0x38] sm:$0xff]  ;;  %v626_v25 = vld [vmem:[%s1649_s1 + $0x30] sm:$0xff]  ;;  %v423_v27 = vld [vmem:[%s1448_s28 + $0x8] sm:$0xff] }
  0x14   : > { %v466_v28 = vld [vmem:[%s1448_s28 + $0x2] sm:$0xff]  ;;  %v467_v29 = vld [vmem:[%s1448_s28 + $0xa] sm:$0xff]  ;;  %v431_v30 = vadd.f32 %v423_v27, %v422_v26  ;;  %v468_v39 = vld [vmem:[%s1448_s28 + $0x12] sm:$0xff] }
  0x15   : > { %517 = vperm.xlu1 %1261, %v495_v5   ;;  %512 = vperm.xlu0 %1260, %v494_v6   ;;  %v1455_v31 = vld [vmem:[%s1448_s28 + $0x9] sm:$0xff]  ;;  %v448_v33 = vld [vmem:[%s1448_s28 + $0x1] sm:$0xff]  ;;  %v475_v34 = vadd.f32 %v467_v29, %v466_v28  ;;  %v1462_v41 = vld [vmem:[%s1448_s28 + $0x11] sm:$0xff]  ;;  %v476_v51 = vadd.f32 %v468_v39, %v467_v29 }
  0x16   : > { %v424_v32 = vld [vmem:[%s1448_s28 + $0x10] sm:$0xff]  ;;  %v449_v36 = vadd.f32 %v448_v33, %v1455_v31  ;;  %v425_v42 = vld [vmem:[%s1448_s28 + $0x18] sm:$0xff]  ;;  %v450_v43 = vadd.f32 %v1462_v41, %v1455_v31  ;;  %v426_v61 = vld [vmem:[%s1448_s28 + $0x20] sm:$0xff] }
  0x17   : > { %v440_v35 = vadd.f32 %v431_v30, %v424_v32  ;;  %v432_v37 = vadd.f32 %v424_v32, %v423_v27  ;;  %v484_v44 = vadd.f32 %v475_v34, %v468_v39  ;;  %v1469_v50 = vld [vmem:[%s1448_s28 + $0x19] sm:$0xff]  ;;  %v433_v60 = vadd.f32 %v425_v42, %v424_v32  ;;  %v470_v4 = vld [vmem:[%s1448_s28 + $0x22] sm:$0xff] }
  0x18   : > { %v458_v45 = vadd.f32 %v449_v36, %v1462_v41  ;;  %v469_v52 = vld [vmem:[%s1448_s28 + $0x1a] sm:$0xff]  ;;  %v459_v55 = vadd.f32 %v450_v43, %v1469_v50  ;;  %v451_v1 = vadd.f32 %v1469_v50, %v1462_v41 }
  0x19   : > { %630 = vperm.xlu1 %1261, %v620_v7   ;;  %576 = vperm.xlu0 %1260, %v558_v8   ;;  %v441_v47 = vadd.f32 %v432_v37, %v425_v42  ;;  %v485_v59 = vadd.f32 %v476_v51, %v469_v52  ;;  %v477_v0 = vadd.f32 %v469_v52, %v468_v39  ;;  %v1478_v6 = vld [vmem:[%s1448_s28 + $0x21] sm:$0xff]  ;;  %v428_v37 = vld [vmem:[%s1448_s28 + $0x30] sm:$0xff] }
  0x1a   : > { %v434_v7 = vadd.f32 %v426_v61, %v425_v42  ;;  %v442_v8 = vadd.f32 %v433_v60, %v426_v61  ;;  %v473_v60 = vld [vmem:[%s1448_s28 + $0x3a] sm:$0xff] }
  0x1b   : > { %v486_v13 = vadd.f32 %v477_v0, %v470_v4 }
  0x1d   : > { %635 = vperm.xlu1 %1261, %v621_v9   ;;  %581 = vperm.xlu0 %1260, %v559_v10   ;;  %v427_v10 = vld [vmem:[%s1448_s28 + $0x28] sm:$0xff] }
  0x21   : > { %527 = vperm.xlu1 %1261, %v497_v11   ;;  %522 = vperm.xlu0 %1260, %v496_v12   ;;  %v1484_v11 = vld [vmem:[%s1652_s4] ss:$0 sm:$0xff] }
  0x25   : > { %640 = vperm.xlu1 %1261, %v622_v14   ;;  %586 = vperm.xlu0 %1260, %v560_v15   ;;  %v478_v15 = vadd.f32 %v470_v4, %v469_v52 }
  0x29   : > { %645 = vperm.xlu1 %1261, %v623_v16   ;;  %591 = vperm.xlu0 %1260, %v561_v17   ;;  %v452_v16 = vadd.f32 %v1478_v6, %v1469_v50  ;;  %v460_v17 = vadd.f32 %v451_v1, %v1478_v6 }
  0x2d   : > { %537 = vperm.xlu1 %1261, %v499_v18   ;;  %532 = vperm.xlu0 %1260, %v498_v19  }
  0x31   : > { %650 = vperm.xlu1 %1261, %v624_v20   ;;  %596 = vperm.xlu0 %1260, %v562_v21   ;;  %v471_v20 = vld [vmem:[%s1448_s28 + $0x2a] sm:$0xff] }
  0x32   : > { %v1492_v21 = vld [vmem:[%s1448_s28 + $0x29] sm:$0xff]  ;;  %v487_v28 = vadd.f32 %v478_v15, %v471_v20  ;;  %v479_v43 = vadd.f32 %v471_v20, %v470_v4 }
  0x33   : > { %v461_v30 = vadd.f32 %v452_v16, %v1492_v21  ;;  %v453_v52 = vadd.f32 %v1492_v21, %v1478_v6 }
  0x35   : > { %655 = vperm.xlu1 %1261, %v625_v22   ;;  %601 = vperm.xlu0 %1260, %v563_v23   ;;  %v443_v22 = vadd.f32 %v434_v7, %v427_v10  ;;  %v421_v7 = vld [vmem:[%s1448_s28 + $0x41] sm:$0xff] }
  0x39   : > { %665 = vperm.xlu1 %1261, %v627_v24   ;;  %660 = vperm.xlu0 %1260, %v626_v25  }
  0x88   : > { %v567_v38 = vpop.permute.xlu1 %566  ;;  %v503_v40 = vpop.permute.xlu0 %502 }
  0x89   : > { %v540_v46 = vmul.f32 %v503_v40, %v440_v35  ;;  %v604_v53 = vmul.f32 %v567_v38, %v484_v44  ;;  %v435_v38 = vadd.f32 %v427_v10, %v426_v61  ;;  %v1508_v40 = vld [vmem:[%s1448_s28 + $0x31] sm:$0xff]  ;;  %v436_v44 = vadd.f32 %v428_v37, %v427_v10 }
  0x8b   : > { %v548_v54 = vadd.f32 %v540_v46, %v458_v45  ;;  %v444_v51 = vadd.f32 %v435_v38, %v428_v37 }
  0x8c   : > { %v572_v48 = vpop.permute.xlu1 %571  ;;  %v508_v49 = vpop.permute.xlu0 %507 }
  0x8d   : > { %v541_v56 = vmul.f32 %v508_v49, %v441_v47  ;;  %v612_v63 = vadd.f32 %v604_v53, %v548_v54  ;;  %v605_v5 = vmul.f32 %v572_v48, %v485_v59  ;;  %v472_v47 = vld [vmem:[%s1448_s28 + $0x32] sm:$0xff]  ;;  %v454_v54 = vadd.f32 %v1508_v40, %v1492_v21 }
  0x8e   : > { %v429_v49 = vld [vmem:[%s1448_s28 + $0x38] sm:$0xff]  ;;  %v481_v15 = vadd.f32 %v473_v60, %v472_v47 }
  0x8f   : > { %v549_v62 = vadd.f32 %v541_v56, %v459_v55  ;;  %v480_v55 = vadd.f32 %v472_v47, %v471_v20  ;;  %v1520_v56 = vld [vmem:[%s1448_s28 + $0x39] sm:$0xff]  ;;  %v445_v61 = vadd.f32 %v436_v44, %v429_v49  ;;  %v437_v1 = vadd.f32 %v429_v49, %v428_v37 }
  0x90   : > { %v518_v57 = vpop.permute.xlu1 %517  ;;  %v513_v58 = vpop.permute.xlu0 %512 }
  0x91   : > { %v613_v14 = vadd.f32 %v605_v5, %v549_v62  ;;  %v542_v23 = vmul.f32 %v513_v58, %v442_v8  ;;  %v543_v34 = vmul.f32 %v518_v57, %v443_v22  ;;  %v488_v58 = vadd.f32 %v479_v43, %v472_v47  ;;  %v439_v8 = vld [vmem:[%s1448_s28 + $0x48] sm:$0xff] }
  0x92   : > { %v489_v10 = vadd.f32 %v480_v55, %v473_v60  ;;  %v455_v22 = vadd.f32 %v1520_v56, %v1508_v40 }
  0x93   : > { %v550_v35 = vadd.f32 %v542_v23, %v460_v17  ;;  %v551_v48 = vadd.f32 %v543_v34, %v461_v30  ;;  %v474_v23 = vld [vmem:[%s1448_s28 + $0x42] sm:$0xff] }
  0x94   : > { %v631_v2 = vpop.permute.xlu1 %630  ;;  %v577_v3 = vpop.permute.xlu0 %576  ;;  %v464_v38 = vadd.f32 %v455_v22, %v421_v7 }
  0x95   : > { %v668_v9 = vmul.f32 %v631_v2, %v612_v63  ;;  %v606_v26 = vmul.f32 %v577_v3, %v486_v13  ;;  %v462_v2 = vadd.f32 %v453_v52, %v1508_v40 }
  0x97   : > { %v677_v12 = vsub.f32 %v668_v9, %v1455_v31  ;;  %v614_v42 = vadd.f32 %v606_v26, %v550_v35  ;;  %v463_v9 = vadd.f32 %v454_v54, %v1520_v56  ;;  %v457_v26 = vld [vmem:[%s1448_s28 + $0x49] sm:$0xff]  ;;  %v490_v35 = vadd.f32 %v481_v15, %v474_v23 }
  0x98   : > { %v636_v18 = vpop.permute.xlu1 %635  ;;  %v582_v19 = vpop.permute.xlu0 %581 }
  0x99   : > { %v669_v24 = vmul.f32 %v636_v18, %v613_v14  ;;  %v691_v25 = vmul.f32 %v1484_v11, %v677_v12  ;;  %v456_v18 = vadd.f32 %v421_v7, %v1520_v56 }
  0x9b   : > { %v678_v27 = vsub.f32 %v669_v24, %v1462_v41  ;;  %v1497_v29 = vadd.f32 %v691_v25, %v1455_v31  ;;  %v607_v31 = vmul.f32 %v582_v19, %v487_v28  ;;  %v483_v28 = vld [vmem:[%s1448_s28 + $0x4a] sm:$0xff] }
  0x9c   : > { %v528_v32 = vpop.permute.xlu1 %527  ;;  %v523_v33 = vpop.permute.xlu0 %522 }
  0x9d   : > { %v692_v36 = vmul.f32 %v1484_v11, %v678_v27  ;;  %1217 = vmatprep.mubr.msk.f32.mxu0 %vm708_vm0, %v1497_v29  ;;  %v615_v59 = vadd.f32 %v607_v31, %v551_v48  ;;  %v544_v3 = vmul.f32 %v523_v33, %v444_v51  ;;  %v545_v24 = vmul.f32 %v528_v32, %v445_v61 }
  0x9e   : > { %v482_v27 = vadd.f32 %v474_v23, %v473_v60 }
  0x9f   : > { %v1505_v39 = vadd.f32 %v692_v36, %v1462_v41  ;;  %v430_v41 = vld [vmem:[%s1448_s28 + $0x40] sm:$0xff]  ;;  %v552_v25 = vadd.f32 %v544_v3, %v462_v2  ;;  %v465_v36 = vadd.f32 %v457_v26, %v456_v18 }
  0xa0   : > { %v641_v45 = vpop.permute.xlu1 %640  ;;  %v587_v46 = vpop.permute.xlu0 %586  ;;  %v438_v0 = vadd.f32 %v430_v41, %v429_v49  ;;  %v446_v20 = vadd.f32 %v437_v1, %v430_v41 }
  0xa1   : > { %v670_v53 = vmul.f32 %v641_v45, %v614_v42  ;;  %1218 = vmatmul.mubr.msk.f32.vlgmr.msra.gmra.mxu0 %vm708_vm0, %v1505_v39  ;;  %v608_v13 = vmul.f32 %v587_v46, %v488_v58  ;;  %v553_v42 = vadd.f32 %v545_v24, %v463_v9  ;;  %v491_v45 = vadd.f32 %v483_v28, %v482_v27  ;;  %v1179_v9 = vld [vmem:[%s1654_s6] ss:$0 sm:$0xff] }
  0xa2   : > { %v447_v17 = vadd.f32 %v439_v8, %v438_v0 }
  0xa3   : > { %v679_v57 = vsub.f32 %v670_v53, %v1469_v50  ;;  %v616_v34 = vadd.f32 %v608_v13, %v552_v25  ;;  %v1180_v13 = vld [vmem:[%s1655_s7] ss:$0 sm:$0xff] }
  0xa4   : > { %v646_v62 = vpop.permute.xlu1 %645  ;;  %v592_v63 = vpop.permute.xlu0 %591 }
  0xa5   : > { %v693_v4 = vmul.f32 %v1484_v11, %v679_v57  ;;  %v671_v5 = vmul.f32 %v646_v62, %v615_v59  ;;  %v609_v33 = vmul.f32 %v592_v63, %v489_v10 }
  0xa7   : > { %v1530_v12 = vadd.f32 %v693_v4, %v1469_v50  ;;  %v680_v14 = vsub.f32 %v671_v5, %v1478_v6 }
  0xa8   : > { %v538_v16 = vpop.permute.xlu1 %537  ;;  %v533_v19 = vpop.permute.xlu0 %532 }
  0xa9   : > { %v694_v50 = vmul.f32 %v1484_v11, %v680_v14  ;;  %1220 = vmatprep.mubr.msk.f32.mxu0 %vm708_vm0, %v1530_v12  ;;  %v547_v37 = vmul.f32 %v538_v16, %v447_v17  ;;  %v546_v43 = vmul.f32 %v533_v19, %v446_v20 }
  0xab   : > { %v1543_v30 = vadd.f32 %v694_v50, %v1478_v6  ;;  %v617_v6 = vadd.f32 %v609_v33, %v553_v42  ;;  %v555_v48 = vadd.f32 %v547_v37, %v465_v36  ;;  %v554_v52 = vadd.f32 %v546_v43, %v464_v38 }
  0xac   : > { %v651_v31 = vpop.permute.xlu1 %650  ;;  %v597_v32 = vpop.permute.xlu0 %596 }
  0xad   : > { %v672_v44 = vmul.f32 %v651_v31, %v616_v34  ;;  %1221 = vmatmul.mubr.msk.f32.gmra.mxu0 %vm708_vm0, %v1543_v30  ;;  %v610_v47 = vmul.f32 %v597_v32, %v490_v35 }
  0xaf   : > { %v681_v46 = vsub.f32 %v672_v44, %v1492_v21  ;;  %v618_v59 = vadd.f32 %v610_v47, %v554_v52 }
  0xb0   : > { %v656_v49 = vpop.permute.xlu1 %655  ;;  %v602_v51 = vpop.permute.xlu0 %601 }
  0xb1   : > { %v695_v53 = vmul.f32 %v1484_v11, %v681_v46  ;;  %v673_v41 = vmul.f32 %v656_v49, %v617_v6  ;;  %v611_v54 = vmul.f32 %v602_v51, %v491_v45 }
  0xb3   : > { %v1550_v55 = vadd.f32 %v695_v53, %v1492_v21  ;;  %v682_v57 = vsub.f32 %v673_v41, %v1508_v40  ;;  %v619_v58 = vadd.f32 %v611_v54, %v555_v48 }
  0xb4   : > { %v666_v60 = vpop.permute.xlu1 %665  ;;  %v661_v61 = vpop.permute.xlu0 %660 }
  0xb5   : > { %v696_v62 = vmul.f32 %v1484_v11, %v682_v57  ;;  %v675_v63 = vmul.f32 %v666_v60, %v619_v58  ;;  %v674_v0 = vmul.f32 %v661_v61, %v618_v59  ;;  %1223 = vmatprep.mubr.msk.f32.mxu0 %vm708_vm0, %v1550_v55 }
  0xb7   : > { %v1557_v1 = vadd.f32 %v696_v62, %v1508_v40  ;;  %v684_v2 = vsub.f32 %v675_v63, %v421_v7  ;;  %v683_v21 = vsub.f32 %v674_v0, %v1520_v56  ;;  %v911_v40 = vld [vmem:[%s1656_s8 + $0x18] sm:$0xff] }
  0xb8   : > { %1229 = vmatprep.subr.mxu1 %v911_v40 }
  0xb9   : > { %v698_v3 = vmul.f32 %v1484_v11, %v684_v2  ;;  %v697_v4 = vmul.f32 %v1484_v11, %v683_v21  ;;  %1224 = vmatmul.mubr.msk.f32.gmra.mxu0 %vm708_vm0, %v1557_v1  ;;  %1230 = vmatpush3.msra.mxu1 %v911_v40  ;;  %v910_v11 = vld [vmem:[%s1656_s8 + $0x10] sm:$0xff] }
  0xba   : > { %1231 = vmatprep.subr.mxu1 %v910_v11 }
  0xbb   : > { %v1564_v5 = vadd.f32 %v698_v3, %v421_v7  ;;  %v1567_v8 = vadd.f32 %v697_v4, %v1520_v56  ;;  %1232 = vmatpush3.msra.mxu1 %v910_v11  ;;  %v909_v56 = vld [vmem:[%s1656_s8 + $0x8] sm:$0xff]  ;;  %v908_v7 = vld [vmem:[%s1656_s8] sm:$0xff] }
  0xbc   : > { %1233 = vmatprep.subr.mxu1 %v909_v56 }
  0xbd   : > { %1226 = vmatprep.mubr.msk.f32.mxu0 %vm708_vm0, %v1567_v8  ;;  %1234 = vmatpush3.msra.mxu1 %v909_v56 }
  0xbe   : > { %1227 = vmatmul.mubr.msk.f32.gmra.mxu0 %vm708_vm0, %v1564_v5  ;;  %1235 = vmatprep.subr.mxu1 %v908_v7 }
  0xbf   : > { %1236 = vmatpush3.msra.mxu1 %v908_v7 }
 0x161   : > { %v1219_v10 = vpop.f32.mrf.mxu0 }
 0x162   : > { %v846_v14 = vmul.f32 %v1219_v10, %v1179_v9 }
 0x163   : > { %v799_v15 = vpop.f32.mrf.mxu0 }
 0x164   : > { %v861_v16 = vadd.f32 %v1180_v13, %v846_v14  ;;  %v845_v17 = vmul.f32 %v1179_v9, %v799_v15 }
 0x166   : > { %v877_v18 = vmul.f32 0.70710677, %v861_v16  ;;  %v860_v19 = vadd.f32 %v1180_v13, %v845_v17  ;;  %v869_v38 = vmul.f32 0.5, %v861_v16 }
 0x168   : > { %1262 = verf.f32 %v877_v18  ;;  %v876_v20 = vmul.f32 0.70710677, %v860_v19  ;;  %v868_v36 = vmul.f32 0.5, %v860_v19 }
 0x16a   : > { %1264 = verf.f32 %v876_v20 }
 0x16d   : > { %v1222_v22 = vpop.f32.mrf.mxu0 }
 0x16e   : > { %v848_v23 = vmul.f32 %v1222_v22, %v1179_v9  ;;  %v1287_v22 = vmov 0.0  }
 0x16f   : > { %v809_v24 = vpop.f32.mrf.mxu0  ;;  %1095 = vst.msk [vmem:[%s1604_s30] sm:$0xff] %vm708_vm0, %v1287_v22  ;;  %1106 = vst.msk [vmem:[%s1604_s30 + $0x49] sm:$0xff] %vm708_vm0, %v1287_v22 }
 0x170   : > { %v863_v25 = vadd.f32 %v1180_v13, %v848_v23  ;;  %v847_v50 = vmul.f32 %v1179_v9, %v809_v24  ;;  %1097 = vst.msk [vmem:[%s1604_s30 + $0x8] sm:$0x1] %vm1096_vm2, %v1287_v22  ;;  %1107 = vst.msk [vmem:[%s1604_s30 + $0x51] sm:$0x1] %vm1096_vm2, %v1287_v22  ;;  %v1189_v23 = vld [vmem:[%s1657_s9] ss:$0 sm:$0xff] }
 0x172   : > { %v879_v26 = vmul.f32 0.70710677, %v863_v25  ;;  %v862_v27 = vadd.f32 %v1180_v13, %v847_v50  ;;  %v871_v63 = vmul.f32 0.5, %v863_v25  ;;  %v1190_v25 = vld [vmem:[%s1658_s10] ss:$0 sm:$0xff] }
 0x174   : > { %1266 = verf.f32 %v879_v26  ;;  %v878_v28 = vmul.f32 0.70710677, %v862_v27  ;;  %v870_v61 = vmul.f32 0.5, %v862_v27  ;;  %v1191_v26 = vld [vmem:[%s1659_s11] ss:$0 sm:$0xff] }
 0x175   : > { %v1263_v33 = vpop.eup %1262 }
 0x176   : > { %1268 = verf.f32 %v878_v28  ;;  %v893_v35 = vadd.f32 1.0, %v1263_v33 }
 0x177   : > { %v1265_v34 = vpop.eup %1264 }
 0x178   : > { %v892_v37 = vadd.f32 1.0, %v1265_v34  ;;  %v901_v43 = vmul.f32 %v893_v35, %v869_v38 }
 0x179   : > { %v1225_v31 = vpop.f32.mrf.mxu0 }
 0x17a   : > { %v850_v32 = vmul.f32 %v1225_v31, %v1179_v9  ;;  %v900_v42 = vmul.f32 %v892_v37, %v868_v36 }
 0x17b   : > { %v819_v44 = vpop.f32.mrf.mxu0 }
 0x17c   : > { %v865_v45 = vadd.f32 %v1180_v13, %v850_v32  ;;  %v849_v46 = vmul.f32 %v1179_v9, %v819_v44  ;;  %1237 = vmatprep.mubr.msk.f32.mxu1 %vm912_vm1, %v900_v42 }
 0x17d   : > { %1238 = vmatmul.mubr.msk.f32.vlgmr.msra.gmra.mxu1 %vm912_vm1, %v901_v43 }
 0x17e   : > { %v881_v47 = vmul.f32 0.70710677, %v865_v45  ;;  %v864_v6 = vadd.f32 %v1180_v13, %v849_v46  ;;  %v1228_v48 = vpop.f32.mrf.mxu0  ;;  %v873_v7 = vmul.f32 0.5, %v865_v45 }
 0x17f   : > { %v852_v49 = vmul.f32 %v1228_v48, %v1179_v9 }
 0x180   : > { %1270 = verf.f32 %v881_v47  ;;  %v880_v51 = vmul.f32 0.70710677, %v864_v6  ;;  %v829_v52 = vpop.f32.mrf.mxu0  ;;  %v872_v11 = vmul.f32 0.5, %v864_v6 }
 0x181   : > { %v1267_v53 = vpop.eup %1266  ;;  %v867_v41 = vadd.f32 %v1180_v13, %v852_v49  ;;  %v851_v54 = vmul.f32 %v1179_v9, %v829_v52 }
 0x182   : > { %1272 = verf.f32 %v880_v51  ;;  %v895_v58 = vadd.f32 1.0, %v1267_v53 }
 0x183   : > { %v1269_v57 = vpop.eup %1268  ;;  %v883_v59 = vmul.f32 0.70710677, %v867_v41  ;;  %v866_v60 = vadd.f32 %v1180_v13, %v851_v54  ;;  %v875_v18 = vmul.f32 0.5, %v867_v41 }
 0x184   : > { %v894_v62 = vadd.f32 1.0, %v1269_v57  ;;  %v903_v21 = vmul.f32 %v895_v58, %v871_v63 }
 0x185   : > { %1274 = verf.f32 %v883_v59  ;;  %v882_v0 = vmul.f32 0.70710677, %v866_v60  ;;  %v874_v16 = vmul.f32 0.5, %v866_v60 }
 0x186   : > { %v902_v2 = vmul.f32 %v894_v62, %v870_v61 }
 0x187   : > { %1276 = verf.f32 %v882_v0 }
 0x188   : > { %1240 = vmatprep.mubr.msk.f32.mxu1 %vm912_vm1, %v902_v2 }
 0x189   : > { %1241 = vmatmul.mubr.msk.f32.gmra.mxu1 %vm912_vm1, %v903_v21 }
 0x18d   : > { %v1271_v3 = vpop.eup %1270 }
 0x18e   : > { %v897_v40 = vadd.f32 1.0, %v1271_v3 }
 0x18f   : > { %v1273_v4 = vpop.eup %1272 }
 0x190   : > { %v896_v56 = vadd.f32 1.0, %v1273_v4  ;;  %v905_v13 = vmul.f32 %v897_v40, %v873_v7 }
 0x192   : > { %v1275_v9 = vpop.eup %1274  ;;  %v904_v10 = vmul.f32 %v896_v56, %v872_v11 }
 0x193   : > { %v899_v15 = vadd.f32 1.0, %v1275_v9 }
 0x194   : > { %v1277_v14 = vpop.eup %1276  ;;  %1243 = vmatprep.mubr.msk.f32.mxu1 %vm912_vm1, %v904_v10 }
 0x195   : > { %v898_v17 = vadd.f32 1.0, %v1277_v14  ;;  %1244 = vmatmul.mubr.msk.f32.gmra.mxu1 %vm912_vm1, %v905_v13  ;;  %v907_v20 = vmul.f32 %v899_v15, %v875_v18 }
 0x197   : > { %v906_v19 = vmul.f32 %v898_v17, %v874_v16 }
 0x199   : > { %1246 = vmatprep.mubr.msk.f32.mxu1 %vm912_vm1, %v906_v19 }
 0x19a   : > { %1247 = vmatmul.mubr.msk.f32.gmra.mxu1 %vm912_vm1, %v907_v20 }
 0x23d   : > { %v1239_v24 = vpop.f32.mrf.mxu1 }
 0x23e   : > { %v1050_v50 = vmul.f32 %v1239_v24, %v1189_v23 }
 0x23f   : > { %v1003_v27 = vpop.f32.mrf.mxu1 }
 0x240   : > { %v1065_v28 = vadd.f32 %v1190_v25, %v1050_v50  ;;  %v1049_v33 = vmul.f32 %v1189_v23, %v1003_v27 }
 0x242   : > { %v1080_v34 = vmul.f32 %v1191_v26, %v1065_v28  ;;  %v1064_v35 = vadd.f32 %v1190_v25, %v1049_v33 }
 0x244   : > { %v1088_v36 = vadd.f32 %v1080_v34, %v1505_v39  ;;  %v1079_v37 = vmul.f32 %v1191_v26, %v1064_v35 }
 0x246   : > { %1099 = vst.msk [vmem:[%s1604_s30 + $0x11] sm:$0xff] %vm708_vm0, %v1088_v36  ;;  %v1087_v38 = vadd.f32 %v1079_v37, %v1497_v29 }
 0x248   : > { %1098 = vst.msk [vmem:[%s1604_s30 + $0x9] sm:$0xff] %vm708_vm0, %v1087_v38 }
 0x249   : > { %v1242_v31 = vpop.f32.mrf.mxu1 }
 0x24a   : > { %v1052_v32 = vmul.f32 %v1242_v31, %v1189_v23 }
 0x24b   : > { %v1013_v42 = vpop.f32.mrf.mxu1 }
 0x24c   : > { %v1067_v43 = vadd.f32 %v1190_v25, %v1052_v32  ;;  %v1051_v44 = vmul.f32 %v1189_v23, %v1013_v42 }
 0x24e   : > { %v1082_v45 = vmul.f32 %v1191_v26, %v1067_v43  ;;  %v1066_v46 = vadd.f32 %v1190_v25, %v1051_v44 }
 0x250   : > { %v1090_v47 = vadd.f32 %v1082_v45, %v1543_v30  ;;  %v1081_v6 = vmul.f32 %v1191_v26, %v1066_v46 }
 0x252   : > { %1101 = vst.msk [vmem:[%s1604_s30 + $0x21] sm:$0xff] %vm708_vm0, %v1090_v47  ;;  %v1089_v39 = vadd.f32 %v1081_v6, %v1530_v12 }
 0x254   : > { %1100 = vst.msk [vmem:[%s1604_s30 + $0x19] sm:$0xff] %vm708_vm0, %v1089_v39 }
 0x255   : > { %v1245_v29 = vpop.f32.mrf.mxu1 }
 0x256   : > { %v1054_v48 = vmul.f32 %v1245_v29, %v1189_v23 }
 0x257   : > { %v1023_v49 = vpop.f32.mrf.mxu1 }
 0x258   : > { %v1069_v51 = vadd.f32 %v1190_v25, %v1054_v48  ;;  %v1053_v52 = vmul.f32 %v1189_v23, %v1023_v49 }
 0x25a   : > { %v1084_v53 = vmul.f32 %v1191_v26, %v1069_v51  ;;  %v1068_v41 = vadd.f32 %v1190_v25, %v1053_v52  ;;  %v1248_v54 = vpop.f32.mrf.mxu1 }
 0x25b   : > { %v1056_v30 = vmul.f32 %v1248_v54, %v1189_v23 }
 0x25c   : > { %v1092_v57 = vadd.f32 %v1084_v53, %v1557_v1  ;;  %v1083_v58 = vmul.f32 %v1191_v26, %v1068_v41  ;;  %v1033_v59 = vpop.f32.mrf.mxu1 }
 0x25d   : > { %v1071_v12 = vadd.f32 %v1190_v25, %v1056_v30  ;;  %v1055_v60 = vmul.f32 %v1189_v23, %v1033_v59 }
 0x25e   : > { %1103 = vst.msk [vmem:[%s1604_s30 + $0x31] sm:$0xff] %vm708_vm0, %v1092_v57  ;;  %v1091_v61 = vadd.f32 %v1083_v58, %v1550_v55 }
 0x25f   : > { %v1086_v62 = vmul.f32 %v1191_v26, %v1071_v12  ;;  %v1070_v63 = vadd.f32 %v1190_v25, %v1055_v60 }
 0x260   : > { %1102 = vst.msk [vmem:[%s1604_s30 + $0x29] sm:$0xff] %vm708_vm0, %v1091_v61 }
 0x261   : > { %v1094_v0 = vadd.f32 %v1086_v62, %v1564_v5  ;;  %v1085_v2 = vmul.f32 %v1191_v26, %v1070_v63 }
 0x263   : > { %1105 = vst.msk [vmem:[%s1604_s30 + $0x41] sm:$0xff] %vm708_vm0, %v1094_v0  ;;  %v1093_v21 = vadd.f32 %v1085_v2, %v1567_v8 }
 0x265   : > { %1104 = vst.msk [vmem:[%s1604_s30 + $0x39] sm:$0xff] %vm708_vm0, %v1093_v21 }
 0x266 PF: > { %s22_s21 = sadd.s32 1, %s1284_s21  }
 0x267   : > { %p19_p4 = scmp.ge.s32.totalorder %s22_s21, 4  }
 0x269   :  { %21 = sbr.rel (!%p19_p4) target bundleno = 1 (0x1), region = 98 }

// kernel: efficientformer_forward.13
= control target key start
LH: loop header
LB: loop body
LE: loop exit
PB: predicated region body
PF: predicated region fallthrough
CT: control target
= control target key end

     0   :  { %s945_s21 = smov 0   ;;  %s1047_s0 = inlined_call_operand.vmem [shape: f32[2,26,16], index: 0, kind: input, shape index: {}]   ;;  %s1048_s1 = inlined_call_operand.vmem [shape: f32[16,1], index: 1, kind: input, shape index: {}]   ;;  %s1049_s2 = inlined_call_operand.vmem [shape: f32[16,1], index: 2, kind: input, shape index: {}]   ;;  %s1050_s3 = inlined_call_operand.vmem [shape: f32[16,1], index: 3, kind: input, shape index: {}]   ;;  %s1051_s4 = inlined_call_operand.vmem [shape: f32[1,16], index: 4, kind: input, shape index: {}]   ;;  %s1052_s5 = inlined_call_operand.vmem [shape: f32[16,64], index: 5, kind: input, shape index: {}]   ;;  %s1053_s6 = inlined_call_operand.vmem [shape: f32[1,64], index: 6, kind: input, shape index: {}]   ;;  %s1054_s7 = inlined_call_operand.vmem [shape: f32[1,64], index: 7, kind: input, shape index: {}]   ;;  %s1055_s8 = inlined_call_operand.vmem [shape: f32[64,16], index: 8, kind: input, shape index: {}]   ;;  %s1056_s9 = inlined_call_operand.vmem [shape: f32[1,16], index: 9, kind: input, shape index: {}]   ;;  %s1057_s10 = inlined_call_operand.vmem [shape: f32[1,16], index: 10, kind: input, shape index: {}]   ;;  %s1058_s11 = inlined_call_operand.vmem [shape: f32[1,16], index: 11, kind: input, shape index: {}]   ;;  %s1059_s12 = inlined_call_operand.vmem [shape: f32[2,26,16], index: 12, kind: output, shape index: {}]  }
   0x1 LB: > { %s791_s22 = sadd.s32 4294967295, %s876_s21   ;;  %p795_p0 = scmp.ge.s32.totalorder %s876_s21, 1  ;;  %s876_s21 = sphi %s945_s21, %s22_s21  }
   0x2   : > { %p362_p1 = scmp.lt.s32.totalorder %s876_s21, 3 }
   0x4   : > { %p363_p2 = pnand %p795_p0, %p362_p1 }
   0x5   : > { %p404_p3 = scmp.lt.s32.totalorder (!%p363_p2), %s791_s22, 1 }
   0x6   : > { %366 = sbr.rel (%p363_p2) target bundleno = 579 (0x243), region = 68 }
   0xb   : > { %v457_v0 = vld [vmem:[%s1050_s3] sm:$0xff]  ;;  %v878_v2 = vmov 0   ;;  %v458_v3 = vld [vmem:[%s1050_s3 + $0x8] sm:$0xff]  ;;  %s1061_s22 = smov (!%p404_p3, %s791_s22), 1  ;;  %vm502_vm0 = vcmask 130048   ;;  %v619_v59 = vld [vmem:[%s1055_s8 + $0x38] sm:$0xff] }
   0xc   : > { %v441_v1 = vld [vmem:[%s1049_s2] sm:$0xff]  ;;  %865 = vset.pattern.permute.xlu1 %v878_v2  ;;  %864 = vset.pattern.permute.xlu0 %v878_v2  ;;  %v442_v4 = vld [vmem:[%s1049_s2 + $0x8] sm:$0xff]  ;;  %s812_s23 = sshll.u32 %s1061_s22, 5  ;;  %v618_v60 = vld [vmem:[%s1055_s8 + $0x30] sm:$0xff]  ;;  %vm620_vm1 = vcmask 523264   ;;  %vm731_vm2 = vcmask 126976  }
   0xd   : > { %461 = vperm.xlu1 %865, %v457_v0   ;;  %445 = vperm.xlu0 %864, %v441_v1   ;;  %v474_v5 = vld [vmem:[%s1048_s1 + $0x8] sm:$0xff]  ;;  %v473_v6 = vld [vmem:[%s1048_s1] sm:$0xff]  ;;  %s408_s26 = scalar_lea.vmem %s1047_s0, %s812_s23  ;;  %v615_v63 = vld [vmem:[%s1055_s8 + $0x18] sm:$0xff]  ;;  %s413_s18 = scalar_lea.vmem %s1059_s12, %s812_s23 }
   0xe   : > { %v501_v7 = vld [vmem:[%s1052_s5 + $0x8] sm:$0xff]  ;;  %v500_v8 = vld [vmem:[%s1052_s5] sm:$0xff]  ;;  %v422_v26 = vld [vmem:[%s408_s26 + $0x10] sm:$0xff]  ;;  %835 = vmatprep.subr.mxu1 %v619_v59 }
   0xf   : > { %828 = vmatprep.subr.mxu0 %v501_v7  ;;  %v416_v9 = vld [vmem:[%s408_s26] sm:$0xff]  ;;  %v417_v16 = vld [vmem:[%s408_s26 + $0x8] sm:$0xff]  ;;  %v438_v33 = vld [vmem:[%s408_s26 + $0x12] sm:$0xff]  ;;  %836 = vmatpush3.msra.mxu1 %v619_v59 }
  0x10   : > { %829 = vmatpush3.msra.mxu0 %v501_v7  ;;  %v418_v10 = vld [vmem:[%s408_s26 + $0x4] sm:$0xff]  ;;  %v419_v17 = vld [vmem:[%s408_s26 + $0xc] sm:$0xff]  ;;  %v800_v50 = vld [vmem:[%s1051_s4] ss:$0 sm:$0xff]  ;;  %837 = vmatprep.subr.mxu1 %v618_v60 }
  0x11   : > { %466 = vperm.xlu1 %865, %v458_v3   ;;  %450 = vperm.xlu0 %864, %v442_v4   ;;  %v432_v11 = vld [vmem:[%s408_s26 + $0x2] sm:$0xff]  ;;  %v420_v15 = vadd.f32 %v418_v10, %v416_v9  ;;  %v433_v18 = vld [vmem:[%s408_s26 + $0xa] sm:$0xff]  ;;  %v421_v25 = vadd.f32 %v419_v17, %v417_v16  ;;  %v803_v3 = vld [vmem:[%s1053_s6] ss:$0 sm:$0xff] }
  0x12   : > { %830 = vmatprep.subr.mxu0 %v500_v8  ;;  %v434_v12 = vld [vmem:[%s408_s26 + $0x6] sm:$0xff]  ;;  %v435_v22 = vld [vmem:[%s408_s26 + $0xe] sm:$0xff]  ;;  %838 = vmatpush3.msra.mxu1 %v618_v60 }
  0x13   : > { %831 = vmatpush3.msra.mxu0 %v500_v8  ;;  %v414_v13 = vld [vmem:[%s408_s26 + $0x5] sm:$0xff]  ;;  %v436_v19 = vadd.f32 %v434_v12, %v432_v11  ;;  %v415_v23 = vld [vmem:[%s408_s26 + $0xd] sm:$0xff]  ;;  %v423_v24 = vadd.f32 %v420_v15, %v417_v16  ;;  %v437_v29 = vadd.f32 %v435_v22, %v433_v18  ;;  %v424_v36 = vadd.f32 %v422_v26, %v421_v25  ;;  %v807_v22 = vld [vmem:[%s1056_s9] ss:$0 sm:$0xff] }
  0x14   : > { %v425_v14 = vld [vmem:[%s408_s26 + $0x1] sm:$0xff]  ;;  %v426_v21 = vld [vmem:[%s408_s26 + $0x9] sm:$0xff]  ;;  %v429_v34 = vld [vmem:[%s408_s26 + $0x11] sm:$0xff] }
  0x15   : > { %482 = vperm.xlu1 %865, %v474_v5   ;;  %477 = vperm.xlu0 %864, %v473_v6   ;;  %v427_v20 = vadd.f32 %v425_v14, %v414_v13  ;;  %v439_v27 = vadd.f32 %v436_v19, %v433_v18  ;;  %v428_v30 = vadd.f32 %v426_v21, %v415_v23  ;;  %v617_v61 = vld [vmem:[%s1055_s8 + $0x28] sm:$0xff]  ;;  %v616_v62 = vld [vmem:[%s1055_s8 + $0x20] sm:$0xff]  ;;  %v614_v0 = vld [vmem:[%s1055_s8 + $0x10] sm:$0xff] }
  0x16   : > { %v440_v39 = vadd.f32 %v438_v33, %v437_v29  ;;  %839 = vmatprep.subr.mxu1 %v617_v61  ;;  %v613_v1 = vld [vmem:[%s1055_s8 + $0x8] sm:$0xff]  ;;  %v612_v2 = vld [vmem:[%s1055_s8] sm:$0xff] }
  0x17   : > { %v430_v28 = vadd.f32 %v427_v20, %v426_v21  ;;  %v431_v40 = vadd.f32 %v429_v34, %v428_v30  ;;  %840 = vmatpush3.msra.mxu1 %v617_v61  ;;  %v804_v5 = vld [vmem:[%s1054_s7] ss:$0 sm:$0xff]  ;;  %v879_v21 = vmov 0.0  }
  0x18   : > { %841 = vmatprep.subr.mxu1 %v616_v62  ;;  %732 = vst.msk [vmem:[%s413_s18] sm:$0x1f] %vm731_vm2, %v879_v21  ;;  %735 = vst.msk [vmem:[%s413_s18 + $0x15] sm:$0x1f] %vm731_vm2, %v879_v21  ;;  %v809_v26 = vld [vmem:[%s1058_s11] ss:$0 sm:$0xff] }
  0x19   : > { %842 = vmatpush3.msra.mxu1 %v616_v62 }
  0x1a   : > { %843 = vmatprep.subr.mxu1 %v615_v63 }
  0x1b   : > { %844 = vmatpush3.msra.mxu1 %v615_v63 }
  0x1c   : > { %845 = vmatprep.subr.mxu1 %v614_v0 }
  0x1d   : > { %846 = vmatpush3.msra.mxu1 %v614_v0 }
  0x1e   : > { %847 = vmatprep.subr.mxu1 %v613_v1 }
  0x1f   : > { %848 = vmatpush3.msra.mxu1 %v613_v1 }
  0x20   : > { %849 = vmatprep.subr.mxu1 %v612_v2 }
  0x21   : > { %850 = vmatpush3.msra.mxu1 %v612_v2 }
  0x88   : > { %v462_v31 = vpop.permute.xlu1 %461  ;;  %v446_v32 = vpop.permute.xlu0 %445 }
  0x89   : > { %v453_v35 = vmul.f32 %v446_v32, %v423_v24  ;;  %v469_v37 = vmul.f32 %v462_v31, %v439_v27  ;;  %v808_v24 = vld [vmem:[%s1057_s10] ss:$0 sm:$0xff] }
  0x8b   : > { %v455_v38 = vadd.f32 %v453_v35, %v430_v28 }
  0x8c   : > { %v467_v41 = vpop.permute.xlu1 %466  ;;  %v451_v42 = vpop.permute.xlu0 %450 }
  0x8d   : > { %v454_v43 = vmul.f32 %v451_v42, %v424_v36  ;;  %v470_v44 = vmul.f32 %v467_v41, %v440_v39  ;;  %v471_v46 = vadd.f32 %v469_v37, %v455_v38 }
  0x8f   : > { %v456_v45 = vadd.f32 %v454_v43, %v431_v40 }
  0x90   : > { %v478_v47 = vpop.permute.xlu0 %477  ;;  %v483_v51 = vpop.permute.xlu1 %482 }
  0x91   : > { %v472_v48 = vadd.f32 %v470_v44, %v456_v45  ;;  %v485_v49 = vmul.f32 %v478_v47, %v471_v46 }
  0x93   : > { %v486_v52 = vmul.f32 %v483_v51, %v472_v48  ;;  %v488_v53 = vsub.f32 %v485_v49, %v414_v13 }
  0x95   : > { %v489_v54 = vsub.f32 %v486_v52, %v415_v23  ;;  %v496_v55 = vmul.f32 %v800_v50, %v488_v53 }
  0x97   : > { %v497_v56 = vmul.f32 %v800_v50, %v489_v54  ;;  %v988_v57 = vadd.f32 %v496_v55, %v414_v13 }
  0x99   : > { %v990_v58 = vadd.f32 %v497_v56, %v415_v23  ;;  %832 = vmatprep.mubr.msk.f32.mxu0 %vm502_vm0, %v988_v57 }
  0x9b   : > { %833 = vmatmul.mubr.msk.f32.vlgmr.msra.gmra.mxu0 %vm502_vm0, %v990_v58 }
 0x15b   : > { %v834_v4 = vpop.f32.mrf.mxu0 }
 0x15c   : > { %v592_v6 = vmul.f32 %v834_v4, %v803_v3 }
 0x15d   : > { %v575_v7 = vpop.f32.mrf.mxu0 }
 0x15e   : > { %v601_v8 = vadd.f32 %v804_v5, %v592_v6  ;;  %v591_v9 = vmul.f32 %v803_v3, %v575_v7 }
 0x160   : > { %v605_v10 = vmul.f32 0.70710677, %v601_v8  ;;  %v600_v11 = vadd.f32 %v804_v5, %v591_v9  ;;  %v603_v18 = vmul.f32 0.5, %v601_v8 }
 0x162   : > { %866 = verf.f32 %v605_v10  ;;  %v604_v12 = vmul.f32 0.70710677, %v600_v11  ;;  %v602_v16 = vmul.f32 0.5, %v600_v11 }
 0x164   : > { %868 = verf.f32 %v604_v12 }
 0x16f   : > { %v867_v13 = vpop.eup %866 }
 0x170   : > { %v609_v15 = vadd.f32 1.0, %v867_v13 }
 0x171   : > { %v869_v14 = vpop.eup %868 }
 0x172   : > { %v608_v17 = vadd.f32 1.0, %v869_v14  ;;  %v611_v20 = vmul.f32 %v609_v15, %v603_v18 }
 0x174   : > { %v610_v19 = vmul.f32 %v608_v17, %v602_v16 }
 0x176   : > { %851 = vmatprep.mubr.msk.f32.mxu1 %vm620_vm1, %v610_v19 }
 0x177   : > { %852 = vmatmul.mubr.msk.f32.vlgmr.msra.gmra.mxu1 %vm620_vm1, %v611_v20 }
 0x237   : > { %v853_v23 = vpop.f32.mrf.mxu1 }
 0x238   : > { %v710_v25 = vmul.f32 %v853_v23, %v807_v22 }
 0x239   : > { %v693_v27 = vpop.f32.mrf.mxu1 }
 0x23a   : > { %v719_v28 = vadd.f32 %v808_v24, %v710_v25  ;;  %v709_v29 = vmul.f32 %v807_v22, %v693_v27 }
 0x23c   : > { %v728_v30 = vmul.f32 %v809_v26, %v719_v28  ;;  %v718_v31 = vadd.f32 %v808_v24, %v709_v29 }
 0x23e   : > { %v730_v32 = vadd.f32 %v728_v30, %v990_v58  ;;  %v727_v33 = vmul.f32 %v809_v26, %v718_v31 }
 0x240   : > { %734 = vst.msk [vmem:[%s413_s18 + $0xd] sm:$0xff] %vm502_vm0, %v730_v32  ;;  %v729_v34 = vadd.f32 %v727_v33, %v988_v57 }
 0x242   : > { %733 = vst.msk [vmem:[%s413_s18 + $0x5] sm:$0xff] %vm502_vm0, %v729_v34 }
 0x243 PF: > { %s22_s21 = sadd.s32 1, %s876_s21  }
 0x244   : > { %p19_p4 = scmp.ge.s32.totalorder %s22_s21, 4  }
 0x246   :  { %21 = sbr.rel (!%p19_p4) target bundleno = 1 (0x1), region = 98 }

// kernel: efficientformer_forward.14
= control target key start
LH: loop header
LB: loop body
LE: loop exit
PB: predicated region body
PF: predicated region fallthrough
CT: control target
= control target key end

     0   :  { %v137_v0 = vmov 0.0   ;;  %vm37_vm0 = vcmask 130048   ;;  %vm127_vm1 = vcmask 261120   ;;  %s232_s1 = inlined_call_operand.vmem [shape: f32[144,32], index: 1, kind: input, shape index: {}]   ;;  %s233_s0 = inlined_call_operand.vmem [shape: f32[8,144], index: 0, kind: input, shape index: {}]   ;;  %s234_s2 = inlined_call_operand.vmem [shape: f32[1,32], index: 2, kind: input, shape index: {}]   ;;  %s235_s3 = inlined_call_operand.vmem [shape: f32[1,32], index: 3, kind: input, shape index: {}]   ;;  %s236_s4 = inlined_call_operand.vmem [shape: f32[8,32], index: 4, kind: output, shape index: {}]  }
   0x1   :  { %41 = vmatprep.subr.mxu0 %v137_v0  ;;  %v34_v1 = vld [vmem:[%s232_s1 + $0x78] sm:$0xff]  ;;  %v33_v2 = vld [vmem:[%s232_s1 + $0x70] sm:$0xff]  ;;  %v32_v3 = vld [vmem:[%s232_s1 + $0x68] sm:$0xff] }
   0x2   :  { %42 = vmatpush1.msra.mxu0 %v34_v1  ;;  %v31_v4 = vld [vmem:[%s232_s1 + $0x60] sm:$0xff]  ;;  %v30_v5 = vld [vmem:[%s232_s1 + $0x58] sm:$0xff]  ;;  %v18_v6 = vld [vmem:[%s233_s0 + $0x8] sm:$0xff] }
   0x3   :  { %43 = vmatprep.subr.mxu0 %v137_v0  ;;  %133 = vmatprep.mubr.msk.f32.mxu0 %vm37_vm0, %v18_v6  ;;  %v29_v7 = vld [vmem:[%s232_s1 + $0x50] sm:$0xff]  ;;  %v28_v8 = vld [vmem:[%s232_s1 + $0x48] sm:$0xff]  ;;  %v27_v9 = vld [vmem:[%s232_s1 + $0x40] sm:$0xff] }
   0x4   :  { %44 = vmatpush1.msra.mxu0 %v33_v2  ;;  %v26_v10 = vld [vmem:[%s232_s1 + $0x38] sm:$0xff]  ;;  %v25_v11 = vld [vmem:[%s232_s1 + $0x30] sm:$0xff]  ;;  %v24_v12 = vld [vmem:[%s232_s1 + $0x28] sm:$0xff] }
   0x5   :  { %45 = vmatprep.subr.mxu0 %v137_v0  ;;  %v23_v13 = vld [vmem:[%s232_s1 + $0x20] sm:$0xff]  ;;  %v22_v14 = vld [vmem:[%s232_s1 + $0x18] sm:$0xff]  ;;  %v21_v15 = vld [vmem:[%s232_s1 + $0x10] sm:$0xff] }
   0x6   :  { %46 = vmatpush1.msra.mxu0 %v32_v3  ;;  %v20_v16 = vld [vmem:[%s232_s1 + $0x8] sm:$0xff]  ;;  %v19_v17 = vld [vmem:[%s232_s1] sm:$0xff] }
   0x7   :  { %47 = vmatprep.subr.mxu0 %v137_v0  ;;  %v36_v18 = vld [vmem:[%s232_s1 + $0x88] sm:$0xff]  ;;  %v35_v19 = vld [vmem:[%s232_s1 + $0x80] sm:$0xff] }
   0x8   :  { %48 = vmatpush1.msra.mxu0 %v31_v4  ;;  %v17_v20 = vld [vmem:[%s233_s0] sm:$0xff] }
   0x9   :  { %49 = vmatprep.subr.mxu0 %v137_v0  ;;  %v134_v21 = vld [vmem:[%s234_s2] ss:$0 sm:$0xff] }
   0xa   :  { %50 = vmatpush1.msra.mxu0 %v30_v5  ;;  %v135_v23 = vld [vmem:[%s235_s3] ss:$0 sm:$0xff] }
   0xb   :  { %51 = vmatprep.subr.mxu0 %v137_v0 }
   0xc   :  { %52 = vmatpush1.msra.mxu0 %v29_v7 }
   0xd   :  { %53 = vmatprep.subr.mxu0 %v137_v0 }
   0xe   :  { %54 = vmatpush1.msra.mxu0 %v28_v8 }
   0xf   :  { %55 = vmatprep.subr.mxu0 %v137_v0 }
  0x10   :  { %56 = vmatpush1.msra.mxu0 %v27_v9 }
  0x11   :  { %57 = vmatprep.subr.mxu0 %v137_v0 }
  0x12   :  { %58 = vmatpush1.msra.mxu0 %v26_v10 }
  0x13   :  { %59 = vmatprep.subr.mxu0 %v137_v0 }
  0x14   :  { %60 = vmatpush1.msra.mxu0 %v25_v11 }
  0x15   :  { %61 = vmatprep.subr.mxu0 %v137_v0 }
  0x16   :  { %62 = vmatpush1.msra.mxu0 %v24_v12 }
  0x17   :  { %63 = vmatprep.subr.mxu0 %v137_v0 }
  0x18   :  { %64 = vmatpush1.msra.mxu0 %v23_v13 }
  0x19   :  { %65 = vmatprep.subr.mxu0 %v137_v0 }
  0x1a   :  { %66 = vmatpush1.msra.mxu0 %v22_v14 }
  0x1b   :  { %67 = vmatprep.subr.mxu0 %v137_v0 }
  0x1c   :  { %68 = vmatpush1.msra.mxu0 %v21_v15 }
  0x1d   :  { %69 = vmatprep.subr.mxu0 %v137_v0 }
  0x1e   :  { %70 = vmatpush1.msra.mxu0 %v20_v16 }
  0x1f   :  { %71 = vmatprep.subr.mxu0 %v137_v0 }
  0x20   :  { %72 = vmatpush1.msra.mxu0 %v19_v17 }
  0x21   :  { %101 = vmatprep.subr.mxu0 %v137_v0 }
  0x22   :  { %102 = vmatpush2.msra.mxu0 %v36_v18 }
  0x23   :  { %103 = vmatprep.subr.mxu0 %v137_v0 }
  0x24   :  { %104 = vmatpush2.msra.mxu0 %v35_v19 }
  0x25   :  { %106 = vmatmul.mubr.f32.vlgmr.msra.gmra.mxu0 %v17_v20 }
  0xe5   :  { %v107_v22 = vpop.f32.mrf.mxu0 }
  0xe6   :  { %v118_v24 = vmul.f32 %v134_v21, %v107_v22 }
  0xe7   :  { %v109_v25 = vpop.f32.mrf.mxu0 }
  0xe8   :  { %v126_v26 = vadd.f32 %v135_v23, %v118_v24 }
  0xea   :  { %128 = vst.msk [vmem:[%s236_s4] sm:$0xff] %vm127_vm1, %v126_v26 }

// kernel: efficientformer_forward.15
= control target key start
LH: loop header
LB: loop body
LE: loop exit
PB: predicated region body
PF: predicated region fallthrough
CT: control target
= control target key end

     0   :  { %s909_s21 = smov 0   ;;  %s1052_s0 = inlined_call_operand.vmem [shape: f32[2,10,32], index: 0, kind: input, shape index: {}]   ;;  %s1053_s1 = inlined_call_operand.vmem [shape: f32[4,1], index: 1, kind: input, shape index: {}]   ;;  %s1054_s2 = inlined_call_operand.vmem [shape: f32[4,1], index: 2, kind: input, shape index: {}]   ;;  %s1055_s3 = inlined_call_operand.vmem [shape: f32[4,1], index: 3, kind: input, shape index: {}]   ;;  %s1056_s4 = inlined_call_operand.vmem [shape: f32[1,32], index: 4, kind: input, shape index: {}]   ;;  %s1057_s5 = inlined_call_operand.vmem [shape: f32[32,128], index: 5, kind: input, shape index: {}]   ;;  %s1058_s6 = inlined_call_operand.vmem [shape: f32[1,128], index: 6, kind: input, shape index: {}]   ;;  %s1059_s7 = inlined_call_operand.vmem [shape: f32[1,128], index: 7, kind: input, shape index: {}]   ;;  %s1060_s8 = inlined_call_operand.vmem [shape: f32[128,32], index: 8, kind: input, shape index: {}]   ;;  %s1061_s9 = inlined_call_operand.vmem [shape: f32[1,32], index: 9, kind: input, shape index: {}]   ;;  %s1062_s10 = inlined_call_operand.vmem [shape: f32[1,32], index: 10, kind: input, shape index: {}]   ;;  %s1063_s11 = inlined_call_operand.vmem [shape: f32[1,32], index: 11, kind: input, shape index: {}]   ;;  %s1064_s12 = inlined_call_operand.vmem [shape: f32[2,10,32], index: 12, kind: output, shape index: {}]  }
   0x1 LB: > { %s730_s22 = sadd.s32 4294967295, %s839_s21   ;;  %p734_p0 = scmp.ge.s32.totalorder %s839_s21, 1  ;;  %s839_s21 = sphi %s909_s21, %s22_s21  }
   0x2   : > { %p362_p1 = scmp.lt.s32.totalorder %s839_s21, 3 }
   0x4   : > { %p363_p2 = pnand %p734_p0, %p362_p1 }
   0x5   : > { %p404_p3 = scmp.lt.s32.totalorder (!%p363_p2), %s730_s22, 1 }
   0x6   : > { %366 = sbr.rel (%p363_p2) target bundleno = 572 (0x23c), region = 68 }
   0xb   : > { %v427_v0 = vld [vmem:[%s1054_s2] sm:$0xf]  ;;  %v841_v1 = vmov 0   ;;  %v842_v4 = vmov 0.0   ;;  %v463_v5 = vld [vmem:[%s1057_s5 + $0x18] sm:$0xff]  ;;  %v462_v6 = vld [vmem:[%s1057_s5 + $0x10] sm:$0xff] }
   0xc   : > { %829 = vset.pattern.permute.xlu0 %v841_v1  ;;  %830 = vset.pattern.permute.xlu1 %v841_v1  ;;  %v443_v2 = vld [vmem:[%s1053_s1] sm:$0xf]  ;;  %v461_v7 = vld [vmem:[%s1057_s5 + $0x8] sm:$0xff]  ;;  %vm843_vm0 = vmmov 0   ;;  %v574_v9 = vld [vmem:[%s1060_s8 + $0x78] sm:$0xff]  ;;  %s1066_s22 = smov (!%p404_p3, %s730_s22), 1 }
   0xd   : > { %430 = vperm.xlu0 %829, %v427_v0   ;;  %446 = vperm.xlu1 %830, %v443_v2   ;;  %v435_v3 = vld [vmem:[%s1055_s3] sm:$0xf]  ;;  %v573_v10 = vld [vmem:[%s1060_s8 + $0x70] sm:$0xff]  ;;  %v572_v11 = vld [vmem:[%s1060_s8 + $0x68] sm:$0xff]  ;;  %s748_s27 = sshll.u32 %s1066_s22, 4  ;;  %vm464_vm1 = vcmask 261120  }
   0xe   : > { %772 = vmatprep.subr.mxu0 %v842_v4  ;;  %783 = vmatprep.subr.mxu1 %v842_v4  ;;  %v460_v8 = vld [vmem:[%s1057_s5] sm:$0xff]  ;;  %s408_s30 = scalar_lea.vmem %s1052_s0, %s748_s27  ;;  %v570_v38 = vld [vmem:[%s1060_s8 + $0x58] sm:$0xff]  ;;  %v569_v39 = vld [vmem:[%s1060_s8 + $0x50] sm:$0xff]  ;;  %s413_s17 = scalar_lea.vmem %s1064_s12, %s748_s27  ;;  %vm670_vm2 = vcmask 256000   ;;  %vm672_vm3 = vcmask 257024  }
   0xf   : > { %773 = vmatpush3.msra.mxu0 %v463_v5  ;;  %780 = vmatprep.mubr.msk.f32.mxu0 %vm843_vm0, %v842_v4  ;;  %v415_v12 = vld [vmem:[%s408_s30] sm:$0xf]  ;;  %v418_v16 = vld [vmem:[%s408_s30 + $0x4] sm:$0xf]  ;;  %v568_v40 = vld [vmem:[%s1060_s8 + $0x48] sm:$0xff] }
  0x10   : > { %774 = vmatprep.subr.mxu0 %v842_v4  ;;  %815 = vmatprep.mubr.msk.f32.mxu1 %vm843_vm0, %v842_v4  ;;  %v416_v13 = vld [vmem:[%s408_s30 + $0x2] sm:$0xf]  ;;  %v425_v22 = vld [vmem:[%s408_s30 + $0x6] sm:$0xf]  ;;  %v739_v33 = vld [vmem:[%s1056_s4] ss:$0 sm:$0xff] }
  0x11   : > { %438 = vperm.xlu0 %829, %v435_v3   ;;  %775 = vmatpush3.msra.mxu0 %v462_v6  ;;  %v417_v14 = vadd.f32 %v416_v13, %v415_v12  ;;  %v414_v15 = vld [vmem:[%s408_s30 + $0x3] sm:$0xf]  ;;  %v424_v20 = vadd.f32 %v418_v16, %v416_v13  ;;  %v566_v42 = vld [vmem:[%s1060_s8 + $0x38] sm:$0xff]  ;;  %v565_v43 = vld [vmem:[%s1060_s8 + $0x30] sm:$0xff]  ;;  %671 = vst.msk [vmem:[%s413_s17] sm:$0x7] %vm670_vm2, %v842_v4 }
  0x12   : > { %776 = vmatprep.subr.mxu0 %v842_v4  ;;  %784 = vmatpush3.msra.mxu1 %v574_v9  ;;  %v420_v17 = vld [vmem:[%s408_s30 + $0x1] sm:$0xf]  ;;  %v422_v21 = vld [vmem:[%s408_s30 + $0x5] sm:$0xf]  ;;  %v562_v46 = vld [vmem:[%s1060_s8 + $0x18] sm:$0xff] }
  0x13   : > { %777 = vmatpush3.msra.mxu0 %v461_v7  ;;  %785 = vmatprep.subr.mxu1 %v842_v4  ;;  %v419_v18 = vadd.f32 %v418_v16, %v417_v14  ;;  %v421_v19 = vadd.f32 %v420_v17, %v414_v15  ;;  %v426_v26 = vadd.f32 %v425_v22, %v424_v20  ;;  %v571_v37 = vld [vmem:[%s1060_s8 + $0x60] sm:$0xff]  ;;  %v564_v44 = vld [vmem:[%s1060_s8 + $0x28] sm:$0xff]  ;;  %v561_v47 = vld [vmem:[%s1060_s8 + $0x10] sm:$0xff] }
  0x14   : > { %778 = vmatprep.subr.mxu0 %v842_v4  ;;  %786 = vmatpush3.msra.mxu1 %v573_v10  ;;  %v567_v41 = vld [vmem:[%s1060_s8 + $0x40] sm:$0xff]  ;;  %v560_v48 = vld [vmem:[%s1060_s8 + $0x8] sm:$0xff]  ;;  %674 = vst.msk [vmem:[%s413_s17 + $0x7] sm:$0x7] %vm670_vm2, %v842_v4 }
  0x15   : > { %779 = vmatpush3.msra.mxu0 %v460_v8  ;;  %787 = vmatprep.subr.mxu1 %v842_v4  ;;  %v423_v24 = vadd.f32 %v422_v21, %v421_v19  ;;  %v563_v45 = vld [vmem:[%s1060_s8 + $0x20] sm:$0xff] }
  0x16   : > { %788 = vmatpush3.msra.mxu1 %v572_v11  ;;  %v559_v49 = vld [vmem:[%s1060_s8] sm:$0xff] }
  0x17   : > { %789 = vmatprep.subr.mxu1 %v842_v4  ;;  %v741_v50 = vld [vmem:[%s1058_s6] ss:$0 sm:$0xff] }
  0x18   : > { %790 = vmatpush3.msra.mxu1 %v571_v37  ;;  %v742_v52 = vld [vmem:[%s1059_s7] ss:$0 sm:$0xff] }
  0x19   : > { %791 = vmatprep.subr.mxu1 %v842_v4  ;;  %v743_v61 = vld [vmem:[%s1061_s9] ss:$0 sm:$0xff] }
  0x1a   : > { %792 = vmatpush3.msra.mxu1 %v570_v38  ;;  %v744_v63 = vld [vmem:[%s1062_s10] ss:$0 sm:$0xff] }
  0x1b   : > { %793 = vmatprep.subr.mxu1 %v842_v4  ;;  %v745_v1 = vld [vmem:[%s1063_s11] ss:$0 sm:$0xff] }
  0x1c   : > { %794 = vmatpush3.msra.mxu1 %v569_v39 }
  0x1d   : > { %795 = vmatprep.subr.mxu1 %v842_v4 }
  0x1e   : > { %796 = vmatpush3.msra.mxu1 %v568_v40 }
  0x1f   : > { %797 = vmatprep.subr.mxu1 %v842_v4 }
  0x20   : > { %798 = vmatpush3.msra.mxu1 %v567_v41 }
  0x21   : > { %799 = vmatprep.subr.mxu1 %v842_v4 }
  0x22   : > { %800 = vmatpush3.msra.mxu1 %v566_v42 }
  0x23   : > { %801 = vmatprep.subr.mxu1 %v842_v4 }
  0x24   : > { %802 = vmatpush3.msra.mxu1 %v565_v43 }
  0x25   : > { %803 = vmatprep.subr.mxu1 %v842_v4 }
  0x26   : > { %804 = vmatpush3.msra.mxu1 %v564_v44 }
  0x27   : > { %805 = vmatprep.subr.mxu1 %v842_v4 }
  0x28   : > { %806 = vmatpush3.msra.mxu1 %v563_v45 }
  0x29   : > { %807 = vmatprep.subr.mxu1 %v842_v4 }
  0x2a   : > { %808 = vmatpush3.msra.mxu1 %v562_v46 }
  0x2b   : > { %809 = vmatprep.subr.mxu1 %v842_v4 }
  0x2c   : > { %810 = vmatpush3.msra.mxu1 %v561_v47 }
  0x2d   : > { %811 = vmatprep.subr.mxu1 %v842_v4 }
  0x2e   : > { %812 = vmatpush3.msra.mxu1 %v560_v48 }
  0x2f   : > { %813 = vmatprep.subr.mxu1 %v842_v4 }
  0x30   : > { %814 = vmatpush3.msra.mxu1 %v559_v49 }
  0x88   : > { %v431_v23 = vpop.permute.xlu0 %430  ;;  %v447_v30 = vpop.permute.xlu1 %446 }
  0x89   : > { %v433_v25 = vmul.f32 %v431_v23, %v419_v18 }
  0x8b   : > { %v434_v28 = vadd.f32 %v433_v25, %v423_v24 }
  0x8c   : > { %v439_v27 = vpop.permute.xlu0 %438 }
  0x8d   : > { %v441_v29 = vmul.f32 %v439_v27, %v426_v26 }
  0x8f   : > { %v442_v31 = vadd.f32 %v441_v29, %v434_v28 }
  0x91   : > { %v449_v32 = vmul.f32 %v447_v30, %v442_v31 }
  0x93   : > { %v451_v34 = vsub.f32 %v449_v32, %v414_v15 }
  0x95   : > { %v458_v35 = vmul.f32 %v739_v33, %v451_v34 }
  0x97   : > { %v972_v36 = vadd.f32 %v458_v35, %v414_v15 }
  0x99   : > { %781 = vmatmul.mubr.msk.f32.vlgmr.msra.gmra.mxu0 %vm464_vm1, %v972_v36 }
 0x159   : > { %v534_v51 = vpop.f32.mrf.mxu0 }
 0x15a   : > { %v545_v53 = vmul.f32 %v741_v50, %v534_v51 }
 0x15b   : > { %v782_v54 = vpop.f32.mrf.mxu0 }
 0x15c   : > { %v553_v55 = vadd.f32 %v742_v52, %v545_v53 }
 0x15e   : > { %v555_v56 = vmul.f32 0.70710677, %v553_v55  ;;  %v554_v58 = vmul.f32 0.5, %v553_v55 }
 0x160   : > { %831 = verf.f32 %v555_v56 }
 0x16d   : > { %v832_v57 = vpop.eup %831 }
 0x16e   : > { %v557_v59 = vadd.f32 1.0, %v832_v57 }
 0x170   : > { %v558_v60 = vmul.f32 %v557_v59, %v554_v58 }
 0x172   : > { %816 = vmatmul.mubr.f32.vlgmr.msra.gmra.mxu1 %v558_v60 }
 0x232   : > { %v641_v62 = vpop.f32.mrf.mxu1 }
 0x233   : > { %v652_v0 = vmul.f32 %v743_v61, %v641_v62 }
 0x234   : > { %v817_v2 = vpop.f32.mrf.mxu1 }
 0x235   : > { %v660_v3 = vadd.f32 %v744_v63, %v652_v0 }
 0x237   : > { %v668_v5 = vmul.f32 %v745_v1, %v660_v3 }
 0x239   : > { %v669_v4 = vadd.f32 %v668_v5, %v972_v36 }
 0x23b   : > { %673 = vst.msk [vmem:[%s413_s17 + $0x3] sm:$0xf] %vm672_vm3, %v669_v4 }
 0x23c PF: > { %s22_s21 = sadd.s32 1, %s839_s21  }
 0x23d   : > { %p19_p4 = scmp.ge.s32.totalorder %s22_s21, 4  }
 0x23f   :  { %21 = sbr.rel (!%p19_p4) target bundleno = 1 (0x1), region = 98 }

// kernel: efficientformer_forward.17
= control target key start
LH: loop header
LB: loop body
LE: loop exit
PB: predicated region body
PF: predicated region fallthrough
CT: control target
= control target key end

     0   :  { %v278_v3 = vmov 0.0   ;;  %vm279_vm0 = vmmov 0   ;;  %vm56_vm1 = vcmask 261120   ;;  %vm216_vm2 = vcmask 523264   ;;  %s431_s1 = inlined_call_operand.vmem [shape: f32[288,64], index: 1, kind: input, shape index: {}]   ;;  %s432_s0 = inlined_call_operand.vmem [shape: f32[8,288], index: 0, kind: input, shape index: {}]   ;;  %s433_s2 = inlined_call_operand.vmem [shape: f32[1,64], index: 2, kind: input, shape index: {}]   ;;  %s434_s3 = inlined_call_operand.vmem [shape: f32[1,64], index: 3, kind: input, shape index: {}]   ;;  %s435_s4 = inlined_call_operand.vmem [shape: f32[8,64], index: 4, kind: output, shape index: {}]  }
   0x1   :  { %v51_v0 = vld [vmem:[%s431_s1 + $0xf8] sm:$0xff]  ;;  %v50_v2 = vld [vmem:[%s431_s1 + $0xf0] sm:$0xff]  ;;  %265 = vmatprep.subr.mxu1 %v278_v3  ;;  %273 = vmatprep.mubr.msk.f32.mxu1 %vm279_vm0, %v278_v3  ;;  %v49_v5 = vld [vmem:[%s431_s1 + $0xe8] sm:$0xff] }
   0x2   :  { %v35_v1 = vld [vmem:[%s431_s1 + $0x78] sm:$0xff]  ;;  %225 = vmatprep.subr.mxu0 %v51_v0  ;;  %v34_v4 = vld [vmem:[%s431_s1 + $0x70] sm:$0xff]  ;;  %v33_v6 = vld [vmem:[%s431_s1 + $0x68] sm:$0xff] }
   0x3   :  { %226 = vmatpush3.msra.mxu0 %v35_v1  ;;  %v48_v7 = vld [vmem:[%s431_s1 + $0xe0] sm:$0xff]  ;;  %v47_v9 = vld [vmem:[%s431_s1 + $0xd8] sm:$0xff]  ;;  %v46_v11 = vld [vmem:[%s431_s1 + $0xd0] sm:$0xff] }
   0x4   :  { %227 = vmatprep.subr.mxu0 %v50_v2  ;;  %v32_v8 = vld [vmem:[%s431_s1 + $0x60] sm:$0xff]  ;;  %v31_v10 = vld [vmem:[%s431_s1 + $0x58] sm:$0xff]  ;;  %v30_v12 = vld [vmem:[%s431_s1 + $0x50] sm:$0xff] }
   0x5   :  { %228 = vmatpush3.msra.mxu0 %v34_v4  ;;  %v55_v13 = vld [vmem:[%s431_s1 + $0x118] sm:$0xff]  ;;  %v45_v14 = vld [vmem:[%s431_s1 + $0xc8] sm:$0xff]  ;;  %v54_v15 = vld [vmem:[%s431_s1 + $0x110] sm:$0xff] }
   0x6   :  { %229 = vmatprep.subr.mxu0 %v49_v5  ;;  %266 = vmatpush3.msra.mxu1 %v55_v13  ;;  %v29_v16 = vld [vmem:[%s431_s1 + $0x48] sm:$0xff]  ;;  %v44_v18 = vld [vmem:[%s431_s1 + $0xc0] sm:$0xff]  ;;  %v43_v21 = vld [vmem:[%s431_s1 + $0xb8] sm:$0xff] }
   0x7   :  { %230 = vmatpush3.msra.mxu0 %v33_v6  ;;  %267 = vmatprep.subr.mxu1 %v278_v3  ;;  %v18_v17 = vld [vmem:[%s432_s0 + $0x8] sm:$0xff]  ;;  %v28_v20 = vld [vmem:[%s431_s1 + $0x40] sm:$0xff]  ;;  %v27_v23 = vld [vmem:[%s431_s1 + $0x38] sm:$0xff] }
   0x8   :  { %231 = vmatprep.subr.mxu0 %v48_v7  ;;  %268 = vmatpush3.msra.mxu1 %v54_v15  ;;  %v53_v19 = vld [vmem:[%s431_s1 + $0x108] sm:$0xff]  ;;  %v52_v22 = vld [vmem:[%s431_s1 + $0x100] sm:$0xff]  ;;  %v19_v24 = vld [vmem:[%s432_s0 + $0x10] sm:$0xff] }
   0x9   :  { %232 = vmatpush3.msra.mxu0 %v32_v8  ;;  %269 = vmatprep.subr.mxu1 %v278_v3  ;;  %v42_v25 = vld [vmem:[%s431_s1 + $0xb0] sm:$0xff]  ;;  %v41_v27 = vld [vmem:[%s431_s1 + $0xa8] sm:$0xff]  ;;  %v40_v29 = vld [vmem:[%s431_s1 + $0xa0] sm:$0xff] }
   0xa   :  { %233 = vmatprep.subr.mxu0 %v47_v9  ;;  %124 = vmatprep.mubr.f32.mxu0 %v18_v17  ;;  %v26_v26 = vld [vmem:[%s431_s1 + $0x30] sm:$0xff]  ;;  %v25_v28 = vld [vmem:[%s431_s1 + $0x28] sm:$0xff]  ;;  %v24_v30 = vld [vmem:[%s431_s1 + $0x20] sm:$0xff] }
   0xb   :  { %234 = vmatpush3.msra.mxu0 %v31_v10  ;;  %270 = vmatpush3.msra.mxu1 %v53_v19  ;;  %v39_v31 = vld [vmem:[%s431_s1 + $0x98] sm:$0xff]  ;;  %v38_v33 = vld [vmem:[%s431_s1 + $0x90] sm:$0xff]  ;;  %v37_v35 = vld [vmem:[%s431_s1 + $0x88] sm:$0xff] }
   0xc   :  { %235 = vmatprep.subr.mxu0 %v46_v11  ;;  %271 = vmatprep.subr.mxu1 %v278_v3  ;;  %v23_v32 = vld [vmem:[%s431_s1 + $0x18] sm:$0xff]  ;;  %v22_v34 = vld [vmem:[%s431_s1 + $0x10] sm:$0xff]  ;;  %v21_v36 = vld [vmem:[%s431_s1 + $0x8] sm:$0xff] }
   0xd   :  { %236 = vmatpush3.msra.mxu0 %v30_v12  ;;  %272 = vmatpush3.msra.mxu1 %v52_v22  ;;  %v36_v37 = vld [vmem:[%s431_s1 + $0x80] sm:$0xff] }
   0xe   :  { %237 = vmatprep.subr.mxu0 %v45_v14  ;;  %274 = vmatmul.mubr.msk.f32.vlgmr.msra.gmra.mxu1 %vm56_vm1, %v19_v24  ;;  %v20_v38 = vld [vmem:[%s431_s1] sm:$0xff] }
   0xf   :  { %238 = vmatpush3.msra.mxu0 %v29_v16  ;;  %v17_v39 = vld [vmem:[%s432_s0] sm:$0xff] }
  0x10   :  { %239 = vmatprep.subr.mxu0 %v44_v18  ;;  %v223_v45 = vld [vmem:[%s433_s2] ss:$0 sm:$0xff] }
  0x11   :  { %240 = vmatpush3.msra.mxu0 %v28_v20  ;;  %v224_v47 = vld [vmem:[%s434_s3] ss:$0 sm:$0xff] }
  0x12   :  { %241 = vmatprep.subr.mxu0 %v43_v21 }
  0x13   :  { %242 = vmatpush3.msra.mxu0 %v27_v23 }
  0x14   :  { %243 = vmatprep.subr.mxu0 %v42_v25 }
  0x15   :  { %244 = vmatpush3.msra.mxu0 %v26_v26 }
  0x16   :  { %245 = vmatprep.subr.mxu0 %v41_v27 }
  0x17   :  { %246 = vmatpush3.msra.mxu0 %v25_v28 }
  0x18   :  { %247 = vmatprep.subr.mxu0 %v40_v29 }
  0x19   :  { %248 = vmatpush3.msra.mxu0 %v24_v30 }
  0x1a   :  { %249 = vmatprep.subr.mxu0 %v39_v31 }
  0x1b   :  { %250 = vmatpush3.msra.mxu0 %v23_v32 }
  0x1c   :  { %251 = vmatprep.subr.mxu0 %v38_v33 }
  0x1d   :  { %252 = vmatpush3.msra.mxu0 %v22_v34 }
  0x1e   :  { %253 = vmatprep.subr.mxu0 %v37_v35 }
  0x1f   :  { %254 = vmatpush3.msra.mxu0 %v21_v36 }
  0x20   :  { %255 = vmatprep.subr.mxu0 %v36_v37 }
  0x21   :  { %256 = vmatpush3.msra.mxu0 %v20_v38 }
  0x22   :  { %125 = vmatmul.mubr.f32.vlgmr.msra.gmra.mxu0 %v17_v39 }
  0xce   :  { %v196_v40 = vpop.f32.mrf.mxu1 }
  0xd0   :  { %v275_v41 = vpop.f32.mrf.mxu1 }
  0xe2   :  { %v257_v42 = vpop.f32.mrf.mxu0 }
  0xe4   :  { %v258_v43 = vpop.f32.mrf.mxu0 }
  0xe5   :  { %v259_v44 = vadd.f32 %v258_v43, %v257_v42 }
  0xe7   :  { %v197_v46 = vadd.f32 %v259_v44, %v196_v40 }
  0xe9   :  { %v207_v48 = vmul.f32 %v223_v45, %v197_v46 }
  0xeb   :  { %v215_v49 = vadd.f32 %v224_v47, %v207_v48 }
  0xed   :  { %217 = vst.msk [vmem:[%s435_s4] sm:$0xff] %vm216_vm2, %v215_v49 }

</bundles_post_ra>
